<compile_context>
chip_gen: v7x
topology: tpu7x:2x2x1
jax: 0.10.0
libtpu: 0.0.40
codegen_flags: <defaults>
</compile_context>

<pallas_src>
import functools

import jax
import jax.numpy as jnp
from jax import lax
from jax.experimental import pallas as pl
from jax.experimental.pallas import tpu as pltpu


# --------------------------------------------------------------------------- #
# Fused VAD_Model kernel (MambaBlock + DualMemoryNetwork + fc + projection)
# --------------------------------------------------------------------------- #
def vad_fused_kernel(
    # inputs -----------------------------------------------------------------
    x_ref,        # (1, N, D_in)  time-major rows: row = t*Bt + b
    w_in_ref,     # (D_in, 2H)    compute dtype
    b_in_ref,     # (1, 2H)       f32
    conv_w_ref,   # (K, H)        f32
    conv_b_ref,   # (1, H)        f32
    w_ssm_ref,    # (H, S)        compute dtype
    b_ssm_ref,    # (1, S)        f32
    a_ref,        # (S, S)        f32
    bvec_ref,     # (1, S)        f32
    cvec_ref,     # (1, S)        f32
    dvec_ref,     # (1, H)        f32
    w_out_ref,    # (H, D_in)     compute dtype
    b_out_ref,    # (1, D_in)     f32
    pmem_t_ref,   # (D_in, M)     compute dtype  (primary memory, transposed)
    smem_t_ref,   # (D_in, M)     compute dtype  (secondary memory, transposed)
    pm_sq_ref,    # (1, M)        f32  (precomputed squared norms)
    sm_sq_ref,    # (1, M)        f32
    w_fc_ref,     # (D_in, C)     compute dtype
    b_fc_ref,     # (1, C)        f32
    w_proj_ref,   # (D_in, P)     compute dtype
    b_proj_ref,   # (1, P)        f32
    # outputs ----------------------------------------------------------------
    logits_ref,   # (1, Bt, C)
    anom_ref,     # (1, Bt, 1)
    proj_ref,     # (1, Bt, P)
    # scratch ----------------------------------------------------------------
    xssm_ref,     # VMEM (N, S) f32 : per-timestep SSM inputs, time-major
    *, hidden_size, d_state, d_conv, seq_len, block_batch):
  H, S, K, L, Bt = hidden_size, d_state, d_conv, seq_len, block_batch
  N = Bt * L
  del d_state
  cdt = w_in_ref.dtype          # MXU compute dtype (f32 or bf16)

  x = x_ref[0]                                                    # (N, D_in)

  # ---- in_proj + chunk (xh needed on all rows; gate only at last timestep) -
  xp = jnp.dot(x, w_in_ref[...], preferred_element_type=jnp.float32)
  xp = xp + b_in_ref[...]                                          # (N, 2H) f32
  xh = xp[:, :H]                                                   # (N, H)
  gate_last = xp[N - Bt:, H:]                                      # (Bt, H)

  # ---- causal depthwise conv1d: pltpu.roll sublane shifts + row mask -------
  cw = conv_w_ref[...]                                             # (K, H)
  conv = xh * cw[K - 1:K, :]                                       # tap s = 0
  if K > 1 and L > 1:
    row = lax.broadcasted_iota(jnp.int32, (N, 1), 0)               # row = t*Bt+b
    for k in range(K - 1):
      s = K - 1 - k                                                # shift 1..K-1
      if s >= L:
        continue                                                   # fully masked
      if N % 8 == 0:
        shifted = pltpu.roll(xh, shift=s * Bt, axis=0)             # x[t - s]
      else:                                                        # rare fallback
        shifted = jnp.concatenate(
            [jnp.zeros((s * Bt, H), jnp.float32), xh[:N - s * Bt, :]], axis=0)
      shifted = jnp.where(row >= s * Bt, shifted, 0.0)             # causal mask
      conv = conv + cw[k:k + 1, :] * shifted
  conv = conv + conv_b_ref[...]
  x_act = jax.nn.silu(conv)                                        # (N, H) f32

  # ---- ssm_proj -> time-major VMEM scratch ----------------------------------
  x_ssm = jnp.dot(x_act.astype(cdt), w_ssm_ref[...],
                  preferred_element_type=jnp.float32)
  xssm_ref[...] = x_ssm + b_ssm_ref[...]                           # (N, S)

  # ---- sequential SSM recurrence --------------------------------------------
  # Only h at t = L-1 feeds the heads, so nothing is stored inside the loop:
  # each step is one contiguous (Bt, S) load + (Bt,S)x(S,S) matmul + FMA.
  A = a_ref[...]                                                   # (S, S) f32
  Bv = bvec_ref[...]                                               # (1, S)

  def step(t, h):
    off = pl.multiple_of(t * Bt, Bt)
    u_t = xssm_ref[pl.ds(off, Bt), :]                              # (Bt, S)
    # h <- h @ A.T + u_t * B   (== einsum('ij,bj->bi', A, h) + u*B)
    # NOTE(perf): if this loop ever becomes MXU-push-latency bound, A could be
    # held in MXU staging regs via pltpu.matmul_push_rhs/_acc_lhs/_pop.
    return lax.dot_general(h, A, (((1,), (1,)), ((), ())),
                           preferred_element_type=jnp.float32) + u_t * Bv

  unroll = L if L <= 16 else 4
  h_last = lax.fori_loop(0, L, step, jnp.zeros((Bt, S), jnp.float32),
                         unroll=unroll)

  # ---- last-timestep C.h, D skip, gating, dropout (eval), out_proj ----------
  # TODO(synk): training-mode dropout (random mask + 1/(1-p) rescale) omitted.
  c_last = jnp.sum(h_last * cvec_ref[...], axis=-1, keepdims=True)  # (Bt, 1)
  x_act_last = x_act[N - Bt:, :]                                    # (Bt, H)
  ssm_last = x_act_last * (c_last + dvec_ref[...])
  y_last = ssm_last * jax.nn.silu(gate_last)                        # (Bt, H)
  feat = (jnp.dot(y_last.astype(cdt), w_out_ref[...],
                  preferred_element_type=jnp.float32)
          + b_out_ref[...])                                         # (Bt, D) f32

  # ---- DualMemoryNetwork: ||m - f||^2 = ||f||^2 + ||m||^2 - 2 f.m -----------
  f = feat.astype(cdt)
  f_sq = jnp.sum(feat * feat, axis=1, keepdims=True)                # (Bt, 1)
  cross_p = jnp.dot(f, pmem_t_ref[...], preferred_element_type=jnp.float32)
  cross_s = jnp.dot(f, smem_t_ref[...], preferred_element_type=jnp.float32)
  d2_p = f_sq + pm_sq_ref[...] - 2.0 * cross_p                      # (Bt, M)
  d2_s = f_sq + sm_sq_ref[...] - 2.0 * cross_s
  d2_min = jnp.min(jnp.minimum(d2_p, d2_s), axis=1, keepdims=True)  # (Bt, 1)
  anom_ref[0] = jnp.sqrt(jnp.maximum(d2_min, 0.0))   # single sqrt, after min

  # ---- fc / projection heads -------------------------------------------------
  logits_ref[0] = (jnp.dot(f, w_fc_ref[...],
                           preferred_element_type=jnp.float32) + b_fc_ref[...])
  proj_ref[0] = (jnp.dot(f, w_proj_ref[...],
                         preferred_element_type=jnp.float32) + b_proj_ref[...])


# --------------------------------------------------------------------------- #
# Wrapper
# --------------------------------------------------------------------------- #
def _pick_block_batch(batch, requested):
  """Bt = B on v5e/v6e (serial grid on one TC); Bt = B/2 on v7x (2 TCs)."""
  if requested is None:
    bt = batch
    try:
      kind = jax.devices()[0].device_kind.lower()
      if "v7" in kind and batch % 2 == 0 and batch >= 2:
        bt = batch // 2          # one "parallel" grid step per v7x TensorCore
    except Exception:
      pass
  else:
    bt = max(1, min(int(requested), batch))
  while batch % bt:
    bt -= 1
  return bt


def _resident_spec(a):
  """Constant index_map -> weight stays VMEM-resident across grid steps."""
  zero = (0,) * a.ndim
  return pl.BlockSpec(a.shape, lambda i, _z=zero: _z)


def prepare_vad_params(params, *, mxu_dtype=jnp.bfloat16):
  """One-time parameter prep: transposes, precomputed norms, MXU dtype casts."""
  f32 = jnp.float32
  m, h = params["mamba"], params["head"]
  mamba = dict(
      w_in=m["w_in"].astype(mxu_dtype), b_in=m["b_in"].astype(f32),
      conv_w=m["conv_w"].astype(f32), conv_b=m["conv_b"].astype(f32),
      w_ssm=m["w_ssm"].astype(mxu_dtype), b_ssm=m["b_ssm"].astype(f32),
      A=m["A"].astype(f32), Bp=m["Bp"].astype(f32), Cp=m["Cp"].astype(f32),
      Dp=m["Dp"].astype(f32),
      w_out=m["w_out"].astype(mxu_dtype), b_out=m["b_out"].astype(f32))
  head = dict(
      pmem_t=h["prim_mem"].T.astype(mxu_dtype),
      smem_t=h["sec_mem"].T.astype(mxu_dtype),
      pm_sq=jnp.sum(h["prim_mem"] * h["prim_mem"], axis=1)[None, :].astype(f32),
      sm_sq=jnp.sum(h["sec_mem"] * h["sec_mem"], axis=1)[None, :].astype(f32),
      w_fc=h["w_fc"].astype(mxu_dtype), b_fc=h["b_fc"].astype(f32),
      w_proj=h["w_proj"].astype(mxu_dtype), b_proj=h["b_proj"].astype(f32))
  return dict(mamba=mamba, head=head)


def vad_model_forward(x, prepared, *, hidden_size, d_state, d_conv,
                      block_batch=None):
  if x.ndim == 2:                       # mirrors `x.unsqueeze(1)` in the module
    x = x[:, None, :]
  B, L, D_in = x.shape
  m, h = prepared["mamba"], prepared["head"]
  cdt = m["w_in"].dtype
  Bt = _pick_block_batch(B, block_batch)
  G = B // Bt
  N = Bt * L

  # Time-major per block (row = t*Bt + b): a cheap one-off XLA transpose; the
  # in-kernel recurrence then reads one contiguous slab per step, and the
  # last-timestep rows are the last Bt contiguous rows of the block.
  x3 = x.reshape(G, Bt, L, D_in).transpose(0, 2, 1, 3).reshape(G, N, D_in)
  x3 = x3.astype(cdt)

  weights = (m["w_in"], m["b_in"], m["conv_w"], m["conv_b"],
             m["w_ssm"], m["b_ssm"], m["A"], m["Bp"], m["Cp"], m["Dp"],
             m["w_out"], m["b_out"],
             h["pmem_t"], h["smem_t"], h["pm_sq"], h["sm_sq"],
             h["w_fc"], h["b_fc"], h["w_proj"], h["b_proj"])
  C = h["w_fc"].shape[1]
  P = h["w_proj"].shape[1]

  kernel = functools.partial(
      vad_fused_kernel, hidden_size=hidden_size, d_state=d_state,
      d_conv=d_conv, seq_len=L, block_batch=Bt)

  logits, anom, proj = pl.pallas_call(
      kernel,
      out_shape=(jax.ShapeDtypeStruct((G, Bt, C), jnp.float32),
                 jax.ShapeDtypeStruct((G, Bt, 1), jnp.float32),
                 jax.ShapeDtypeStruct((G, Bt, P), jnp.float32)),
      grid=(G,),
      in_specs=[pl.BlockSpec((1, N, D_in), lambda i: (i, 0, 0))]
               + [_resident_spec(a) for a in weights],
      out_specs=(pl.BlockSpec((1, Bt, C), lambda i: (i, 0, 0)),
                 pl.BlockSpec((1, Bt, 1), lambda i: (i, 0, 0)),
                 pl.BlockSpec((1, Bt, P), lambda i: (i, 0, 0))),
      scratch_shapes=[pltpu.VMEM((N, d_state), jnp.float32)],
      compiler_params=pltpu.CompilerParams(
          dimension_semantics=("parallel",)),    # batch blocks are independent
  )(x3, *weights)

  return logits.reshape(B, C), anom.reshape(B), proj.reshape(B, P)


# --------------------------------------------------------------------------- #
# Pure-JAX references (mirror the PyTorch forward, eval mode)
# --------------------------------------------------------------------------- #
def reference_mamba_forward(x, p, *, hidden_size, d_state, d_conv):
  B, L, _ = x.shape
  H, K = hidden_size, d_conv
  xp = x @ p["w_in"] + p["b_in"][0]
  xh, gate = xp[..., :H], xp[..., H:]
  xpad = jnp.pad(xh, ((0, 0), (K - 1, 0), (0, 0)))
  acc = jnp.zeros_like(xh)
  for k in range(K):
    acc = acc + p["conv_w"][k] * xpad[:, k:k + L, :]
  conv = acc + p["conv_b"][0]
  xa = jax.nn.silu(conv)
  x_ssm = xa @ p["w_ssm"] + p["b_ssm"][0]
  h = jnp.zeros((B, d_state), jnp.float32)
  cs = []
  for t in range(L):
    h = h @ p["A"].T + x_ssm[:, t, :] * p["Bp"][0]
    cs.append(h @ p["Cp"][0])
  c = jnp.stack(cs, axis=1)
  ssm_out = xa * (c[..., None] + p["Dp"][0])
  y = ssm_out * jax.nn.silu(gate)
  return y @ p["w_out"] + p["b_out"][0]


def reference_vad_forward(x, params, *, hidden_size, d_state, d_conv):
  if x.ndim == 2:
    x = x[:, None, :]
  ph = params["head"]
  mamba_out = reference_mamba_forward(
      x, params["mamba"], hidden_size=hidden_size, d_state=d_state,
      d_conv=d_conv)
  feat = mamba_out[:, -1, :]
  dp = jnp.linalg.norm(ph["prim_mem"][None, :, :] - feat[:, None, :], axis=2)
  ds_ = jnp.linalg.norm(ph["sec_mem"][None, :, :] - feat[:, None, :], axis=2)
  anomaly = jnp.min(jnp.minimum(dp, ds_), axis=1)
  logits = feat @ ph["w_fc"] + ph["b_fc"][0]
  proj = feat @ ph["w_proj"] + ph["b_proj"][0]
  return logits, anomaly, proj


def _check(name, got, ref, *, atol, rtol):
  labels = ("fc_out", "anomaly_score", "projection")
  for lbl, g, r in zip(labels, got, ref):
    if g.shape != r.shape:
      raise AssertionError(f"[{name}] {lbl}: shape {g.shape} != {r.shape}")
    if not jnp.allclose(g, r, atol=atol, rtol=rtol):
      err = float(jnp.max(jnp.abs(g - r)))
      raise AssertionError(f"[{name}] {lbl}: max abs err {err:.3e} > tol")


# --------------------------------------------------------------------------- #
if __name__ == "__main__":
  # Full-precision XLA matmuls for the reference so the f32 kernel path can be
  # compared tightly.
  jax.config.update("jax_default_matmul_precision", "highest")

  B, L = 4, 8
  D_IN = 128                        # input_size (VAD_Model uses hidden == input)
  HIDDEN = D_IN
  D_STATE, D_CONV = 32, 4
  MEM_SIZE, NUM_CLASSES, PROJ_DIM = 128, 1, 128

  key = jax.random.PRNGKey(0)
  ks = jax.random.split(key, 16)
  mamba_params = dict(
      w_in=jax.random.normal(ks[0], (D_IN, 2 * HIDDEN), jnp.float32) * 0.05,
      b_in=jax.random.normal(ks[1], (1, 2 * HIDDEN), jnp.float32) * 0.01,
      conv_w=jax.random.normal(ks[2], (D_CONV, HIDDEN), jnp.float32) * 0.2,
      conv_b=jax.random.normal(ks[3], (1, HIDDEN), jnp.float32) * 0.01,
      w_ssm=jax.random.normal(ks[4], (HIDDEN, D_STATE), jnp.float32) * 0.05,
      b_ssm=jax.random.normal(ks[5], (1, D_STATE), jnp.float32) * 0.01,
      A=-jnp.eye(D_STATE, dtype=jnp.float32),
      Bp=jax.random.normal(ks[6], (1, D_STATE), jnp.float32) * 0.3,
      Cp=jax.random.normal(ks[7], (1, D_STATE), jnp.float32) * 0.3,
      Dp=jnp.ones((1, HIDDEN), jnp.float32),
      w_out=jax.random.normal(ks[8], (HIDDEN, D_IN), jnp.float32) * 0.1,
      b_out=jax.random.normal(ks[9], (1, D_IN), jnp.float32) * 0.01,
  )
  head_params = dict(
      prim_mem=jax.random.normal(ks[10], (MEM_SIZE, D_IN), jnp.float32) * 0.05,
      sec_mem=jax.random.normal(ks[11], (MEM_SIZE, D_IN), jnp.float32) * 0.05,
      w_fc=jax.random.normal(ks[12], (D_IN, NUM_CLASSES), jnp.float32) * 0.2,
      b_fc=jnp.zeros((1, NUM_CLASSES), jnp.float32),
      w_proj=jax.random.normal(ks[13], (D_IN, PROJ_DIM), jnp.float32) * 0.2,
      b_proj=jnp.zeros((1, PROJ_DIM), jnp.float32),
  )
  params = dict(mamba=mamba_params, head=head_params)
  x = jax.random.normal(ks[14], (B, L, D_IN), jnp.float32)

  fwd = jax.jit(functools.partial(
      vad_model_forward, hidden_size=HIDDEN, d_state=D_STATE, d_conv=D_CONV))

  ref_out = reference_vad_forward(
      x, params, hidden_size=HIDDEN, d_state=D_STATE, d_conv=D_CONV)

  # 1) f32 MXU operands: strict structural / numerical parity check.
  prepared_f32 = prepare_vad_params(params, mxu_dtype=jnp.float32)
  out_f32 = jax.block_until_ready(fwd(x, prepared_f32))
  _check("f32", out_f32, ref_out, atol=2e-3, rtol=2e-3)

  # 2) bf16 MXU operands (perf config for v6e/v7x; elementwise + SSM state f32).
  prepared_bf16 = prepare_vad_params(params, mxu_dtype=jnp.bfloat16)
  out_bf16 = jax.block_until_ready(fwd(x, prepared_bf16))
  _check("bf16", out_bf16, ref_out, atol=4e-2, rtol=4e-2)

  # 3) 2-D input path (module unsqueezes to seq_len = 1).
  x2d = x[:, 0, :]
  ref2d = reference_vad_forward(
      x2d, params, hidden_size=HIDDEN, d_state=D_STATE, d_conv=D_CONV)
  out2d = jax.block_until_ready(fwd(x2d, prepared_f32))
  _check("2d-input", out2d, ref2d, atol=2e-3, rtol=2e-3)

  assert out_f32[0].shape == (B, NUM_CLASSES)
  assert out_f32[1].shape == (B,)
  assert out_f32[2].shape == (B, PROJ_DIM)

  print("KERNEL_OK")
</pallas_src>

<mosaic_0001>
module attributes {stable_mosaic.version = 11 : i64} {
  func.func @vad_fused_kernel(%arg0: i32, %arg1: memref<1x32x128xf32, #tpu.memory_space<vmem>>, %arg2: memref<128x256xf32, #tpu.memory_space<vmem>>, %arg3: memref<1x256xf32, #tpu.memory_space<vmem>>, %arg4: memref<4x128xf32, #tpu.memory_space<vmem>>, %arg5: memref<1x128xf32, #tpu.memory_space<vmem>>, %arg6: memref<128x32xf32, #tpu.memory_space<vmem>>, %arg7: memref<1x32xf32, #tpu.memory_space<vmem>>, %arg8: memref<32x32xf32, #tpu.memory_space<vmem>>, %arg9: memref<1x32xf32, #tpu.memory_space<vmem>>, %arg10: memref<1x32xf32, #tpu.memory_space<vmem>>, %arg11: memref<1x128xf32, #tpu.memory_space<vmem>>, %arg12: memref<128x128xf32, #tpu.memory_space<vmem>>, %arg13: memref<1x128xf32, #tpu.memory_space<vmem>>, %arg14: memref<128x128xf32, #tpu.memory_space<vmem>>, %arg15: memref<128x128xf32, #tpu.memory_space<vmem>>, %arg16: memref<1x128xf32, #tpu.memory_space<vmem>>, %arg17: memref<1x128xf32, #tpu.memory_space<vmem>>, %arg18: memref<128x1xf32, #tpu.memory_space<vmem>>, %arg19: memref<1x1xf32, #tpu.memory_space<vmem>>, %arg20: memref<128x128xf32, #tpu.memory_space<vmem>>, %arg21: memref<1x128xf32, #tpu.memory_space<vmem>>, %arg22: memref<1x4x1xf32, #tpu.memory_space<vmem>>, %arg23: memref<1x4x1xf32, #tpu.memory_space<vmem>>, %arg24: memref<1x4x128xf32, #tpu.memory_space<vmem>>, %arg25: memref<32x32xf32, #tpu.memory_space<vmem>>) attributes {dimension_semantics = [#tpu.dimension_semantics<parallel>], iteration_bounds = array<i64: 1>, scalar_prefetch = 0 : i64, scratch_operands = 1 : i64, tpu.core_type = #tpu.core_type<tc>, window_params = [{transform_indices = @transform_0, window_bounds = array<i64: 1, 32, 128>}, {pipeline_mode = #tpu.pipeline_mode<synchronous>, transform_indices = @transform_1, window_bounds = array<i64: 128, 256>}, {pipeline_mode = #tpu.pipeline_mode<synchronous>, transform_indices = @transform_2, window_bounds = array<i64: 1, 256>}, {pipeline_mode = #tpu.pipeline_mode<synchronous>, transform_indices = @transform_3, window_bounds = array<i64: 4, 128>}, {pipeline_mode = #tpu.pipeline_mode<synchronous>, transform_indices = @transform_4, window_bounds = array<i64: 1, 128>}, {pipeline_mode = #tpu.pipeline_mode<synchronous>, transform_indices = @transform_5, window_bounds = array<i64: 128, 32>}, {pipeline_mode = #tpu.pipeline_mode<synchronous>, transform_indices = @transform_6, window_bounds = array<i64: 1, 32>}, {pipeline_mode = #tpu.pipeline_mode<synchronous>, transform_indices = @transform_7, window_bounds = array<i64: 32, 32>}, {pipeline_mode = #tpu.pipeline_mode<synchronous>, transform_indices = @transform_8, window_bounds = array<i64: 1, 32>}, {pipeline_mode = #tpu.pipeline_mode<synchronous>, transform_indices = @transform_9, window_bounds = array<i64: 1, 32>}, {pipeline_mode = #tpu.pipeline_mode<synchronous>, transform_indices = @transform_10, window_bounds = array<i64: 1, 128>}, {pipeline_mode = #tpu.pipeline_mode<synchronous>, transform_indices = @transform_11, window_bounds = array<i64: 128, 128>}, {pipeline_mode = #tpu.pipeline_mode<synchronous>, transform_indices = @transform_12, window_bounds = array<i64: 1, 128>}, {pipeline_mode = #tpu.pipeline_mode<synchronous>, transform_indices = @transform_13, window_bounds = array<i64: 128, 128>}, {pipeline_mode = #tpu.pipeline_mode<synchronous>, transform_indices = @transform_14, window_bounds = array<i64: 128, 128>}, {pipeline_mode = #tpu.pipeline_mode<synchronous>, transform_indices = @transform_15, window_bounds = array<i64: 1, 128>}, {pipeline_mode = #tpu.pipeline_mode<synchronous>, transform_indices = @transform_16, window_bounds = array<i64: 1, 128>}, {pipeline_mode = #tpu.pipeline_mode<synchronous>, transform_indices = @transform_17, window_bounds = array<i64: 128, 1>}, {pipeline_mode = #tpu.pipeline_mode<synchronous>, transform_indices = @transform_18, window_bounds = array<i64: 1, 1>}, {pipeline_mode = #tpu.pipeline_mode<synchronous>, transform_indices = @transform_19, window_bounds = array<i64: 128, 128>}, {pipeline_mode = #tpu.pipeline_mode<synchronous>, transform_indices = @transform_20, window_bounds = array<i64: 1, 128>}, {transform_indices = @transform_21, window_bounds = array<i64: 1, 4, 1>}, {transform_indices = @transform_22, window_bounds = array<i64: 1, 4, 1>}, {transform_indices = @transform_23, window_bounds = array<i64: 1, 4, 128>}]} {
    %c0 = arith.constant 0 : index
    %c0_0 = arith.constant 0 : index
    %c0_1 = arith.constant 0 : index
    %0 = vector.load %arg1[%c0, %c0_0, %c0_1] : memref<1x32x128xf32, #tpu.memory_space<vmem>>, vector<1x32x128xf32>
    %1 = vector.shape_cast %0 : vector<1x32x128xf32> to vector<32x128xf32>
    %c0_2 = arith.constant 0 : index
    %c0_3 = arith.constant 0 : index
    %2 = vector.load %arg2[%c0_2, %c0_3] : memref<128x256xf32, #tpu.memory_space<vmem>>, vector<128x256xf32>
    %cst = arith.constant dense<0.000000e+00> : vector<32x256xf32>
    %3 = tpu.matmul %1, %2, %cst {dimension_numbers = #tpu.dot_dimension_numbers<[1], [0], [0], [1], [0, 0, 1, 1], [], []>, precision = #tpu.contract_precision<fp32>} : vector<32x128xf32>, vector<128x256xf32>, vector<32x256xf32> -> vector<32x256xf32>
    %c0_4 = arith.constant 0 : index
    %c0_5 = arith.constant 0 : index
    %4 = vector.load %arg3[%c0_4, %c0_5] : memref<1x256xf32, #tpu.memory_space<vmem>>, vector<1x256xf32>
    %5 = vector.broadcast %4 : vector<1x256xf32> to vector<32x256xf32>
    %6 = arith.addf %3, %5 : vector<32x256xf32>
    %7 = vector.extract_strided_slice %6 {offsets = [0, 0], sizes = [32, 128], strides = [1, 1]} : vector<32x256xf32> to vector<32x128xf32>
    %8 = vector.extract_strided_slice %6 {offsets = [28, 128], sizes = [4, 128], strides = [1, 1]} : vector<32x256xf32> to vector<4x128xf32>
    %c0_6 = arith.constant 0 : index
    %c0_7 = arith.constant 0 : index
    %9 = vector.load %arg4[%c0_6, %c0_7] : memref<4x128xf32, #tpu.memory_space<vmem>>, vector<4x128xf32>
    %10 = vector.extract_strided_slice %9 {offsets = [3, 0], sizes = [1, 128], strides = [1, 1]} : vector<4x128xf32> to vector<1x128xf32>
    %11 = vector.broadcast %10 : vector<1x128xf32> to vector<32x128xf32>
    %12 = arith.mulf %7, %11 : vector<32x128xf32>
    %13 = tpu.iota {dimensions = array<i32: 0>} : vector<32x1xi32>
    %c12_i32 = arith.constant 12 : i32
    %14 = tpu.dynamic_rotate %7 by %c12_i32 dim 0 : vector<32x128xf32>, i32 -> vector<32x128xf32>
    %c12_i32_8 = arith.constant 12 : i32
    %15 = vector.broadcast %c12_i32_8 : i32 to vector<32x1xi32>
    %16 = arith.cmpi sge, %13, %15 : vector<32x1xi32>
    %cst_9 = arith.constant 0.000000e+00 : f32
    %17 = vector.shape_cast %16 : vector<32x1xi1> to vector<32x1xi1>
    %18 = vector.broadcast %17 : vector<32x1xi1> to vector<32x128xi1>
    %19 = vector.broadcast %cst_9 : f32 to vector<32x128xf32>
    %20 = arith.select %18, %14, %19 : vector<32x128xi1>, vector<32x128xf32>
    %21 = vector.extract_strided_slice %9 {offsets = [0, 0], sizes = [1, 128], strides = [1, 1]} : vector<4x128xf32> to vector<1x128xf32>
    %22 = vector.broadcast %21 : vector<1x128xf32> to vector<32x128xf32>
    %23 = arith.mulf %22, %20 : vector<32x128xf32>
    %24 = arith.addf %12, %23 : vector<32x128xf32>
    %c8_i32 = arith.constant 8 : i32
    %25 = tpu.dynamic_rotate %7 by %c8_i32 dim 0 : vector<32x128xf32>, i32 -> vector<32x128xf32>
    %c8_i32_10 = arith.constant 8 : i32
    %26 = vector.broadcast %c8_i32_10 : i32 to vector<32x1xi32>
    %27 = arith.cmpi sge, %13, %26 : vector<32x1xi32>
    %cst_11 = arith.constant 0.000000e+00 : f32
    %28 = vector.shape_cast %27 : vector<32x1xi1> to vector<32x1xi1>
    %29 = vector.broadcast %28 : vector<32x1xi1> to vector<32x128xi1>
    %30 = vector.broadcast %cst_11 : f32 to vector<32x128xf32>
    %31 = arith.select %29, %25, %30 : vector<32x128xi1>, vector<32x128xf32>
    %32 = vector.extract_strided_slice %9 {offsets = [1, 0], sizes = [1, 128], strides = [1, 1]} : vector<4x128xf32> to vector<1x128xf32>
    %33 = vector.broadcast %32 : vector<1x128xf32> to vector<32x128xf32>
    %34 = arith.mulf %33, %31 : vector<32x128xf32>
    %35 = arith.addf %24, %34 : vector<32x128xf32>
    %c4_i32 = arith.constant 4 : i32
    %36 = tpu.dynamic_rotate %7 by %c4_i32 dim 0 : vector<32x128xf32>, i32 -> vector<32x128xf32>
    %c4_i32_12 = arith.constant 4 : i32
    %37 = vector.broadcast %c4_i32_12 : i32 to vector<32x1xi32>
    %38 = arith.cmpi sge, %13, %37 : vector<32x1xi32>
    %cst_13 = arith.constant 0.000000e+00 : f32
    %39 = vector.shape_cast %38 : vector<32x1xi1> to vector<32x1xi1>
    %40 = vector.broadcast %39 : vector<32x1xi1> to vector<32x128xi1>
    %41 = vector.broadcast %cst_13 : f32 to vector<32x128xf32>
    %42 = arith.select %40, %36, %41 : vector<32x128xi1>, vector<32x128xf32>
    %43 = vector.extract_strided_slice %9 {offsets = [2, 0], sizes = [1, 128], strides = [1, 1]} : vector<4x128xf32> to vector<1x128xf32>
    %44 = vector.broadcast %43 : vector<1x128xf32> to vector<32x128xf32>
    %45 = arith.mulf %44, %42 : vector<32x128xf32>
    %46 = arith.addf %35, %45 : vector<32x128xf32>
    %c0_14 = arith.constant 0 : index
    %c0_15 = arith.constant 0 : index
    %47 = vector.load %arg5[%c0_14, %c0_15] : memref<1x128xf32, #tpu.memory_space<vmem>>, vector<1x128xf32>
    %48 = vector.broadcast %47 : vector<1x128xf32> to vector<32x128xf32>
    %49 = arith.addf %46, %48 : vector<32x128xf32>
    %50 = arith.negf %49 : vector<32x128xf32>
    %51 = math.exp %50 : vector<32x128xf32>
    %cst_16 = arith.constant 1.000000e+00 : f32
    %52 = vector.broadcast %cst_16 : f32 to vector<32x128xf32>
    %53 = arith.addf %52, %51 : vector<32x128xf32>
    %54 = arith.divf %52, %53 : vector<32x128xf32>
    %55 = arith.mulf %49, %54 : vector<32x128xf32>
    %c0_17 = arith.constant 0 : index
    %c0_18 = arith.constant 0 : index
    %56 = vector.load %arg6[%c0_17, %c0_18] : memref<128x32xf32, #tpu.memory_space<vmem>>, vector<128x32xf32>
    %cst_19 = arith.constant dense<0.000000e+00> : vector<32x32xf32>
    %57 = tpu.matmul %55, %56, %cst_19 {dimension_numbers = #tpu.dot_dimension_numbers<[1], [0], [0], [1], [0, 0, 1, 1], [], []>, precision = #tpu.contract_precision<fp32>} : vector<32x128xf32>, vector<128x32xf32>, vector<32x32xf32> -> vector<32x32xf32>
    %c0_20 = arith.constant 0 : index
    %c0_21 = arith.constant 0 : index
    %58 = vector.load %arg7[%c0_20, %c0_21] : memref<1x32xf32, #tpu.memory_space<vmem>>, vector<1x32xf32>
    %59 = vector.broadcast %58 : vector<1x32xf32> to vector<32x32xf32>
    %60 = arith.addf %57, %59 : vector<32x32xf32>
    %c0_22 = arith.constant 0 : index
    %c0_23 = arith.constant 0 : index
    %61 = vector.load %arg25[%c0_22, %c0_23] : memref<32x32xf32, #tpu.memory_space<vmem>>, vector<32x32xf32>
    tpu.vector_store %arg25[%c0_22, %c0_23], %60 {strides = array<i32>} : memref<32x32xf32, #tpu.memory_space<vmem>>, vector<32x32xf32>,
    %c0_24 = arith.constant 0 : index
    %c0_25 = arith.constant 0 : index
    %62 = vector.load %arg8[%c0_24, %c0_25] : memref<32x32xf32, #tpu.memory_space<vmem>>, vector<32x32xf32>
    %c0_26 = arith.constant 0 : index
    %c0_27 = arith.constant 0 : index
    %63 = vector.load %arg9[%c0_26, %c0_27] : memref<1x32xf32, #tpu.memory_space<vmem>>, vector<1x32xf32>
    %cst_28 = arith.constant 0.000000e+00 : f32
    %64 = vector.broadcast %cst_28 : f32 to vector<4x32xf32>
    %c0_i32 = arith.constant 0 : i32
    %c4_i32_29 = arith.constant 4 : i32
    %65 = arith.muli %c0_i32, %c4_i32_29 : i32
    %66 = tpu.assume_multiple %65, 4 : i32
    %67 = arith.index_cast %66 : i32 to index
    %c0_30 = arith.constant 0 : index
    %68 = vector.load %arg25[%67, %c0_30] : memref<32x32xf32, #tpu.memory_space<vmem>>, vector<4x32xf32>
    %cst_31 = arith.constant dense<0.000000e+00> : vector<4x32xf32>
    %69 = tpu.matmul %64, %62, %cst_31 {dimension_numbers = #tpu.dot_dimension_numbers<[1], [1], [0], [0], [0, 0, 1, 0], [], []>, precision = #tpu.contract_precision<fp32>} : vector<4x32xf32>, vector<32x32xf32>, vector<4x32xf32> -> vector<4x32xf32>
    %70 = vector.broadcast %63 : vector<1x32xf32> to vector<4x32xf32>
    %71 = arith.mulf %68, %70 : vector<4x32xf32>
    %72 = arith.addf %69, %71 : vector<4x32xf32>
    %c1_i32 = arith.constant 1 : i32
    %c4_i32_32 = arith.constant 4 : i32
    %73 = arith.muli %c1_i32, %c4_i32_32 : i32
    %74 = tpu.assume_multiple %73, 4 : i32
    %75 = arith.index_cast %74 : i32 to index
    %c0_33 = arith.constant 0 : index
    %76 = vector.load %arg25[%75, %c0_33] : memref<32x32xf32, #tpu.memory_space<vmem>>, vector<4x32xf32>
    %cst_34 = arith.constant dense<0.000000e+00> : vector<4x32xf32>
    %77 = tpu.matmul %72, %62, %cst_34 {dimension_numbers = #tpu.dot_dimension_numbers<[1], [1], [0], [0], [0, 0, 1, 0], [], []>, precision = #tpu.contract_precision<fp32>} : vector<4x32xf32>, vector<32x32xf32>, vector<4x32xf32> -> vector<4x32xf32>
    %78 = vector.broadcast %63 : vector<1x32xf32> to vector<4x32xf32>
    %79 = arith.mulf %76, %78 : vector<4x32xf32>
    %80 = arith.addf %77, %79 : vector<4x32xf32>
    %c2_i32 = arith.constant 2 : i32
    %c4_i32_35 = arith.constant 4 : i32
    %81 = arith.muli %c2_i32, %c4_i32_35 : i32
    %82 = tpu.assume_multiple %81, 4 : i32
    %83 = arith.index_cast %82 : i32 to index
    %c0_36 = arith.constant 0 : index
    %84 = vector.load %arg25[%83, %c0_36] : memref<32x32xf32, #tpu.memory_space<vmem>>, vector<4x32xf32>
    %cst_37 = arith.constant dense<0.000000e+00> : vector<4x32xf32>
    %85 = tpu.matmul %80, %62, %cst_37 {dimension_numbers = #tpu.dot_dimension_numbers<[1], [1], [0], [0], [0, 0, 1, 0], [], []>, precision = #tpu.contract_precision<fp32>} : vector<4x32xf32>, vector<32x32xf32>, vector<4x32xf32> -> vector<4x32xf32>
    %86 = vector.broadcast %63 : vector<1x32xf32> to vector<4x32xf32>
    %87 = arith.mulf %84, %86 : vector<4x32xf32>
    %88 = arith.addf %85, %87 : vector<4x32xf32>
    %c3_i32 = arith.constant 3 : i32
    %c4_i32_38 = arith.constant 4 : i32
    %89 = arith.muli %c3_i32, %c4_i32_38 : i32
    %90 = tpu.assume_multiple %89, 4 : i32
    %91 = arith.index_cast %90 : i32 to index
    %c0_39 = arith.constant 0 : index
    %92 = vector.load %arg25[%91, %c0_39] : memref<32x32xf32, #tpu.memory_space<vmem>>, vector<4x32xf32>
    %cst_40 = arith.constant dense<0.000000e+00> : vector<4x32xf32>
    %93 = tpu.matmul %88, %62, %cst_40 {dimension_numbers = #tpu.dot_dimension_numbers<[1], [1], [0], [0], [0, 0, 1, 0], [], []>, precision = #tpu.contract_precision<fp32>} : vector<4x32xf32>, vector<32x32xf32>, vector<4x32xf32> -> vector<4x32xf32>
    %94 = vector.broadcast %63 : vector<1x32xf32> to vector<4x32xf32>
    %95 = arith.mulf %92, %94 : vector<4x32xf32>
    %96 = arith.addf %93, %95 : vector<4x32xf32>
    %c4_i32_41 = arith.constant 4 : i32
    %c4_i32_42 = arith.constant 4 : i32
    %97 = arith.muli %c4_i32_41, %c4_i32_42 : i32
    %98 = tpu.assume_multiple %97, 4 : i32
    %99 = arith.index_cast %98 : i32 to index
    %c0_43 = arith.constant 0 : index
    %100 = vector.load %arg25[%99, %c0_43] : memref<32x32xf32, #tpu.memory_space<vmem>>, vector<4x32xf32>
    %cst_44 = arith.constant dense<0.000000e+00> : vector<4x32xf32>
    %101 = tpu.matmul %96, %62, %cst_44 {dimension_numbers = #tpu.dot_dimension_numbers<[1], [1], [0], [0], [0, 0, 1, 0], [], []>, precision = #tpu.contract_precision<fp32>} : vector<4x32xf32>, vector<32x32xf32>, vector<4x32xf32> -> vector<4x32xf32>
    %102 = vector.broadcast %63 : vector<1x32xf32> to vector<4x32xf32>
    %103 = arith.mulf %100, %102 : vector<4x32xf32>
    %104 = arith.addf %101, %103 : vector<4x32xf32>
    %c5_i32 = arith.constant 5 : i32
    %c4_i32_45 = arith.constant 4 : i32
    %105 = arith.muli %c5_i32, %c4_i32_45 : i32
    %106 = tpu.assume_multiple %105, 4 : i32
    %107 = arith.index_cast %106 : i32 to index
    %c0_46 = arith.constant 0 : index
    %108 = vector.load %arg25[%107, %c0_46] : memref<32x32xf32, #tpu.memory_space<vmem>>, vector<4x32xf32>
    %cst_47 = arith.constant dense<0.000000e+00> : vector<4x32xf32>
    %109 = tpu.matmul %104, %62, %cst_47 {dimension_numbers = #tpu.dot_dimension_numbers<[1], [1], [0], [0], [0, 0, 1, 0], [], []>, precision = #tpu.contract_precision<fp32>} : vector<4x32xf32>, vector<32x32xf32>, vector<4x32xf32> -> vector<4x32xf32>
    %110 = vector.broadcast %63 : vector<1x32xf32> to vector<4x32xf32>
    %111 = arith.mulf %108, %110 : vector<4x32xf32>
    %112 = arith.addf %109, %111 : vector<4x32xf32>
    %c6_i32 = arith.constant 6 : i32
    %c4_i32_48 = arith.constant 4 : i32
    %113 = arith.muli %c6_i32, %c4_i32_48 : i32
    %114 = tpu.assume_multiple %113, 4 : i32
    %115 = arith.index_cast %114 : i32 to index
    %c0_49 = arith.constant 0 : index
    %116 = vector.load %arg25[%115, %c0_49] : memref<32x32xf32, #tpu.memory_space<vmem>>, vector<4x32xf32>
    %cst_50 = arith.constant dense<0.000000e+00> : vector<4x32xf32>
    %117 = tpu.matmul %112, %62, %cst_50 {dimension_numbers = #tpu.dot_dimension_numbers<[1], [1], [0], [0], [0, 0, 1, 0], [], []>, precision = #tpu.contract_precision<fp32>} : vector<4x32xf32>, vector<32x32xf32>, vector<4x32xf32> -> vector<4x32xf32>
    %118 = vector.broadcast %63 : vector<1x32xf32> to vector<4x32xf32>
    %119 = arith.mulf %116, %118 : vector<4x32xf32>
    %120 = arith.addf %117, %119 : vector<4x32xf32>
    %c7_i32 = arith.constant 7 : i32
    %c4_i32_51 = arith.constant 4 : i32
    %121 = arith.muli %c7_i32, %c4_i32_51 : i32
    %122 = tpu.assume_multiple %121, 4 : i32
    %123 = arith.index_cast %122 : i32 to index
    %c0_52 = arith.constant 0 : index
    %124 = vector.load %arg25[%123, %c0_52] : memref<32x32xf32, #tpu.memory_space<vmem>>, vector<4x32xf32>
    %cst_53 = arith.constant dense<0.000000e+00> : vector<4x32xf32>
    %125 = tpu.matmul %120, %62, %cst_53 {dimension_numbers = #tpu.dot_dimension_numbers<[1], [1], [0], [0], [0, 0, 1, 0], [], []>, precision = #tpu.contract_precision<fp32>} : vector<4x32xf32>, vector<32x32xf32>, vector<4x32xf32> -> vector<4x32xf32>
    %126 = vector.broadcast %63 : vector<1x32xf32> to vector<4x32xf32>
    %127 = arith.mulf %124, %126 : vector<4x32xf32>
    %128 = arith.addf %125, %127 : vector<4x32xf32>
    %c8_i32_54 = arith.constant 8 : i32
    %c0_55 = arith.constant 0 : index
    %c0_56 = arith.constant 0 : index
    %129 = vector.load %arg10[%c0_55, %c0_56] : memref<1x32xf32, #tpu.memory_space<vmem>>, vector<1x32xf32>
    %130 = vector.broadcast %129 : vector<1x32xf32> to vector<4x32xf32>
    %131 = arith.mulf %128, %130 : vector<4x32xf32>
    %cst_57 = arith.constant dense<0.000000e+00> : vector<4xf32>
    %132 = vector.multi_reduction <add>, %131, %cst_57 [1] : vector<4x32xf32> to vector<4xf32>
    %133 = vector.shape_cast %132 : vector<4xf32> to vector<4x1xf32>
    %134 = vector.extract_strided_slice %55 {offsets = [28, 0], sizes = [4, 128], strides = [1, 1]} : vector<32x128xf32> to vector<4x128xf32>
    %c0_58 = arith.constant 0 : index
    %c0_59 = arith.constant 0 : index
    %135 = vector.load %arg11[%c0_58, %c0_59] : memref<1x128xf32, #tpu.memory_space<vmem>>, vector<1x128xf32>
    %136 = vector.broadcast %133 : vector<4x1xf32> to vector<4x128xf32>
    %137 = vector.broadcast %135 : vector<1x128xf32> to vector<4x128xf32>
    %138 = arith.addf %136, %137 : vector<4x128xf32>
    %139 = arith.mulf %134, %138 : vector<4x128xf32>
    %140 = arith.negf %8 : vector<4x128xf32>
    %141 = math.exp %140 : vector<4x128xf32>
    %cst_60 = arith.constant 1.000000e+00 : f32
    %142 = vector.broadcast %cst_60 : f32 to vector<4x128xf32>
    %143 = arith.addf %142, %141 : vector<4x128xf32>
    %144 = arith.divf %142, %143 : vector<4x128xf32>
    %145 = arith.mulf %8, %144 : vector<4x128xf32>
    %146 = arith.mulf %139, %145 : vector<4x128xf32>
    %c0_61 = arith.constant 0 : index
    %c0_62 = arith.constant 0 : index
    %147 = vector.load %arg12[%c0_61, %c0_62] : memref<128x128xf32, #tpu.memory_space<vmem>>, vector<128x128xf32>
    %cst_63 = arith.constant dense<0.000000e+00> : vector<4x128xf32>
    %148 = tpu.matmul %146, %147, %cst_63 {dimension_numbers = #tpu.dot_dimension_numbers<[1], [0], [0], [1], [0, 0, 1, 1], [], []>, precision = #tpu.contract_precision<fp32>} : vector<4x128xf32>, vector<128x128xf32>, vector<4x128xf32> -> vector<4x128xf32>
    %c0_64 = arith.constant 0 : index
    %c0_65 = arith.constant 0 : index
    %149 = vector.load %arg13[%c0_64, %c0_65] : memref<1x128xf32, #tpu.memory_space<vmem>>, vector<1x128xf32>
    %150 = vector.broadcast %149 : vector<1x128xf32> to vector<4x128xf32>
    %151 = arith.addf %148, %150 : vector<4x128xf32>
    %152 = arith.mulf %151, %151 : vector<4x128xf32>
    %cst_66 = arith.constant dense<0.000000e+00> : vector<4xf32>
    %153 = vector.multi_reduction <add>, %152, %cst_66 [1] : vector<4x128xf32> to vector<4xf32>
    %154 = vector.shape_cast %153 : vector<4xf32> to vector<4x1xf32>
    %c0_67 = arith.constant 0 : index
    %c0_68 = arith.constant 0 : index
    %155 = vector.load %arg14[%c0_67, %c0_68] : memref<128x128xf32, #tpu.memory_space<vmem>>, vector<128x128xf32>
    %cst_69 = arith.constant dense<0.000000e+00> : vector<4x128xf32>
    %156 = tpu.matmul %151, %155, %cst_69 {dimension_numbers = #tpu.dot_dimension_numbers<[1], [0], [0], [1], [0, 0, 1, 1], [], []>, precision = #tpu.contract_precision<fp32>} : vector<4x128xf32>, vector<128x128xf32>, vector<4x128xf32> -> vector<4x128xf32>
    %c0_70 = arith.constant 0 : index
    %c0_71 = arith.constant 0 : index
    %157 = vector.load %arg15[%c0_70, %c0_71] : memref<128x128xf32, #tpu.memory_space<vmem>>, vector<128x128xf32>
    %cst_72 = arith.constant dense<0.000000e+00> : vector<4x128xf32>
    %158 = tpu.matmul %151, %157, %cst_72 {dimension_numbers = #tpu.dot_dimension_numbers<[1], [0], [0], [1], [0, 0, 1, 1], [], []>, precision = #tpu.contract_precision<fp32>} : vector<4x128xf32>, vector<128x128xf32>, vector<4x128xf32> -> vector<4x128xf32>
    %c0_73 = arith.constant 0 : index
    %c0_74 = arith.constant 0 : index
    %159 = vector.load %arg16[%c0_73, %c0_74] : memref<1x128xf32, #tpu.memory_space<vmem>>, vector<1x128xf32>
    %160 = vector.broadcast %154 : vector<4x1xf32> to vector<4x128xf32>
    %161 = vector.broadcast %159 : vector<1x128xf32> to vector<4x128xf32>
    %162 = arith.addf %160, %161 : vector<4x128xf32>
    %cst_75 = arith.constant 2.000000e+00 : f32
    %163 = vector.broadcast %cst_75 : f32 to vector<4x128xf32>
    %164 = arith.mulf %163, %156 : vector<4x128xf32>
    %165 = arith.subf %162, %164 : vector<4x128xf32>
    %c0_76 = arith.constant 0 : index
    %c0_77 = arith.constant 0 : index
    %166 = vector.load %arg17[%c0_76, %c0_77] : memref<1x128xf32, #tpu.memory_space<vmem>>, vector<1x128xf32>
    %167 = vector.broadcast %154 : vector<4x1xf32> to vector<4x128xf32>
    %168 = vector.broadcast %166 : vector<1x128xf32> to vector<4x128xf32>
    %169 = arith.addf %167, %168 : vector<4x128xf32>
    %cst_78 = arith.constant 2.000000e+00 : f32
    %170 = vector.broadcast %cst_78 : f32 to vector<4x128xf32>
    %171 = arith.mulf %170, %158 : vector<4x128xf32>
    %172 = arith.subf %169, %171 : vector<4x128xf32>
    %173 = arith.minimumf %165, %172 : vector<4x128xf32>
    %cst_79 = arith.constant dense<0x7F800000> : vector<4xf32>
    %174 = vector.multi_reduction <minimumf>, %173, %cst_79 [1] : vector<4x128xf32> to vector<4xf32>
    %175 = vector.shape_cast %174 : vector<4xf32> to vector<4x1xf32>
    %cst_80 = arith.constant 0.000000e+00 : f32
    %176 = vector.broadcast %cst_80 : f32 to vector<4x1xf32>
    %177 = arith.maximumf %175, %176 : vector<4x1xf32>
    %178 = math.sqrt %177 : vector<4x1xf32>
    %c0_81 = arith.constant 0 : index
    %c0_82 = arith.constant 0 : index
    %c0_83 = arith.constant 0 : index
    %179 = vector.load %arg23[%c0_81, %c0_82, %c0_83] : memref<1x4x1xf32, #tpu.memory_space<vmem>>, vector<1x4x1xf32>
    %180 = vector.shape_cast %179 : vector<1x4x1xf32> to vector<4x1xf32>
    %181 = vector.shape_cast %178 : vector<4x1xf32> to vector<1x4x1xf32>
    tpu.vector_store %arg23[%c0_81, %c0_82, %c0_83], %181 {strides = array<i32>} : memref<1x4x1xf32, #tpu.memory_space<vmem>>, vector<1x4x1xf32>,
    %c0_84 = arith.constant 0 : index
    %c0_85 = arith.constant 0 : index
    %182 = vector.load %arg18[%c0_84, %c0_85] : memref<128x1xf32, #tpu.memory_space<vmem>>, vector<128x1xf32>
    %cst_86 = arith.constant dense<0.000000e+00> : vector<4x1xf32>
    %183 = tpu.matmul %151, %182, %cst_86 {dimension_numbers = #tpu.dot_dimension_numbers<[1], [0], [0], [1], [0, 0, 1, 1], [], []>, precision = #tpu.contract_precision<fp32>} : vector<4x128xf32>, vector<128x1xf32>, vector<4x1xf32> -> vector<4x1xf32>
    %c0_87 = arith.constant 0 : index
    %c0_88 = arith.constant 0 : index
    %184 = vector.load %arg19[%c0_87, %c0_88] : memref<1x1xf32, #tpu.memory_space<vmem>>, vector<1x1xf32>
    %185 = vector.broadcast %184 : vector<1x1xf32> to vector<4x1xf32>
    %186 = arith.addf %183, %185 : vector<4x1xf32>
    %c0_89 = arith.constant 0 : index
    %c0_90 = arith.constant 0 : index
    %c0_91 = arith.constant 0 : index
    %187 = vector.load %arg22[%c0_89, %c0_90, %c0_91] : memref<1x4x1xf32, #tpu.memory_space<vmem>>, vector<1x4x1xf32>
    %188 = vector.shape_cast %187 : vector<1x4x1xf32> to vector<4x1xf32>
    %189 = vector.shape_cast %186 : vector<4x1xf32> to vector<1x4x1xf32>
    tpu.vector_store %arg22[%c0_89, %c0_90, %c0_91], %189 {strides = array<i32>} : memref<1x4x1xf32, #tpu.memory_space<vmem>>, vector<1x4x1xf32>,
    %c0_92 = arith.constant 0 : index
    %c0_93 = arith.constant 0 : index
    %190 = vector.load %arg20[%c0_92, %c0_93] : memref<128x128xf32, #tpu.memory_space<vmem>>, vector<128x128xf32>
    %cst_94 = arith.constant dense<0.000000e+00> : vector<4x128xf32>
    %191 = tpu.matmul %151, %190, %cst_94 {dimension_numbers = #tpu.dot_dimension_numbers<[1], [0], [0], [1], [0, 0, 1, 1], [], []>, precision = #tpu.contract_precision<fp32>} : vector<4x128xf32>, vector<128x128xf32>, vector<4x128xf32> -> vector<4x128xf32>
    %c0_95 = arith.constant 0 : index
    %c0_96 = arith.constant 0 : index
    %192 = vector.load %arg21[%c0_95, %c0_96] : memref<1x128xf32, #tpu.memory_space<vmem>>, vector<1x128xf32>
    %193 = vector.broadcast %192 : vector<1x128xf32> to vector<4x128xf32>
    %194 = arith.addf %191, %193 : vector<4x128xf32>
    %c0_97 = arith.constant 0 : index
    %c0_98 = arith.constant 0 : index
    %c0_99 = arith.constant 0 : index
    %195 = vector.load %arg24[%c0_97, %c0_98, %c0_99] : memref<1x4x128xf32, #tpu.memory_space<vmem>>, vector<1x4x128xf32>
    %196 = vector.shape_cast %195 : vector<1x4x128xf32> to vector<4x128xf32>
    %197 = vector.shape_cast %194 : vector<4x128xf32> to vector<1x4x128xf32>
    tpu.vector_store %arg24[%c0_97, %c0_98, %c0_99], %197 {strides = array<i32>} : memref<1x4x128xf32, #tpu.memory_space<vmem>>, vector<1x4x128xf32>,
    return
  }
  func.func @transform_0(%arg0: i32) -> (i32, i32, i32) {
    %c0_i32 = arith.constant 0 : i32
    %c0_i32_0 = arith.constant 0 : i32
    %c0_i32_1 = arith.constant 0 : i32
    return %arg0, %c0_i32, %c0_i32_0 : i32, i32, i32
  }
  func.func @transform_1(%arg0: i32) -> (i32, i32) {
    %c0_i32 = arith.constant 0 : i32
    %c0_i32_0 = arith.constant 0 : i32
    %c0_i32_1 = arith.constant 0 : i32
    return %c0_i32, %c0_i32_0 : i32, i32
  }
  func.func @transform_2(%arg0: i32) -> (i32, i32) {
    %c0_i32 = arith.constant 0 : i32
    %c0_i32_0 = arith.constant 0 : i32
    %c0_i32_1 = arith.constant 0 : i32
    return %c0_i32, %c0_i32_0 : i32, i32
  }
  func.func @transform_3(%arg0: i32) -> (i32, i32) {
    %c0_i32 = arith.constant 0 : i32
    %c0_i32_0 = arith.constant 0 : i32
    %c0_i32_1 = arith.constant 0 : i32
    return %c0_i32, %c0_i32_0 : i32, i32
  }
  func.func @transform_4(%arg0: i32) -> (i32, i32) {
    %c0_i32 = arith.constant 0 : i32
    %c0_i32_0 = arith.constant 0 : i32
    %c0_i32_1 = arith.constant 0 : i32
    return %c0_i32, %c0_i32_0 : i32, i32
  }
  func.func @transform_5(%arg0: i32) -> (i32, i32) {
    %c0_i32 = arith.constant 0 : i32
    %c0_i32_0 = arith.constant 0 : i32
    %c0_i32_1 = arith.constant 0 : i32
    return %c0_i32, %c0_i32_0 : i32, i32
  }
  func.func @transform_6(%arg0: i32) -> (i32, i32) {
    %c0_i32 = arith.constant 0 : i32
    %c0_i32_0 = arith.constant 0 : i32
    %c0_i32_1 = arith.constant 0 : i32
    return %c0_i32, %c0_i32_0 : i32, i32
  }
  func.func @transform_7(%arg0: i32) -> (i32, i32) {
    %c0_i32 = arith.constant 0 : i32
    %c0_i32_0 = arith.constant 0 : i32
    %c0_i32_1 = arith.constant 0 : i32
    return %c0_i32, %c0_i32_0 : i32, i32
  }
  func.func @transform_8(%arg0: i32) -> (i32, i32) {
    %c0_i32 = arith.constant 0 : i32
    %c0_i32_0 = arith.constant 0 : i32
    %c0_i32_1 = arith.constant 0 : i32
    return %c0_i32, %c0_i32_0 : i32, i32
  }
  func.func @transform_9(%arg0: i32) -> (i32, i32) {
    %c0_i32 = arith.constant 0 : i32
    %c0_i32_0 = arith.constant 0 : i32
    %c0_i32_1 = arith.constant 0 : i32
    return %c0_i32, %c0_i32_0 : i32, i32
  }
  func.func @transform_10(%arg0: i32) -> (i32, i32) {
    %c0_i32 = arith.constant 0 : i32
    %c0_i32_0 = arith.constant 0 : i32
    %c0_i32_1 = arith.constant 0 : i32
    return %c0_i32, %c0_i32_0 : i32, i32
  }
  func.func @transform_11(%arg0: i32) -> (i32, i32) {
    %c0_i32 = arith.constant 0 : i32
    %c0_i32_0 = arith.constant 0 : i32
    %c0_i32_1 = arith.constant 0 : i32
    return %c0_i32, %c0_i32_0 : i32, i32
  }
  func.func @transform_12(%arg0: i32) -> (i32, i32) {
    %c0_i32 = arith.constant 0 : i32
    %c0_i32_0 = arith.constant 0 : i32
    %c0_i32_1 = arith.constant 0 : i32
    return %c0_i32, %c0_i32_0 : i32, i32
  }
  func.func @transform_13(%arg0: i32) -> (i32, i32) {
    %c0_i32 = arith.constant 0 : i32
    %c0_i32_0 = arith.constant 0 : i32
    %c0_i32_1 = arith.constant 0 : i32
    return %c0_i32, %c0_i32_0 : i32, i32
  }
  func.func @transform_14(%arg0: i32) -> (i32, i32) {
    %c0_i32 = arith.constant 0 : i32
    %c0_i32_0 = arith.constant 0 : i32
    %c0_i32_1 = arith.constant 0 : i32
    return %c0_i32, %c0_i32_0 : i32, i32
  }
  func.func @transform_15(%arg0: i32) -> (i32, i32) {
    %c0_i32 = arith.constant 0 : i32
    %c0_i32_0 = arith.constant 0 : i32
    %c0_i32_1 = arith.constant 0 : i32
    return %c0_i32, %c0_i32_0 : i32, i32
  }
  func.func @transform_16(%arg0: i32) -> (i32, i32) {
    %c0_i32 = arith.constant 0 : i32
    %c0_i32_0 = arith.constant 0 : i32
    %c0_i32_1 = arith.constant 0 : i32
    return %c0_i32, %c0_i32_0 : i32, i32
  }
  func.func @transform_17(%arg0: i32) -> (i32, i32) {
    %c0_i32 = arith.constant 0 : i32
    %c0_i32_0 = arith.constant 0 : i32
    %c0_i32_1 = arith.constant 0 : i32
    return %c0_i32, %c0_i32_0 : i32, i32
  }
  func.func @transform_18(%arg0: i32) -> (i32, i32) {
    %c0_i32 = arith.constant 0 : i32
    %c0_i32_0 = arith.constant 0 : i32
    %c0_i32_1 = arith.constant 0 : i32
    return %c0_i32, %c0_i32_0 : i32, i32
  }
  func.func @transform_19(%arg0: i32) -> (i32, i32) {
    %c0_i32 = arith.constant 0 : i32
    %c0_i32_0 = arith.constant 0 : i32
    %c0_i32_1 = arith.constant 0 : i32
    return %c0_i32, %c0_i32_0 : i32, i32
  }
  func.func @transform_20(%arg0: i32) -> (i32, i32) {
    %c0_i32 = arith.constant 0 : i32
    %c0_i32_0 = arith.constant 0 : i32
    %c0_i32_1 = arith.constant 0 : i32
    return %c0_i32, %c0_i32_0 : i32, i32
  }
  func.func @transform_21(%arg0: i32) -> (i32, i32, i32) {
    %c0_i32 = arith.constant 0 : i32
    %c0_i32_0 = arith.constant 0 : i32
    %c0_i32_1 = arith.constant 0 : i32
    return %arg0, %c0_i32, %c0_i32_0 : i32, i32, i32
  }
  func.func @transform_22(%arg0: i32) -> (i32, i32, i32) {
    %c0_i32 = arith.constant 0 : i32
    %c0_i32_0 = arith.constant 0 : i32
    %c0_i32_1 = arith.constant 0 : i32
    return %arg0, %c0_i32, %c0_i32_0 : i32, i32, i32
  }
  func.func @transform_23(%arg0: i32) -> (i32, i32, i32) {
    %c0_i32 = arith.constant 0 : i32
    %c0_i32_0 = arith.constant 0 : i32
    %c0_i32_1 = arith.constant 0 : i32
    return %arg0, %c0_i32, %c0_i32_0 : i32, i32, i32
  }
}

</mosaic_0001>

<bundles_post_ra>
// kernel: vad_model_forward.1
= control target key start
LH: loop header
LB: loop body
LE: loop exit
PB: predicated region body
PF: predicated region fallthrough
CT: control target
= control target key end

     0   :  { %s17090_s0 = inlined_call_operand.vmem [shape: f32[1,32,128], index: 0, kind: input, shape index: {}]   ;;  %s17091_s1 = inlined_call_operand.vmem [shape: f32[128,256], index: 1, kind: input, shape index: {}]   ;;  %s17092_s2 = inlined_call_operand.vmem [shape: f32[1,256], index: 2, kind: input, shape index: {}]   ;;  %s17093_s3 = inlined_call_operand.vmem [shape: f32[4,128], index: 3, kind: input, shape index: {}]   ;;  %s17094_s4 = inlined_call_operand.vmem [shape: f32[1,128], index: 4, kind: input, shape index: {}]   ;;  %s17095_s5 = inlined_call_operand.vmem [shape: f32[128,32], index: 5, kind: input, shape index: {}]   ;;  %s17096_s6 = inlined_call_operand.vmem [shape: f32[1,32], index: 6, kind: input, shape index: {}]   ;;  %s17097_s7 = inlined_call_operand.hbm [shape: f32[32,32], index: 7, kind: input, shape index: {}]   ;;  %s17098_s8 = inlined_call_operand.vmem [shape: f32[1,32], index: 8, kind: input, shape index: {}]   ;;  %s17099_s9 = inlined_call_operand.vmem [shape: f32[1,32], index: 9, kind: input, shape index: {}]   ;;  %s17100_s10 = inlined_call_operand.vmem [shape: f32[1,128], index: 10, kind: input, shape index: {}]   ;;  %s17101_s11 = inlined_call_operand.vmem [shape: f32[128,128], index: 11, kind: input, shape index: {}]   ;;  %s17102_s12 = inlined_call_operand.vmem [shape: f32[1,128], index: 12, kind: input, shape index: {}]   ;;  %s17103_s13 = inlined_call_operand.hbm [shape: f32[128,128], index: 13, kind: input, shape index: {}]   ;;  %s17104_s14 = inlined_call_operand.hbm [shape: f32[128,128], index: 14, kind: input, shape index: {}]   ;;  %s17105_s15 = inlined_call_operand.vmem [shape: f32[1,128], index: 15, kind: input, shape index: {}]   ;;  %s17106_s16 = inlined_call_operand.vmem [shape: f32[1,128], index: 16, kind: input, shape index: {}]   ;;  %s17107_s17 = inlined_call_operand.vmem [shape: f32[128,1], index: 17, kind: input, shape index: {}]   ;;  %s17108_s18 = inlined_call_operand.<no memory space> [shape: f32[1,1], index: 18, kind: input, shape index: {}]   ;;  %s17109_s19 = inlined_call_operand.hbm [shape: f32[128,128], index: 19, kind: input, shape index: {}]   ;;  %s17110_s20 = inlined_call_operand.vmem [shape: f32[1,128], index: 20, kind: input, shape index: {}]   ;;  %s17111_s21 = inlined_call_operand.vmem [shape: f32[1,4,1], index: 21, kind: output, shape index: {0}]   ;;  %s17112_s22 = inlined_call_operand.vmem [shape: f32[1,4,1], index: 22, kind: output, shape index: {1}]   ;;  %s17113_s23 = inlined_call_operand.hbm [shape: f32[1,4,128], index: 23, kind: output, shape index: {2}]  }
   0x1   :  { %17318 = sst [smem:[#allocation40_spill]] %s17090_s0  ;;  %v29_v0 = vstv %s17108_s18 }
   0x2   :  { %17319 = sst [smem:[#allocation41_spill]] %s17091_s1  ;;  %30 = vst [vmem:[#allocation3] sm:$0x1] %v29_v0 }
   0x3   :  { %17320 = sst [smem:[#allocation42_spill]] %s17092_s2 }
   0x4   :  { %17321 = sst [smem:[#allocation43_spill]] %s17093_s3 }
   0x5   :  { %17322 = sst [smem:[#allocation44_spill]] %s17094_s4 }
   0x6   :  { %17323 = sst [smem:[#allocation45_spill]] %s17095_s5 }
   0x7   :  { %17324 = sst [smem:[#allocation46_spill]] %s17096_s6 }
   0x8   :  { %17325 = sst [smem:[#allocation47_spill]] %s17097_s7 }
   0x9   :  { %31 = vsyncpa [#allocation5], 0 }
   0xa   :  { %32 = vsyncpa [#allocation8], 0 }
   0xb   :  { %33 = vsyncpa [#allocation11], 0 }
   0xc   :  { %34 = vsyncpa [#allocation6], 0  ;;  %s13902_s24 = smov [#allocation7]   ;;  %s13903_s5 = smov [#allocation4]  }
   0xd   :  { %s76_s25 = sshll.u32 %s13902_s24, 4  ;;  %s54_s1 = sshll.u32 %s13903_s5, 4  ;;  %s77_s25 = int_to_ptr.vmem [resolvable:$true] %s76_s25  ;;  %s14035_s1 = int_to_ptr.vmem [resolvable:$true] %s54_s1 }
   0xe   :  { %s13784_s6 = scalar_lea.hbm %s17103_s13, 2048 }
   0xf   :  { %p13785_p0 = scmp.ne.s32.totalorder %s17103_s13, %s13784_s6  ;;  %p13788_p1 = scmp.lt.u32.totalorder %s13784_s6, %s17103_s13 }
  0x11   :  { %p13790_p2 = pnand %p13788_p1, %p13785_p0 }
  0x13   :  { %13793 = shalt.err (!%p13790_p2)
}
  0x14   :  { %s13794_s29 = scalar_lea.vmem %s77_s25, 2048  ;;  %p13799_p4 = scmp.lt.s32.totalorder %s77_s25, %s77_s25 }
  0x15   :  { %p13795_p3 = scmp.ne.s32.totalorder %s77_s25, %s13794_s29  ;;  %p13800_p5 = scmp.lt.s32.totalorder %s13794_s29, %s13794_s29 }
  0x17   :  { %p13801_p6 = por %p13800_p5, %p13799_p4 }
  0x19   :  { %p13802_p7 = pnand %p13801_p6, %p13795_p3 }
  0x1b   :  { %13805 = shalt.err (!%p13802_p7)
}
  0x1c   :  { %s13904_s3 = smov 128   ;;  %s13905_s0 = smov 8  }
  0x1d   :  { %82 = dma.hbm_to_vmem [thread:$0]  %s17103_s13, 2048, %s77_s25, [#allocation8], %s13904_s3, %s13904_s3, %s13905_s0  }
  0x1e   :  { %s17326_s26 = sld [smem:[#allocation47_spill]] }
  0x24   :  { %s13806_s2 = scalar_lea.hbm %s17326_s26, 512 }
  0x25   :  { %p13807_p8 = scmp.ne.s32.totalorder %s17326_s26, %s13806_s2  ;;  %p13810_p9 = scmp.lt.u32.totalorder %s13806_s2, %s17326_s26 }
  0x27   :  { %p13812_p10 = pnand %p13810_p9, %p13807_p8 }
  0x29   :  { %13815 = shalt.err (!%p13812_p10)
}
  0x2a   :  { %s13816_s28 = scalar_lea.vmem %s14035_s1, 512  ;;  %p13821_p12 = scmp.lt.s32.totalorder %s14035_s1, %s14035_s1 }
  0x2b   :  { %p13817_p11 = scmp.ne.s32.totalorder %s14035_s1, %s13816_s28  ;;  %p13822_p13 = scmp.lt.s32.totalorder %s13816_s28, %s13816_s28 }
  0x2d   :  { %p13823_p0 = por %p13822_p13, %p13821_p12 }
  0x2f   :  { %p13824_p1 = pnand %p13823_p0, %p13817_p11 }
  0x31   :  { %13827 = shalt.err (!%p13824_p1)
}
  0x32   :  { %60 = dma.hbm_to_vmem [thread:$0]  %s17326_s26, 512, %s14035_s1, [#allocation5], %s13904_s3, %s13904_s3, %s13905_s0  }
  0x33   :  { %s13906_s29 = smov [#allocation9]   ;;  %s13907_s30 = smov [#allocation10]  }
  0x34   :  { %s88_s4 = sshll.u32 %s13906_s29, 4  ;;  %s108_s24 = sshll.u32 %s13907_s30, 4  ;;  %s89_s4 = int_to_ptr.vmem [resolvable:$true] %s88_s4  ;;  %s14072_s24 = int_to_ptr.vmem [resolvable:$true] %s108_s24 }
  0x35   :  { %s13828_s6 = scalar_lea.hbm %s17104_s14, 2048 }
  0x36   :  { %p13829_p2 = scmp.ne.s32.totalorder %s17104_s14, %s13828_s6  ;;  %p13832_p3 = scmp.lt.u32.totalorder %s13828_s6, %s17104_s14 }
  0x38   :  { %p13834_p4 = pnand %p13832_p3, %p13829_p2 }
  0x3a   :  { %13837 = shalt.err (!%p13834_p4)
}
  0x3b   :  { %s13838_s1 = scalar_lea.vmem %s89_s4, 2048  ;;  %p13843_p6 = scmp.lt.s32.totalorder %s89_s4, %s89_s4 }
  0x3c   :  { %p13839_p5 = scmp.ne.s32.totalorder %s89_s4, %s13838_s1  ;;  %p13844_p7 = scmp.lt.s32.totalorder %s13838_s1, %s13838_s1 }
  0x3e   :  { %p13845_p8 = por %p13844_p7, %p13843_p6 }
  0x40   :  { %p13846_p9 = pnand %p13845_p8, %p13839_p5 }
  0x42   :  { %13849 = shalt.err (!%p13846_p9)
}
  0x43   :  { %94 = dma.hbm_to_vmem [thread:$0]  %s17104_s14, 2048, %s89_s4, [#allocation8], %s13904_s3, %s13904_s3, %s13905_s0  }
  0x44   :  { %s13850_s30 = scalar_lea.hbm %s17109_s19, 2048 }
  0x45   :  { %p13851_p10 = scmp.ne.s32.totalorder %s17109_s19, %s13850_s30  ;;  %p13854_p11 = scmp.lt.u32.totalorder %s13850_s30, %s17109_s19 }
  0x47   :  { %p13856_p12 = pnand %p13854_p11, %p13851_p10 }
  0x49   :  { %13859 = shalt.err (!%p13856_p12)
}
  0x4a   :  { %s13860_s7 = scalar_lea.vmem %s14072_s24, 2048  ;;  %p13865_p0 = scmp.lt.s32.totalorder %s14072_s24, %s14072_s24 }
  0x4b   :  { %p13861_p13 = scmp.ne.s32.totalorder %s14072_s24, %s13860_s7  ;;  %p13866_p1 = scmp.lt.s32.totalorder %s13860_s7, %s13860_s7 }
  0x4d   :  { %p13867_p2 = por %p13866_p1, %p13865_p0 }
  0x4f   :  { %p13868_p3 = pnand %p13867_p2, %p13861_p13 }
  0x51   :  { %13871 = shalt.err (!%p13868_p3)
}
  0x52   :  { %114 = dma.hbm_to_vmem [thread:$0]  %s17109_s19, 2048, %s14072_s24, [#allocation11], %s13904_s3, %s13904_s3, %s13905_s0  }
  0x53   :  { %13894 = dma.done.wait [#allocation5], 512  }
  0x54   :  { %13895 = vsyncadd [#allocation5], 4294966784 }
  0x55   :  { %13896 = dma.done.wait [#allocation8], 4096  }
  0x56   :  { %13897 = vsyncadd [#allocation8], 4294963200 }
  0x57   :  { %13898 = dma.done.wait [#allocation11], 2048  }
  0x58   :  { %13899 = vsyncadd [#allocation11], 4294965248  ;;  %v17118_v1 = vmov 0.0   ;;  %s17327_s1 = sld [smem:[#allocation41_spill]]  ;;  %s17343_s2 = sld [smem:[#allocation40_spill]]  ;;  %vm2100_vm0 = vcmask 261120  }
  0x59   :  { %273 = vmatprep.mubr.f32.mxu1 %v17118_v1  ;;  %819 = vmatprep.mubr.f32.mxu0 %v17118_v1  ;;  %s17372_s26 = sld [smem:[#allocation45_spill]]  ;;  %vm13910_vm1 = vmmov 0   ;;  %s17394_s7 = sld [smem:[#allocation42_spill]]  ;;  %vm6063_vm5 = vcmask 257024   ;;  %vm6755_vm6 = vcmask 1043456   ;;  %vm8105_vm8 = vcmask 3072  }
  0x5a   :  { %s17396_s18 = sld [smem:[#allocation43_spill]]  ;;  %s17401_s19 = sld [smem:[#allocation44_spill]] }
  0x5b   :  { %s17435_s24 = sld [smem:[#allocation46_spill]] }
  0x5e   :  { %v134_v2 = vld [vmem:[%s17327_s1 + $0x8] sm:$0xff]  ;;  %v136_v3 = vld [vmem:[%s17327_s1 + $0x18] sm:$0xff]  ;;  %v133_v4 = vld [vmem:[%s17327_s1] sm:$0xff] }
  0x5f   :  { %v177_v5 = vand.u32 4294901760, %v134_v2  ;;  %v181_v6 = vand.u32 4294901760, %v136_v3  ;;  %v135_v7 = vld [vmem:[%s17327_s1 + $0x10] sm:$0xff]  ;;  %v179_v8 = vand.u32 4294901760, %v133_v4  ;;  %v138_v9 = vld [vmem:[%s17327_s1 + $0x28] sm:$0xff]  ;;  %v140_v10 = vld [vmem:[%s17327_s1 + $0x38] sm:$0xff] }
  0x60   :  { %v183_v11 = vand.u32 4294901760, %v135_v7  ;;  %v185_v12 = vand.u32 4294901760, %v138_v9  ;;  %v189_v13 = vand.u32 4294901760, %v140_v10  ;;  %v137_v14 = vld [vmem:[%s17327_s1 + $0x20] sm:$0xff]  ;;  %v139_v15 = vld [vmem:[%s17327_s1 + $0x30] sm:$0xff]  ;;  %v142_v16 = vld [vmem:[%s17327_s1 + $0x48] sm:$0xff] }
  0x61   :  { %v14138_v17 = vpack.c.bf16 %v181_v6, %v177_v5  ;;  %v14140_v18 = vsub.f32 %v134_v2, %v177_v5  ;;  %v14142_v19 = vsub.f32 %v136_v3, %v181_v6  ;;  %v144_v20 = vld [vmem:[%s17327_s1 + $0x58] sm:$0xff]  ;;  %v141_v21 = vld [vmem:[%s17327_s1 + $0x40] sm:$0xff]  ;;  %v143_v22 = vld [vmem:[%s17327_s1 + $0x50] sm:$0xff]  ;;  %v14155_v24 = vsub.f32 %v133_v4, %v179_v8 }
  0x62   :  { %v14153_v23 = vpack.c.bf16 %v183_v11, %v179_v8  ;;  %v14157_v25 = vsub.f32 %v135_v7, %v183_v11  ;;  %v14159_v26 = vpack.c.bf16 %v189_v13, %v185_v12  ;;  %v146_v27 = vld [vmem:[%s17327_s1 + $0x68] sm:$0xff]  ;;  %v148_v28 = vld [vmem:[%s17327_s1 + $0x78] sm:$0xff]  ;;  %v14169_v29 = vsub.f32 %v138_v9, %v185_v12  ;;  %v145_v41 = vld [vmem:[%s17327_s1 + $0x60] sm:$0xff] }
  0x63   :  { %12154 = vmatprep.subr.bf16.mxu1 %v14138_v17  ;;  %12250 = vmatprep.subr.bf16.mxu0 %v14138_v17  ;;  %v187_v30 = vand.u32 4294901760, %v137_v14  ;;  %v191_v31 = vand.u32 4294901760, %v139_v15  ;;  %v193_v32 = vand.u32 4294901760, %v142_v16  ;;  %v197_v33 = vand.u32 4294901760, %v144_v20  ;;  %v147_v42 = vld [vmem:[%s17327_s1 + $0x70] sm:$0xff]  ;;  %v150_v43 = vld [vmem:[%s17327_s1 + $0x88] sm:$0xff] }
  0x64   :  { %17328 = vst [vmem:[#allocation17_spill] sm:$0xff] %v14159_v26  ;;  %12156 = vmatpush1.bf16.msra.mxu1 %v14153_v23  ;;  %12252 = vmatpush1.bf16.msra.mxu0 %v14153_v23  ;;  %v195_v34 = vand.u32 4294901760, %v141_v21  ;;  %v199_v35 = vand.u32 4294901760, %v143_v22  ;;  %v201_v36 = vand.u32 4294901760, %v146_v27  ;;  %v14174_v37 = vsub.f32 %v140_v10, %v189_v13  ;;  %v152_v48 = vld [vmem:[%s17327_s1 + $0x98] sm:$0xff]  ;;  %v149_v49 = vld [vmem:[%s17327_s1 + $0x80] sm:$0xff] }
  0x65   :  { %12158 = vmatprep.subr.bf16.mxu1 %v14159_v26  ;;  %12254 = vmatprep.subr.bf16.mxu0 %v14159_v26  ;;  %v14177_v38 = vpack.c.bf16 %v191_v31, %v187_v30  ;;  %v14179_v39 = vsub.f32 %v137_v14, %v187_v30  ;;  %v205_v40 = vand.u32 4294901760, %v148_v28  ;;  %v14190_v44 = vsub.f32 %v139_v15, %v191_v31  ;;  %v151_v50 = vld [vmem:[%s17327_s1 + $0x90] sm:$0xff]  ;;  %v154_v55 = vld [vmem:[%s17327_s1 + $0xa8] sm:$0xff]  ;;  %v156_v0 = vld [vmem:[%s17327_s1 + $0xb8] sm:$0xff] }
  0x66   :  { %v14192_v45 = vpack.c.bf16 %v197_v33, %v193_v32  ;;  %v14194_v46 = vsub.f32 %v142_v16, %v193_v32  ;;  %v14196_v47 = vsub.f32 %v144_v20, %v197_v33  ;;  %v14207_v51 = vpack.c.bf16 %v199_v35, %v195_v34  ;;  %v153_v2 = vld [vmem:[%s17327_s1 + $0xa0] sm:$0xff]  ;;  %v155_v3 = vld [vmem:[%s17327_s1 + $0xb0] sm:$0xff]  ;;  %v158_v8 = vld [vmem:[%s17327_s1 + $0xc8] sm:$0xff] }
  0x67   :  { %17329 = vst [vmem:[#allocation18_spill] sm:$0xff] %v14177_v38  ;;  %17330 = vst [vmem:[#allocation19_spill] sm:$0xff] %v14190_v44  ;;  %v14209_v52 = vsub.f32 %v141_v21, %v195_v34  ;;  %v14211_v53 = vsub.f32 %v143_v22, %v199_v35  ;;  %v14213_v54 = vpack.c.bf16 %v205_v40, %v201_v36  ;;  %v203_v57 = vand.u32 4294901760, %v145_v41  ;;  %v160_v9 = vld [vmem:[%s17327_s1 + $0xd8] sm:$0xff]  ;;  %v157_v10 = vld [vmem:[%s17327_s1 + $0xc0] sm:$0xff] }
  0x68   :  { %17331 = vst [vmem:[#allocation20_spill] sm:$0xff] %v14192_v45  ;;  %17332 = vst [vmem:[#allocation21_spill] sm:$0xff] %v14207_v51  ;;  %12160 = vmatpush1.bf16.msra.mxu1 %v14177_v38  ;;  %12256 = vmatpush1.bf16.msra.mxu0 %v14177_v38  ;;  %v14220_v56 = vsub.f32 %v146_v27, %v201_v36  ;;  %v207_v58 = vand.u32 4294901760, %v147_v42  ;;  %v209_v59 = vand.u32 4294901760, %v150_v43  ;;  %v213_v61 = vand.u32 4294901760, %v152_v48  ;;  %v159_v15 = vld [vmem:[%s17327_s1 + $0xd0] sm:$0xff] }
  0x69   :  { %17333 = vst [vmem:[#allocation22_spill] sm:$0xff] %v14209_v52  ;;  %17334 = vst [vmem:[#allocation23_spill] sm:$0xff] %v14211_v53  ;;  %12162 = vmatprep.subr.bf16.mxu1 %v14192_v45  ;;  %12258 = vmatprep.subr.bf16.mxu0 %v14192_v45  ;;  %v14224_v60 = vsub.f32 %v148_v28, %v205_v40  ;;  %v211_v62 = vand.u32 4294901760, %v149_v49  ;;  %v215_v63 = vand.u32 4294901760, %v151_v50  ;;  %v217_v7 = vand.u32 4294901760, %v154_v55  ;;  %v162_v32 = vld [vmem:[%s17327_s1 + $0xe8] sm:$0xff] }
  0x6a   :  { %17335 = vst [vmem:[#allocation24_spill] sm:$0xff] %v14213_v54  ;;  %v14235_v4 = vpack.c.bf16 %v207_v58, %v203_v57  ;;  %v14237_v5 = vsub.f32 %v145_v41, %v203_v57  ;;  %v14239_v6 = vsub.f32 %v147_v42, %v207_v58  ;;  %v14250_v11 = vpack.c.bf16 %v213_v61, %v209_v59  ;;  %v164_v40 = vld [vmem:[%s17327_s1 + $0xf8] sm:$0xff]  ;;  %v161_v41 = vld [vmem:[%s17327_s1 + $0xe0] sm:$0xff]  ;;  %v163_v42 = vld [vmem:[%s17327_s1 + $0xf0] sm:$0xff] }
  0x6b   :  { %v14252_v12 = vsub.f32 %v150_v43, %v209_v59  ;;  %v14254_v13 = vsub.f32 %v152_v48, %v213_v61  ;;  %v14256_v14 = vpack.c.bf16 %v215_v63, %v211_v62  ;;  %v14263_v16 = vsub.f32 %v149_v49, %v211_v62 }
  0x6c   :  { %17336 = vst [vmem:[#allocation25_spill] sm:$0xff] %v14235_v4  ;;  %17337 = vst [vmem:[#allocation26_spill] sm:$0xff] %v14250_v11  ;;  %12164 = vmatpush1.bf16.msra.mxu1 %v14207_v51  ;;  %12260 = vmatpush1.bf16.msra.mxu0 %v14207_v51  ;;  %v14265_v20 = vsub.f32 %v151_v50, %v215_v63  ;;  %v221_v21 = vand.u32 4294901760, %v156_v0  ;;  %v219_v22 = vand.u32 4294901760, %v153_v2  ;;  %v223_v27 = vand.u32 4294901760, %v155_v3 }
  0x6d   :  { %17338 = vst [vmem:[#allocation27_spill] sm:$0xff] %v14256_v14  ;;  %12166 = vmatprep.subr.bf16.mxu1 %v14213_v54  ;;  %12262 = vmatprep.subr.bf16.mxu0 %v14213_v54  ;;  %v225_v28 = vand.u32 4294901760, %v158_v8  ;;  %v229_v30 = vand.u32 4294901760, %v160_v9  ;;  %v227_v31 = vand.u32 4294901760, %v157_v10  ;;  %v14274_v34 = vsub.f32 %v154_v55, %v217_v7  ;;  %v129_v55 = vld [vmem:[%s17343_s2] sm:$0xff] }
  0x6e   :  { %v14272_v33 = vpack.c.bf16 %v221_v21, %v217_v7  ;;  %v14276_v35 = vsub.f32 %v156_v0, %v221_v21  ;;  %v231_v36 = vand.u32 4294901760, %v159_v15  ;;  %v14287_v43 = vpack.c.bf16 %v223_v27, %v219_v22 }
  0x6f   :  { %17340 = vst [vmem:[#allocation29_spill] sm:$0xff] %v14274_v34  ;;  %v14289_v48 = vsub.f32 %v153_v2, %v219_v22  ;;  %v14291_v49 = vsub.f32 %v155_v3, %v223_v27  ;;  %v14293_v50 = vpack.c.bf16 %v229_v30, %v225_v28  ;;  %v14300_v57 = vsub.f32 %v158_v8, %v225_v28 }
  0x70   :  { %17339 = vst [vmem:[#allocation28_spill] sm:$0xff] %v14272_v33  ;;  %17341 = vst [vmem:[#allocation30_spill] sm:$0xff] %v14287_v43  ;;  %12168 = vmatpush1.bf16.msra.mxu1 %v14235_v4  ;;  %12264 = vmatpush1.bf16.msra.mxu0 %v14235_v4  ;;  %v14302_v58 = vsub.f32 %v160_v9, %v229_v30  ;;  %v14304_v59 = vpack.c.bf16 %v231_v36, %v227_v31  ;;  %v233_v61 = vand.u32 4294901760, %v162_v32 }
  0x71   :  { %17342 = vst [vmem:[#allocation31_spill] sm:$0xff] %v14293_v50  ;;  %12170 = vmatprep.subr.bf16.mxu1 %v14250_v11  ;;  %12266 = vmatprep.subr.bf16.mxu0 %v14250_v11  ;;  %v14308_v62 = vsub.f32 %v157_v10, %v227_v31  ;;  %v237_v63 = vand.u32 4294901760, %v164_v40  ;;  %v235_v0 = vand.u32 4294901760, %v161_v41  ;;  %v239_v2 = vand.u32 4294901760, %v163_v42 }
  0x72   :  { %17344 = vst [vmem:[#allocation32_spill] sm:$0xff] %v14304_v59  ;;  %v14310_v3 = vsub.f32 %v159_v15, %v231_v36  ;;  %v317_v7 = vand.u32 4294901760, %v14140_v18  ;;  %v329_v8 = vand.u32 4294901760, %v14142_v19  ;;  %v14314_v9 = vand.u32 4294901760, %v129_v55 }
  0x73   :  { %v14316_v21 = vpack.c.bf16 %v237_v63, %v233_v61  ;;  %v14318_v22 = vsub.f32 %v162_v32, %v233_v61  ;;  %v14320_v27 = vsub.f32 %v164_v40, %v237_v63  ;;  %v14322_v28 = vpack.c.bf16 %v239_v2, %v235_v0 }
  0x74   :  { %12172 = vmatpush1.bf16.msra.mxu1 %v14256_v14  ;;  %12268 = vmatpush1.bf16.msra.mxu0 %v14256_v14  ;;  %v14326_v10 = vsub.f32 %v161_v41, %v235_v0  ;;  %v318_v15 = vsub.f32 %v14140_v18, %v317_v7  ;;  %v330_v30 = vsub.f32 %v14142_v19, %v329_v8  ;;  %v323_v31 = vand.u32 4294901760, %v14155_v24 }
  0x75   :  { %17345 = vst [vmem:[#allocation33_spill] sm:$0xff] %v14316_v21  ;;  %17346 = vst [vmem:[#allocation34_spill] sm:$0xff] %v14322_v28  ;;  %12174 = vmatprep.subr.bf16.mxu1 %v14272_v33  ;;  %12270 = vmatprep.subr.bf16.mxu0 %v14272_v33  ;;  %v14333_v32 = vsub.f32 %v163_v42, %v239_v2  ;;  %v14336_v36 = vsub.f32 %v129_v55, %v14314_v9  ;;  %v335_v40 = vand.u32 4294901760, %v14157_v25 }
  0x76   :  { %v341_v41 = vand.u32 4294901760, %v14169_v29  ;;  %v319_v61 = vand.u32 4294901760, %v318_v15  ;;  %v331_v63 = vand.u32 4294901760, %v330_v30  ;;  %v324_v0 = vsub.f32 %v14155_v24, %v323_v31 }
  0x77   :  { %17347 = vst [vmem:[#allocation35_spill] sm:$0xff] %v14336_v36  ;;  %v353_v1 = vand.u32 4294901760, %v14174_v37  ;;  %v12281_v14 = vpack.c.bf16 %v329_v8, %v317_v7  ;;  %v276_v11 = vand.u32 4294901760, %v14336_v36  ;;  %v336_v33 = vsub.f32 %v14157_v25, %v335_v40 }
  0x78   :  { %v342_v42 = vsub.f32 %v14169_v29, %v341_v41  ;;  %12176 = vmatpush1.bf16.msra.mxu1 %v14287_v43  ;;  %12272 = vmatpush1.bf16.msra.mxu0 %v14287_v43  ;;  %v12185_v55 = vpack.c.bf16 %v331_v63, %v319_v61  ;;  %v325_v2 = vand.u32 4294901760, %v324_v0  ;;  %v12283_v4 = vpack.c.bf16 %v335_v40, %v323_v31 }
  0x79   :  { %v354_v15 = vsub.f32 %v14174_v37, %v353_v1  ;;  %12178 = vmatprep.subr.bf16.mxu1 %v14293_v50  ;;  %12274 = vmatprep.subr.bf16.mxu0 %v14293_v50  ;;  %v277_v7 = vsub.f32 %v14336_v36, %v276_v11  ;;  %v337_v8 = vand.u32 4294901760, %v336_v33  ;;  %v347_v54 = vand.u32 4294901760, %v14179_v39 }
  0x7a   :  { %v343_v30 = vand.u32 4294901760, %v342_v42  ;;  %v359_v45 = vand.u32 4294901760, %v14190_v44  ;;  %v365_v43 = vand.u32 4294901760, %v14194_v46  ;;  %v377_v61 = vand.u32 4294901760, %v14196_v47 }
  0x7b   :  { %v355_v51 = vand.u32 4294901760, %v354_v15  ;;  %v278_v31 = vand.u32 4294901760, %v277_v7  ;;  %v12285_v40 = vpack.c.bf16 %v353_v1, %v341_v41  ;;  %v348_v63 = vsub.f32 %v14179_v39, %v347_v54 }
  0x7c   :  { %v371_v0 = vand.u32 4294901760, %v14209_v52  ;;  %12180 = vmatpush1.bf16.msra.mxu1 %v14304_v59  ;;  %12276 = vmatpush1.bf16.msra.mxu0 %v14304_v59  ;;  %v12187_v33 = vpack.c.bf16 %v337_v8, %v325_v2  ;;  %v360_v15 = vsub.f32 %v14190_v44, %v359_v45  ;;  %v383_v36 = vand.u32 4294901760, %v14211_v53 }
  0x7d   :  { %v12189_v42 = vpack.c.bf16 %v355_v51, %v343_v30  ;;  %12182 = vmatprep.subr.bf16.mxu1 %v14316_v21  ;;  %12278 = vmatprep.subr.bf16.mxu0 %v14316_v21  ;;  %v349_v7 = vand.u32 4294901760, %v348_v63  ;;  %v12287_v1 = vpack.c.bf16 %v359_v45, %v347_v54  ;;  %v366_v41 = vsub.f32 %v14194_v46, %v365_v43 }
  0x7e   :  { %v378_v50 = vsub.f32 %v14196_v47, %v377_v61  ;;  %v361_v38 = vand.u32 4294901760, %v360_v15  ;;  %v12289_v26 = vpack.c.bf16 %v377_v61, %v365_v43  ;;  %v372_v59 = vsub.f32 %v14209_v52, %v371_v0 }
  0x7f   :  { %v384_v51 = vsub.f32 %v14211_v53, %v383_v36  ;;  %v367_v2 = vand.u32 4294901760, %v366_v41  ;;  %v389_v30 = vand.u32 4294901760, %v14220_v56  ;;  %v401_v44 = vand.u32 4294901760, %v14224_v60 }
  0x80   :  { %v379_v8 = vand.u32 4294901760, %v378_v50  ;;  %12184 = vmatpush1.bf16.msra.mxu1 %v14322_v28  ;;  %12280 = vmatpush1.bf16.msra.mxu0 %v14322_v28  ;;  %v373_v45 = vand.u32 4294901760, %v372_v59  ;;  %v12291_v63 = vpack.c.bf16 %v383_v36, %v371_v0  ;;  %v395_v15 = vand.u32 4294901760, %v14237_v5 }
  0x81   :  { %v385_v54 = vand.u32 4294901760, %v384_v51  ;;  %12186 = vmatprep.subr.bf16.mxu1 %v12185_v55  ;;  %12282 = vmatprep.subr.bf16.mxu0 %v12281_v14  ;;  %v12191_v43 = vpack.c.bf16 %v361_v38, %v349_v7  ;;  %v390_v61 = vsub.f32 %v14220_v56, %v389_v30  ;;  %v402_v50 = vsub.f32 %v14224_v60, %v401_v44 }
  0x82   :  { %v407_v41 = vand.u32 4294901760, %v14239_v6  ;;  %v12193_v21 = vpack.c.bf16 %v379_v8, %v367_v2  ;;  %v396_v52 = vsub.f32 %v14237_v5, %v395_v15  ;;  %v413_v28 = vand.u32 4294901760, %v14252_v12 }
  0x83   :  { %v12195_v53 = vpack.c.bf16 %v385_v54, %v373_v45  ;;  %279 = vmatmul.mubr.f32.vlgmr.msra.gmra.mrb[0].mxu1 %v278_v31  ;;  %823 = vmatmul.mubr.f32.vlgmr.msra.gmra.mrb[0].mxu0 %v276_v11  ;;  %v391_v59 = vand.u32 4294901760, %v390_v61  ;;  %v403_v36 = vand.u32 4294901760, %v402_v50  ;;  %v12293_v0 = vpack.c.bf16 %v401_v44, %v389_v30  ;;  %v130_v44 = vld [vmem:[%s17343_s2 + $0x8] sm:$0xff] }
  0x84   :  { %v408_v14 = vsub.f32 %v14239_v6, %v407_v41  ;;  %12188 = vmatpush1.bf16.msra.mxu1 %v12187_v33  ;;  %12284 = vmatpush1.bf16.msra.mxu0 %v12283_v4  ;;  %v397_v38 = vand.u32 4294901760, %v396_v52  ;;  %v414_v55 = vsub.f32 %v14252_v12, %v413_v28  ;;  %v425_v7 = vand.u32 4294901760, %v14254_v13 }
  0x85   :  { %v419_v51 = vand.u32 4294901760, %v14263_v16  ;;  %12190 = vmatprep.subr.bf16.mxu1 %v12189_v42  ;;  %12286 = vmatprep.subr.bf16.mxu0 %v12285_v40  ;;  %v12295_v8 = vpack.c.bf16 %v407_v41, %v395_v15  ;;  %v431_v11 = vand.u32 4294901760, %v14265_v20  ;;  %v437_v31 = vand.u32 4294901760, %v14274_v34 }
  0x86   :  { %v409_v2 = vand.u32 4294901760, %v408_v14  ;;  %v12197_v4 = vpack.c.bf16 %v403_v36, %v391_v59  ;;  %v426_v52 = vsub.f32 %v14254_v13, %v425_v7  ;;  %v17348_v30 = vmov 0.0  }
  0x87   :  { %v420_v33 = vsub.f32 %v14263_v16, %v419_v51  ;;  %283 = vmatprep.mubr.f32.mxu1 %v17348_v30  ;;  %827 = vmatprep.mubr.f32.mxu0 %v17348_v30  ;;  %v415_v40 = vand.u32 4294901760, %v414_v55  ;;  %v12297_v42 = vpack.c.bf16 %v425_v7, %v413_v28  ;;  %v432_v45 = vsub.f32 %v14265_v20, %v431_v11 }
  0x88   :  { %v438_v54 = vsub.f32 %v14274_v34, %v437_v31  ;;  %12192 = vmatpush1.bf16.msra.mxu1 %v12191_v43  ;;  %12288 = vmatpush1.bf16.msra.mxu0 %v12287_v1  ;;  %v12199_v15 = vpack.c.bf16 %v409_v2, %v397_v38  ;;  %v427_v61 = vand.u32 4294901760, %v426_v52  ;;  %v449_v50 = vand.u32 4294901760, %v14276_v35  ;;  %v131_v43 = vld [vmem:[%s17343_s2 + $0x10] sm:$0xff] }
  0x89   :  { %v14393_v41 = vand.u32 4294901760, %v130_v44  ;;  %12194 = vmatprep.subr.bf16.mxu1 %v12193_v21  ;;  %12290 = vmatprep.subr.bf16.mxu0 %v12289_v26  ;;  %v421_v59 = vand.u32 4294901760, %v420_v33  ;;  %v12299_v36 = vpack.c.bf16 %v431_v11, %v419_v51  ;;  %v443_v14 = vand.u32 4294901760, %v14289_v48 }
  0x8a   :  { %v455_v28 = vand.u32 4294901760, %v14291_v49  ;;  %v433_v55 = vand.u32 4294901760, %v432_v45  ;;  %v439_v7 = vand.u32 4294901760, %v438_v54  ;;  %v450_v34 = vsub.f32 %v14276_v35, %v449_v50 }
  0x8b   :  { %v14399_v1 = vsub.f32 %v130_v44, %v14393_v41  ;;  %v12201_v38 = vpack.c.bf16 %v427_v61, %v415_v40  ;;  %v12301_v21 = vpack.c.bf16 %v449_v50, %v437_v31  ;;  %v444_v26 = vsub.f32 %v14289_v48, %v443_v14 }
  0x8c   :  { %v456_v51 = vsub.f32 %v14291_v49, %v455_v28  ;;  %12196 = vmatpush1.bf16.msra.mxu1 %v12195_v53  ;;  %12292 = vmatpush1.bf16.msra.mxu0 %v12291_v63  ;;  %v451_v2 = vand.u32 4294901760, %v450_v34  ;;  %v461_v52 = vand.u32 4294901760, %v14300_v57  ;;  %v473_v44 = vand.u32 4294901760, %v14302_v58 }
  0x8d   :  { %17349 = vst [vmem:[#allocation36_spill] sm:$0xff] %v14399_v1  ;;  %v286_v11 = vand.u32 4294901760, %v14399_v1  ;;  %12198 = vmatprep.subr.bf16.mxu1 %v12197_v4  ;;  %12294 = vmatprep.subr.bf16.mxu0 %v12293_v0  ;;  %v445_v33 = vand.u32 4294901760, %v444_v26  ;;  %v14409_v54 = vand.u32 4294901760, %v131_v43  ;;  %v467_v31 = vand.u32 4294901760, %v14308_v62 }
  0x8e   :  { %v457_v45 = vand.u32 4294901760, %v456_v51  ;;  %v12203_v40 = vpack.c.bf16 %v433_v55, %v421_v59  ;;  %v462_v53 = vsub.f32 %v14300_v57, %v461_v52  ;;  %v474_v34 = vsub.f32 %v14302_v58, %v473_v44  ;;  %v132_v59 = vld [vmem:[%s17343_s2 + $0x18] sm:$0xff] }
  0x8f   :  { %v287_v61 = vsub.f32 %v14399_v1, %v286_v11  ;;  %831 = vmatmul.mubr.f32.gmra.mrb[2].mxu0 %v286_v11  ;;  %v12205_v63 = vpack.c.bf16 %v451_v2, %v439_v7  ;;  %v12303_v50 = vpack.c.bf16 %v455_v28, %v443_v14  ;;  %v14417_v0 = vsub.f32 %v131_v43, %v14409_v54 }
  0x90   :  { %835 = vmatprep.mubr.f32.mxu0 %v17348_v30  ;;  %v468_v4 = vsub.f32 %v14308_v62, %v467_v31  ;;  %12200 = vmatpush1.bf16.msra.mxu1 %v12199_v15  ;;  %v463_v26 = vand.u32 4294901760, %v462_v53  ;;  %v475_v51 = vand.u32 4294901760, %v474_v34  ;;  %v479_v11 = vand.u32 4294901760, %v14310_v3 }
  0x91   :  { %17350 = vst [vmem:[#allocation37_spill] sm:$0xff] %v14417_v0  ;;  %12296 = vmatpush1.bf16.msra.mxu0 %v12295_v8  ;;  %v288_v55 = vand.u32 4294901760, %v287_v61  ;;  %12202 = vmatprep.subr.bf16.mxu1 %v12201_v38  ;;  %v12207_v14 = vpack.c.bf16 %v457_v45, %v445_v33  ;;  %v296_v28 = vand.u32 4294901760, %v14417_v0  ;;  %v485_v7 = vand.u32 4294901760, %v14318_v22 }
  0x92   :  { %12298 = vmatprep.subr.bf16.mxu0 %v12297_v42  ;;  %v497_v43 = vand.u32 4294901760, %v14320_v27  ;;  %v12305_v2 = vpack.c.bf16 %v473_v44, %v461_v52  ;;  %v469_v1 = vand.u32 4294901760, %v468_v4  ;;  %v480_v15 = vsub.f32 %v14310_v3, %v479_v11 }
  0x93   :  { %289 = vmatmul.mubr.f32.gmra.mrb[2].mxu1 %v288_v55  ;;  %v14428_v8 = vand.u32 4294901760, %v132_v59  ;;  %v297_v61 = vsub.f32 %v14417_v0, %v296_v28  ;;  %839 = vmatmul.mubr.f32.gmra.mrb[4].mxu0 %v296_v28  ;;  %v486_v42 = vsub.f32 %v14318_v22, %v485_v7  ;;  %v491_v33 = vand.u32 4294901760, %v14326_v10 }
  0x94   :  { %293 = vmatprep.mubr.f32.mxu1 %v17348_v30  ;;  %v498_v38 = vsub.f32 %v14320_v27, %v497_v43  ;;  %12204 = vmatpush1.bf16.msra.mxu1 %v12203_v40  ;;  %v12209_v45 = vpack.c.bf16 %v475_v51, %v463_v26  ;;  %v481_v52 = vand.u32 4294901760, %v480_v15  ;;  %v503_v53 = vand.u32 4294901760, %v14333_v32 }
  0x95   :  { %12300 = vmatpush1.bf16.msra.mxu0 %v12299_v36  ;;  %v14436_v44 = vsub.f32 %v132_v59, %v14428_v8  ;;  %12206 = vmatprep.subr.bf16.mxu1 %v12205_v63  ;;  %v298_v34 = vand.u32 4294901760, %v297_v61  ;;  %v487_v4 = vand.u32 4294901760, %v486_v42  ;;  %v492_v28 = vsub.f32 %v14326_v10, %v491_v33  ;;  %v17363_v42 = vld [vmem:[#allocation28_spill] sm:$0xff] }
  0x96   :  { %12302 = vmatprep.subr.bf16.mxu0 %v12301_v21  ;;  %v499_v55 = vand.u32 4294901760, %v498_v38  ;;  %843 = vmatprep.mubr.f32.mxu0 %v17348_v30  ;;  %v504_v36 = vsub.f32 %v14333_v32, %v503_v53  ;;  %v12307_v40 = vpack.c.bf16 %v479_v11, %v467_v31  ;;  %v12211_v59 = vpack.c.bf16 %v481_v52, %v469_v1  ;;  %v17365_v38 = vld [vmem:[#allocation31_spill] sm:$0xff] }
  0x97   :  { %v306_v0 = vand.u32 4294901760, %v14436_v44  ;;  %299 = vmatmul.mubr.f32.gmra.mrb[4].mxu1 %v298_v34  ;;  %v493_v63 = vand.u32 4294901760, %v492_v28  ;;  %v12309_v15 = vpack.c.bf16 %v497_v43, %v485_v7  ;;  %v12311_v11 = vpack.c.bf16 %v503_v53, %v491_v33  ;;  %v17358_v7 = vld [vmem:[#allocation24_spill] sm:$0xff]  ;;  %v17361_v43 = vld [vmem:[#allocation29_spill] sm:$0xff] }
  0x98   :  { %12208 = vmatpush1.bf16.msra.mxu1 %v12207_v14  ;;  %v505_v21 = vand.u32 4294901760, %v504_v36  ;;  %v12213_v51 = vpack.c.bf16 %v499_v55, %v487_v4  ;;  %303 = vmatprep.mubr.f32.mxu1 %v17348_v30  ;;  %v12217_v1 = vpack.c.bf16 %v14142_v19, %v14140_v18  ;;  %v17351_v18 = vld [vmem:[#allocation19_spill] sm:$0xff]  ;;  %v17352_v14 = vld [vmem:[#allocation17_spill] sm:$0xff]  ;;  %v12245_v33 = vpack.c.bf16 %v14320_v27, %v14318_v22 }
  0x99   :  { %12304 = vmatpush1.bf16.msra.mxu0 %v12303_v50  ;;  %v307_v26 = vsub.f32 %v14436_v44, %v306_v0  ;;  %12210 = vmatprep.subr.bf16.mxu1 %v12209_v45  ;;  %v12219_v50 = vpack.c.bf16 %v14157_v25, %v14155_v24  ;;  %v12223_v19 = vpack.c.bf16 %v17351_v18, %v14179_v39  ;;  %v17355_v25 = vld [vmem:[#allocation23_spill] sm:$0xff]  ;;  %v1308_v22 = vld [vmem:[%s17372_s26 + $0x8] sm:$0xff]  ;;  %v14552_v53 = vld [vmem:[%s17372_s26 + $0x20] sm:$0xff] }
  0x9a   :  { %12306 = vmatprep.subr.bf16.mxu0 %v12305_v2  ;;  %847 = vmatmul.mubr.f32.gmra.mrb[6].mxu0 %v306_v0  ;;  %v12215_v31 = vpack.c.bf16 %v505_v21, %v493_v63  ;;  %v12221_v0 = vpack.c.bf16 %v14174_v37, %v14169_v29  ;;  %v12225_v24 = vpack.c.bf16 %v14196_v47, %v14194_v46  ;;  %v17356_v37 = vld [vmem:[#allocation20_spill] sm:$0xff]  ;;  %v17357_v46 = vld [vmem:[#allocation21_spill] sm:$0xff]  ;;  %v17369_v45 = vld [vmem:[#allocation35_spill] sm:$0xff]  ;;  %v1343_v4 = vand.u32 4294901760, %v14552_v53 }
  0x9b   :  { %v308_v61 = vand.u32 4294901760, %v307_v26  ;;  %1013 = vmatprep.mubr.f32.mxu0 %v17348_v30  ;;  %v12229_v39 = vpack.c.bf16 %v14224_v60, %v14220_v56  ;;  %v12231_v47 = vpack.c.bf16 %v14239_v6, %v14237_v5  ;;  %v12233_v56 = vpack.c.bf16 %v14254_v13, %v14252_v12  ;;  %v17359_v60 = vld [vmem:[#allocation25_spill] sm:$0xff]  ;;  %v17360_v6 = vld [vmem:[#allocation26_spill] sm:$0xff]  ;;  %v17362_v13 = vld [vmem:[#allocation27_spill] sm:$0xff] }
  0x9c   :  { %12212 = vmatpush1.bf16.msra.mxu1 %v12211_v59  ;;  %v12235_v5 = vpack.c.bf16 %v14265_v20, %v14263_v16  ;;  %v12237_v12 = vpack.c.bf16 %v14276_v35, %v17361_v43  ;;  %v12239_v2 = vpack.c.bf16 %v14291_v49, %v14289_v48  ;;  %v12241_v16 = vpack.c.bf16 %v14302_v58, %v14300_v57  ;;  %v17364_v20 = vld [vmem:[#allocation30_spill] sm:$0xff]  ;;  %v17366_v48 = vld [vmem:[#allocation32_spill] sm:$0xff]  ;;  %v17367_v57 = vld [vmem:[#allocation33_spill] sm:$0xff] }
  0x9d   :  { %12308 = vmatpush1.bf16.msra.mxu0 %v12307_v40  ;;  %12214 = vmatprep.subr.bf16.mxu1 %v12213_v51  ;;  %v12243_v35 = vpack.c.bf16 %v14310_v3, %v14308_v62  ;;  %v12247_v49 = vpack.c.bf16 %v14333_v32, %v14326_v10  ;;  %v17368_v58 = vld [vmem:[#allocation34_spill] sm:$0xff]  ;;  %v17370_v62 = vld [vmem:[#allocation36_spill] sm:$0xff]  ;;  %v17371_v3 = vld [vmem:[#allocation37_spill] sm:$0xff]  ;;  %v1334_v10 = vand.u32 4294901760, %v1308_v22 }
  0x9e   :  { %12310 = vmatprep.subr.bf16.mxu0 %v12309_v15  ;;  %309 = vmatmul.mubr.f32.gmra.mrb[6].mxu1 %v308_v61  ;;  %v14557_v34 = vld [vmem:[%s17372_s26 + $0x28] sm:$0xff]  ;;  %v14572_v36 = vld [vmem:[%s17372_s26 + $0x30] sm:$0xff]  ;;  %v14577_v40 = vld [vmem:[%s17372_s26 + $0x38] sm:$0xff] }
  0x9f   :  { %539 = vmatprep.mubr.f32.mxu1 %v17348_v30  ;;  %v1346_v55 = vand.u32 4294901760, %v14557_v34  ;;  %v1349_v59 = vand.u32 4294901760, %v14572_v36  ;;  %v1352_v26 = vand.u32 4294901760, %v14577_v40  ;;  %v14586_v63 = vld [vmem:[%s17372_s26 + $0x40] sm:$0xff]  ;;  %v14591_v21 = vld [vmem:[%s17372_s26 + $0x48] sm:$0xff]  ;;  %v14596_v51 = vld [vmem:[%s17372_s26 + $0x50] sm:$0xff] }
  0xa0   :  { %12216 = vmatpush1.bf16.msra.mxu1 %v12215_v31  ;;  %v1355_v61 = vand.u32 4294901760, %v14586_v63  ;;  %v1358_v31 = vand.u32 4294901760, %v14591_v21  ;;  %v14621_v18 = vld [vmem:[%s17372_s26 + $0x68] sm:$0xff] }
  0xa1   :  { %12312 = vmatpush1.bf16.msra.mxu0 %v12311_v11  ;;  %12218 = vmatprep.subr.bf16.mxu1 %v12217_v1  ;;  %v14567_v28 = vpack.c.bf16 %v1346_v55, %v1343_v4  ;;  %v14602_v15 = vpack.c.bf16 %v1352_v26, %v1349_v59  ;;  %v14609_v11 = vld [vmem:[%s17372_s26 + $0x58] sm:$0xff]  ;;  %v1361_v1 = vand.u32 4294901760, %v14596_v51 }
  0xa2   :  { %12314 = vmatprep.subr.bf16.mxu0 %v14138_v17  ;;  %v17353_v17 = vld [vmem:[#allocation18_spill] sm:$0xff] }
  0xa3   :  { %541 = vmatmul.mubr.f32.vlgmr.msra.gmra.mrb[0].mxu1 %v14314_v9 }
  0xa4   :  { %1015 = vmatmul.mubr.f32.vlgmr.msra.gmra.mrb[0].mxu0 %v14314_v9  ;;  %12220 = vmatpush1.bf16.msra.mxu1 %v12219_v50  ;;  %v1364_v50 = vand.u32 4294901760, %v14609_v11 }
  0xa5   :  { %12316 = vmatpush1.bf16.msra.mxu0 %v14153_v23  ;;  %12222 = vmatprep.subr.bf16.mxu1 %v12221_v0  ;;  %v17354_v23 = vld [vmem:[#allocation22_spill] sm:$0xff]  ;;  %v14616_v0 = vld [vmem:[%s17372_s26 + $0x60] sm:$0xff] }
  0xa6   :  { %12318 = vmatprep.subr.bf16.mxu0 %v17352_v14  ;;  %545 = vmatprep.mubr.f32.mxu1 %v17348_v30  ;;  %v12227_v29 = vpack.c.bf16 %v17355_v25, %v17354_v23  ;;  %v14636_v14 = vpack.c.bf16 %v1364_v50, %v1361_v1  ;;  %v14643_v23 = vld [vmem:[%s17372_s26 + $0x70] sm:$0xff]  ;;  %v14648_v25 = vld [vmem:[%s17372_s26 + $0x78] sm:$0xff] }
  0xa7   :  { %1019 = vmatprep.mubr.f32.mxu0 %v17348_v30  ;;  %547 = vmatmul.mubr.f32.gmra.mrb[2].mxu1 %v14393_v41 }
  0xa8   :  { %1021 = vmatmul.mubr.f32.gmra.mrb[2].mxu0 %v14393_v41  ;;  %12224 = vmatpush1.bf16.msra.mxu1 %v12223_v19  ;;  %v14628_v19 = vpack.c.bf16 %v1358_v31, %v1355_v61 }
  0xa9   :  { %12320 = vmatpush1.bf16.msra.mxu0 %v17353_v17  ;;  %12226 = vmatprep.subr.bf16.mxu1 %v12225_v24  ;;  %v1367_v24 = vand.u32 4294901760, %v14616_v0  ;;  %v1370_v17 = vand.u32 4294901760, %v14621_v18 }
  0xaa   :  { %12322 = vmatprep.subr.bf16.mxu0 %v17356_v37  ;;  %551 = vmatprep.mubr.f32.mxu1 %v17348_v30  ;;  %v1373_v37 = vand.u32 4294901760, %v14643_v23 }
  0xab   :  { %1025 = vmatprep.mubr.f32.mxu0 %v17348_v30  ;;  %553 = vmatmul.mubr.f32.gmra.mrb[4].mxu1 %v14409_v54 }
  0xac   :  { %1027 = vmatmul.mubr.f32.gmra.mrb[4].mxu0 %v14409_v54  ;;  %12228 = vmatpush1.bf16.msra.mxu1 %v12227_v29  ;;  %v14656_v29 = vpack.c.bf16 %v1370_v17, %v1367_v24 }
  0xad   :  { %12324 = vmatpush1.bf16.msra.mxu0 %v17357_v46  ;;  %12230 = vmatprep.subr.bf16.mxu1 %v12229_v39  ;;  %v1376_v39 = vand.u32 4294901760, %v14648_v25 }
  0xae   :  { %12326 = vmatprep.subr.bf16.mxu0 %v17358_v7  ;;  %557 = vmatprep.mubr.f32.mxu1 %v17348_v30  ;;  %v14670_v7 = vsub.f32 %v1308_v22, %v1334_v10 }
  0xaf   :  { %1031 = vmatprep.mubr.f32.mxu0 %v17348_v30  ;;  %559 = vmatmul.mubr.f32.gmra.mrb[6].mxu1 %v14428_v8  ;;  %v14666_v46 = vpack.c.bf16 %v1376_v39, %v1373_v37 }
  0xb0   :  { %1033 = vmatmul.mubr.f32.gmra.mrb[6].mxu0 %v14428_v8  ;;  %12232 = vmatpush1.bf16.msra.mxu1 %v12231_v47  ;;  %17375 = vst [vmem:[#allocation18_spill] sm:$0xff] %v14670_v7 }
  0xb1   :  { %12328 = vmatpush1.bf16.msra.mxu0 %v17359_v60  ;;  %12234 = vmatprep.subr.bf16.mxu1 %v12233_v56  ;;  %17373 = vst [vmem:[#allocation19_spill] sm:$0xff] %v14666_v46  ;;  %v2105_v56 = vld [vmem:[#allocation4] sm:$0xff]  ;;  %v2106_v60 = vld [vmem:[#allocation4 + $0x8] sm:$0xff] }
  0xb2   :  { %12330 = vmatprep.subr.bf16.mxu0 %v17360_v6  ;;  %693 = vmatprep.mubr.f32.mxu1 %v17348_v30  ;;  %v17155_v6 = vand.u32 4294901760, %v14670_v7  ;;  %v2122_v43 = vsel %vm2100_vm0, %v2105_v56, 0 }
  0xb3   :  { %1135 = vmatprep.mubr.f32.mxu0 %v17348_v30 }
  0xb4   :  { %12236 = vmatpush1.bf16.msra.mxu1 %v12235_v5 }
  0xb5   :  { %12332 = vmatpush1.bf16.msra.mxu0 %v17362_v13  ;;  %12238 = vmatprep.subr.bf16.mxu1 %v12237_v12  ;;  %v2125_v12 = vsel %vm2100_vm0, %v2106_v60, 0  ;;  %v2134_v13 = vand.u32 4294901760, %v2122_v43 }
  0xb6   :  { %12334 = vmatprep.subr.bf16.mxu0 %v17363_v42 }
  0xb8   :  { %12240 = vmatpush1.bf16.msra.mxu1 %v12239_v2  ;;  %v2137_v2 = vand.u32 4294901760, %v2125_v12 }
  0xb9   :  { %12336 = vmatpush1.bf16.msra.mxu0 %v17364_v20  ;;  %12242 = vmatprep.subr.bf16.mxu1 %v12241_v16  ;;  %v1462_v16 = vsub.f32 %v14670_v7, %v17155_v6 }
  0xba   :  { %12338 = vmatprep.subr.bf16.mxu0 %v17365_v38  ;;  %v14690_v38 = vpack.c.bf16 %v2137_v2, %v2134_v13 }
  0xbc   :  { %12244 = vmatpush1.bf16.msra.mxu1 %v12243_v35 }
  0xbd   :  { %12340 = vmatpush1.bf16.msra.mxu0 %v17366_v48  ;;  %12246 = vmatprep.subr.bf16.mxu1 %v12245_v33  ;;  %v1463_v48 = vand.u32 4294901760, %v1462_v16  ;;  %v14732_v16 = vsub.f32 %v14572_v36, %v1349_v59 }
  0xbe   :  { %12342 = vmatprep.subr.bf16.mxu0 %v17367_v57 }
  0xbf   :  { %17380 = vst [vmem:[#allocation24_spill] sm:$0xff] %v14732_v16 }
  0xc0   :  { %12248 = vmatpush1.bf16.msra.mxu1 %v12247_v49  ;;  %v17161_v49 = vmov 0.0|0.0  }
  0xc1   :  { %12344 = vmatpush1.bf16.msra.mxu0 %v17368_v58 }
  0xc2   :  { %12537 = vmatprep.subr.bf16.mxu0 %v17161_v49 }
  0xc3   :  { %696 = vmatmul.mubr.f32.vlgmr.msra.gmra.mrb[0].mxu1 %v17369_v45 }
  0xc4   :  { %1137 = vmatmul.mubr.f32.vlgmr.msra.gmra.mrb[0].mxu0 %v14314_v9  ;;  %700 = vmatprep.mubr.f32.mxu1 %v17348_v30  ;;  %v1307_v9 = vld [vmem:[%s17372_s26] sm:$0xff] }
  0xc5   :  { %1141 = vmatprep.mubr.f32.mxu0 %v17348_v30  ;;  %v1331_v27 = vand.u32 4294901760, %v1307_v9 }
  0xc7   :  { %703 = vmatmul.mubr.f32.gmra.mrb[2].mxu1 %v17370_v62  ;;  %v14531_v32 = vpack.c.bf16 %v1334_v10, %v1331_v27  ;;  %v14668_v47 = vsub.f32 %v1307_v9, %v1331_v27  ;;  %v14702_v62 = vsub.f32 %v14552_v53, %v1343_v4  ;;  %v2107_v27 = vld [vmem:[#allocation4 + $0x10] sm:$0xff]  ;;  %v2108_v10 = vld [vmem:[#allocation4 + $0x18] sm:$0xff] }
  0xc8   :  { %1143 = vmatmul.mubr.f32.gmra.mrb[2].mxu0 %v14393_v41  ;;  %707 = vmatprep.mubr.f32.mxu1 %v17348_v30  ;;  %v14536_v41 = vld [vmem:[%s17372_s26 + $0x10] sm:$0xff]  ;;  %v2128_v53 = vsel %vm2100_vm0, %v2107_v27, 0  ;;  %v14741_v27 = vsub.f32 %v2122_v43, %v2134_v13 }
  0xc9   :  { %1147 = vmatprep.mubr.f32.mxu0 %v17348_v30  ;;  %12346 = vmatprep.subr.bf16.mxu1 %v14531_v32  ;;  %17374 = vst [vmem:[#allocation17_spill] sm:$0xff] %v14668_v47  ;;  %v17156_v5 = vand.u32 4294901760, %v14668_v47  ;;  %17378 = vst [vmem:[#allocation20_spill] sm:$0xff] %v14702_v62  ;;  %v2140_v4 = vand.u32 4294901760, %v2128_v53 }
  0xca   :  { %12348 = vmatpush3.bf16.msra.mxu1 %v14531_v32  ;;  %12539 = vmatpush3.bf16.xpose.msra.mxu0 %v14690_v38  ;;  %v2215_v59 = vand.u32 4294901760, %v14741_v27 }
  0xcb   :  { %710 = vmatmul.mubr.f32.gmra.mrb[4].mxu1 %v17371_v3  ;;  %v1455_v42 = vsub.f32 %v14668_v47, %v17156_v5  ;;  %v14707_v3 = vsub.f32 %v14557_v34, %v1346_v55  ;;  %12540 = vmatprep.subr.bf16.mxu0 %v17161_v49  ;;  %v2131_v34 = vsel %vm2100_vm0, %v2108_v10, 0  ;;  %v17142_v10 = vand.u32 4294901760, %v14732_v16 }
  0xcc   :  { %1149 = vmatmul.mubr.f32.gmra.mrb[4].mxu0 %v14409_v54  ;;  %714 = vmatprep.mubr.f32.mxu1 %v17348_v30  ;;  %v14541_v54 = vld [vmem:[%s17372_s26 + $0x18] sm:$0xff]  ;;  %v2143_v55 = vand.u32 4294901760, %v2131_v34  ;;  %s13911_s26 = smov [#allocation12]  }
  0xcd   :  { %1153 = vmatprep.mubr.f32.mxu0 %v17348_v30  ;;  %v1340_v52 = vand.u32 4294901760, %v14541_v54  ;;  %v1456_v33 = vand.u32 4294901760, %v1455_v42  ;;  %17379 = vst [vmem:[#allocation21_spill] sm:$0xff] %v14707_v3  ;;  %v1497_v43 = vsub.f32 %v14732_v16, %v17142_v10  ;;  %s9447_s27 = sshll.u32 %s13911_s26, 4  ;;  %s9448_s27 = int_to_ptr.vmem [resolvable:$true] %s9447_s27 }
  0xce   :  { %p13877_p5 = scmp.lt.s32.totalorder %s9448_s27, %s9448_s27 }
  0xcf   :  { %717 = vmatmul.mubr.f32.gmra.mrb[6].mxu1 %v14436_v44  ;;  %v14688_v35 = vsub.f32 %v14541_v54, %v1340_v52  ;;  %v14697_v45 = vpack.c.bf16 %v1463_v48, %v1456_v33  ;;  %v17143_v54 = vand.u32 4294901760, %v14707_v3  ;;  %v14737_v33 = vsub.f32 %v14577_v40, %v1352_v26 }
  0xd0   :  { %1155 = vmatmul.mubr.f32.gmra.mrb[6].mxu0 %v14428_v8  ;;  %v1337_v8 = vand.u32 4294901760, %v14536_v41  ;;  %v14739_v48 = vpack.c.bf16 %v2143_v55, %v2140_v4  ;;  %v14754_v40 = vsub.f32 %v14586_v63, %v1355_v61  ;;  %v14759_v26 = vsub.f32 %v14591_v21, %v1358_v31 }
  0xd1   :  { %17377 = vst [vmem:[#allocation23_spill] sm:$0xff] %v14688_v35  ;;  %v17151_v58 = vand.u32 4294901760, %v14688_v35  ;;  %v1490_v60 = vsub.f32 %v14707_v3, %v17143_v54  ;;  %17381 = vst [vmem:[#allocation25_spill] sm:$0xff] %v14737_v33  ;;  %v2216_v63 = vsub.f32 %v14741_v27, %v2215_v59  ;;  %v1498_v31 = vand.u32 4294901760, %v1497_v43  ;;  %10583 = vmatprep.mubr.msk.f32.mxu0 %vm13910_vm1, %v17348_v30 }
  0xd2   :  { %v14547_v44 = vpack.c.bf16 %v1340_v52, %v1337_v8  ;;  %v14685_v20 = vsub.f32 %v14536_v41, %v1337_v8  ;;  %v17150_v41 = vand.u32 4294901760, %v14702_v62  ;;  %12542 = vmatpush3.bf16.xpose.msra.mxu0 %v14739_v48  ;;  %17382 = vst [vmem:[#allocation26_spill] sm:$0xff] %v14754_v40  ;;  %17383 = vst [vmem:[#allocation29_spill] sm:$0xff] %v14759_v26  ;;  %v17144_v61 = vand.u32 4294901760, %v14754_v40 }
  0xd3   :  { %v1476_v22 = vsub.f32 %v14688_v35, %v17151_v58  ;;  %12543 = vmatprep.subr.bf16.mxu0 %v17161_v49  ;;  %v17145_v21 = vand.u32 4294901760, %v14759_v26 }
  0xd4   :  { %12350 = vmatprep.subr.bf16.mxu1 %v14547_v44  ;;  %17376 = vst [vmem:[#allocation22_spill] sm:$0xff] %v14685_v20  ;;  %v17154_v57 = vand.u32 4294901760, %v14685_v20  ;;  %v1483_v56 = vsub.f32 %v14702_v62, %v17150_v41 }
  0xd5   :  { %12352 = vmatpush3.bf16.msra.mxu1 %v14547_v44  ;;  %v1477_v52 = vand.u32 4294901760, %v1476_v22  ;;  %v1491_v22 = vand.u32 4294901760, %v1490_v60  ;;  %v2217_v60 = vand.u32 4294901760, %v2216_v63  ;;  %v14793_v63 = vsub.f32 %v14609_v11, %v1364_v50 }
  0xd6   :  { %12354 = vmatprep.subr.bf16.mxu1 %v14567_v28  ;;  %v1469_v9 = vsub.f32 %v14685_v20, %v17154_v57 }
  0xd7   :  { %17385 = vst [vmem:[#allocation28_spill] sm:$0xff] %v14793_v63 }
  0xd8   :  { %v1470_v8 = vand.u32 4294901760, %v1469_v9  ;;  %v1484_v9 = vand.u32 4294901760, %v1483_v56 }
  0xd9   :  { %12356 = vmatpush3.bf16.msra.mxu1 %v14567_v28  ;;  %10584 = vmatmul.mubr.f32.vlgmr.msra.gmra.mrb[8].mxu0 %v17348_v30 }
  0xda   :  { %12358 = vmatprep.subr.bf16.mxu1 %v14602_v15  ;;  %v14727_v42 = vpack.c.bf16 %v1477_v52, %v1470_v8  ;;  %v17141_v8 = vand.u32 4294901760, %v14737_v33  ;;  %v14745_v52 = vsub.f32 %v2125_v12, %v2137_v2  ;;  %v14748_v36 = vpack.c.bf16 %v1491_v22, %v1484_v9  ;;  %10594 = vmatprep.mubr.msk.f32.mxu0 %vm13910_vm1, %v17348_v30 }
  0xdb   :  { %v1511_v9 = vsub.f32 %v14754_v40, %v17144_v61  ;;  %v1518_v22 = vsub.f32 %v14759_v26, %v17145_v21 }
  0xdc   :  { %v1504_v12 = vsub.f32 %v14737_v33, %v17141_v8  ;;  %v2222_v13 = vand.u32 4294901760, %v14745_v52  ;;  %v14786_v8 = vsub.f32 %v14596_v51, %v1361_v1  ;;  %v17146_v51 = vand.u32 4294901760, %v14793_v63 }
  0xdd   :  { %12360 = vmatpush3.bf16.msra.mxu1 %v14602_v15  ;;  %v1512_v10 = vand.u32 4294901760, %v1511_v9  ;;  %v1519_v54 = vand.u32 4294901760, %v1518_v22  ;;  %v14801_v1 = vsub.f32 %v2128_v53, %v2140_v4  ;;  %v14819_v53 = vsub.f32 %v14621_v18, %v1370_v17 }
  0xde   :  { %12362 = vmatprep.subr.bf16.mxu1 %v14628_v19  ;;  %v1505_v2 = vand.u32 4294901760, %v1504_v12  ;;  %v2223_v56 = vsub.f32 %v14745_v52, %v2222_v13  ;;  %17384 = vst [vmem:[#allocation27_spill] sm:$0xff] %v14786_v8  ;;  %v17148_v61 = vand.u32 4294901760, %v14786_v8  ;;  %v14847_v9 = vsub.f32 %v14643_v23, %v1373_v37 }
  0xdf   :  { %v14806_v11 = vpack.c.bf16 %v1519_v54, %v1512_v10  ;;  %17388 = vst [vmem:[#allocation32_spill] sm:$0xff] %v14819_v53  ;;  %v1532_v54 = vsub.f32 %v14793_v63, %v17146_v51  ;;  %v17149_v18 = vand.u32 4294901760, %v14819_v53  ;;  %v14852_v22 = vsub.f32 %v14648_v25, %v1376_v39 }
  0xe0   :  { %v14788_v43 = vpack.c.bf16 %v1505_v2, %v1498_v31  ;;  %v2224_v12 = vand.u32 4294901760, %v2223_v56  ;;  %v14803_v31 = vsub.f32 %v2131_v34, %v2143_v55  ;;  %v1525_v50 = vsub.f32 %v14786_v8, %v17148_v61  ;;  %17389 = vst [vmem:[#allocation33_spill] sm:$0xff] %v14847_v9 }
  0xe1   :  { %12364 = vmatpush3.bf16.msra.mxu1 %v14628_v19  ;;  %v14814_v2 = vsub.f32 %v14616_v0, %v1367_v24  ;;  %v17158_v34 = vand.u32 4294901760, %v14801_v1  ;;  %v1533_v17 = vand.u32 4294901760, %v1532_v54  ;;  %17390 = vst [vmem:[#allocation34_spill] sm:$0xff] %v14852_v22  ;;  %v17153_v61 = vand.u32 4294901760, %v14847_v9 }
  0xe2   :  { %12366 = vmatprep.subr.bf16.mxu1 %v14636_v14  ;;  %v14798_v21 = vpack.c.bf16 %v2224_v12, %v2217_v60  ;;  %v17157_v4 = vand.u32 4294901760, %v14803_v31  ;;  %v1526_v0 = vand.u32 4294901760, %v1525_v50  ;;  %v1546_v60 = vsub.f32 %v14819_v53, %v17149_v18 }
  0xe3   :  { %17387 = vst [vmem:[#allocation31_spill] sm:$0xff] %v14814_v2  ;;  %v17147_v24 = vand.u32 4294901760, %v14814_v2  ;;  %v2230_v55 = vsub.f32 %v14801_v1, %v17158_v34  ;;  %v17152_v18 = vand.u32 4294901760, %v14852_v22  ;;  %v1553_v23 = vsub.f32 %v14847_v9, %v17153_v61 }
  0xe4   :  { %17386 = vst [vmem:[#allocation30_spill] sm:$0xff] %v14798_v21  ;;  %12545 = vmatpush3.bf16.xpose.msra.mxu0 %v14798_v21  ;;  %v2237_v10 = vsub.f32 %v14803_v31, %v17157_v4  ;;  %v14854_v12 = vpack.c.bf16 %v1533_v17, %v1526_v0  ;;  %v14887_v17 = vpack.c.bf16 %v14688_v35, %v14685_v20 }
  0xe5   :  { %12368 = vmatpush3.bf16.msra.mxu1 %v14636_v14  ;;  %12546 = vmatprep.subr.bf16.mxu0 %v17161_v49  ;;  %v1539_v56 = vsub.f32 %v14814_v2, %v17147_v24  ;;  %v2231_v50 = vand.u32 4294901760, %v2230_v55  ;;  %v1547_v24 = vand.u32 4294901760, %v1546_v60  ;;  %v1560_v25 = vsub.f32 %v14852_v22, %v17152_v18 }
  0xe6   :  { %12370 = vmatprep.subr.bf16.mxu1 %v14656_v29  ;;  %v2238_v54 = vand.u32 4294901760, %v2237_v10  ;;  %v1554_v37 = vand.u32 4294901760, %v1553_v23  ;;  %v14891_v55 = vpack.c.bf16 %v14803_v31, %v14801_v1  ;;  %v14895_v10 = vpack.c.bf16 %v14707_v3, %v14702_v62 }
  0xe7   :  { %v1540_v51 = vand.u32 4294901760, %v1539_v56  ;;  %v1561_v39 = vand.u32 4294901760, %v1560_v25  ;;  %v14901_v56 = vpack.c.bf16 %v14737_v33, %v14732_v16  ;;  %v167_v60 = vlaneseq }
  0xe8   :  { %v14858_v41 = vpack.c.bf16 %v2238_v54, %v2231_v50  ;;  %17393 = vst [vmem:[#allocation37_spill] sm:$0xff] %v14891_v55  ;;  %v14905_v50 = vpack.c.bf16 %v14759_v26, %v14754_v40  ;;  %v14916_v23 = vpack.c.bf16 %v14793_v63, %v14786_v8  ;;  %v14930_v18 = vpack.c.bf16 %v14852_v22, %v14847_v9 }
  0xe9   :  { %12372 = vmatpush3.bf16.msra.mxu1 %v14656_v29  ;;  %v14860_v58 = vpack.c.bf16 %v1547_v24, %v1540_v51  ;;  %v14870_v0 = vpack.c.bf16 %v1561_v39, %v1554_v37  ;;  %v14874_v51 = vpack.c.bf16 %v14745_v52, %v14741_v27  ;;  %v14879_v24 = vpack.c.bf16 %v14670_v7, %v14668_v47  ;;  %v165_v37 = vld [vmem:[%s17394_s7] sm:$0x3] }
  0xea   :  { %12374 = vmatprep.subr.bf16.mxu1 %v14666_v46  ;;  %17391 = vst [vmem:[#allocation35_spill] sm:$0xff] %v14858_v41  ;;  %v14911_v54 = vshrl.u32 %v167_v60, 7  ;;  %v14924_v39 = vpack.c.bf16 %v14819_v53, %v14814_v2  ;;  %v14936_v34 = vpack.c.bf16 %v2222_v13, %v2215_v59 }
  0xeb   :  { %17392 = vst [vmem:[#allocation36_spill] sm:$0xff] %v14874_v51 }
  0xec   :  { %12548 = vmatpush3.bf16.xpose.msra.mxu0 %v14858_v41  ;;  %v169_v25 = vsub.s32 0, %v14911_v54  ;;  %17395 = vst [vmem:[#allocation38_spill] sm:$0xff] %v14936_v34  ;;  %vm1179_vm2 = vcmp.lt.s32.totalorder %v14911_v54, 4  ;;  %vm1240_vm4 = vcmp.ge.s32.totalorder %v14911_v54, 4 }
  0xed   :  { %12376 = vmatpush3.bf16.msra.mxu1 %v14666_v46  ;;  %12549 = vmatprep.subr.bf16.mxu0 %v17161_v49 }
  0xee   :  { %12378 = vmatprep.subr.bf16.mxu1 %v14697_v45  ;;  %v170_v60 = vrot.slane %v165_v37, %v169_v25 }
  0xf3   :  { %10595 = vmatmul.mubr.f32.vlgmr.msra.gmra.mrb[8].mxu0 %v17348_v30 }
  0xf4   :  { %12551 = vmatpush3.bf16.xpose.msra.mxu0 %v14874_v51  ;;  %10605 = vmatprep.mubr.msk.f32.mxu0 %vm13910_vm1, %v17348_v30 }
  0xf5   :  { %12552 = vmatprep.subr.bf16.mxu0 %v17161_v49 }
  0xfc   :  { %12554 = vmatpush3.bf16.xpose.msra.mxu0 %v14891_v55 }
  0xfd   :  { %12555 = vmatprep.subr.bf16.mxu0 %v17161_v49 }
 0x103   :  { %10606 = vmatmul.mubr.f32.vlgmr.msra.gmra.mrb[8].mxu0 %v17348_v30 }
 0x104   :  { %12557 = vmatpush3.bf16.xpose.msra.mxu0 %v14690_v38  ;;  %10616 = vmatprep.mubr.msk.f32.mxu0 %vm13910_vm1, %v17348_v30 }
 0x105   :  { %12558 = vmatprep.subr.bf16.mxu0 %v17161_v49 }
 0x10c   :  { %12560 = vmatpush3.bf16.xpose.msra.mxu0 %v14739_v48 }
 0x10d   :  { %12561 = vmatprep.subr.bf16.mxu0 %v17161_v49  ;;  %v1164_v49 = vsub.s32 3, %v14911_v54 }
 0x113   :  { %10617 = vmatmul.mubr.f32.vlgmr.msra.gmra.mrb[8].mxu0 %v17348_v30 }
 0x114   :  { %12563 = vmatpush3.bf16.xpose.msra.mxu0 %v14936_v34  ;;  %10627 = vmatprep.mubr.msk.f32.mxu0 %vm13910_vm1, %v17348_v30  ;;  %v173_v34 = vsub.s32 1, %v14911_v54 }
 0x196   :  { %v697_v61 = vpop.f32.mrb[0].mxu1 }
 0x197   :  { %v1138_v57 = vpop.f32.mrb[0].mxu0  ;;  %v13545_v6 = vadd.f32 %v697_v61, %v170_v60  ;;  %v699_v5 = vpop.f32.mrb[1].mxu1 }
 0x198   :  { %v1140_v4 = vpop.f32.mrb[1].mxu0  ;;  %v1161_v5 = vld [vmem:[%s17396_s18] sm:$0xf] }
 0x199   :  { %v14938_v55 = vadd.f32 %v13545_v6, %v1138_v57  ;;  %v17397_v6 = vmov 0.0|0.0   ;;  %v1203_v13 = vrot.slane %v1161_v5, %v169_v25  ;;  %v1165_v61 = vrot.slane %v1161_v5, %v1164_v49 }
 0x19a   :  { %v704_v51 = vpop.f32.mrb[2].mxu1  ;;  %12564 = vmatprep.subr.bf16.mxu0 %v17397_v6  ;;  %v17399_v49 = vand.u32 4294901760, %v14803_v31  ;;  %v1231_v33 = vrot.slane %v1161_v5, %v173_v34 }
 0x19b   :  { %v1144_v41 = vpop.f32.mrb[2].mxu0  ;;  %v13547_v27 = vadd.f32 %v704_v51, %v170_v60  ;;  %v706_v52 = vpop.f32.mrb[3].mxu1  ;;  %v1175_v22 = vrot.slane %v14938_v55, 4  ;;  %v1258_v51 = vsub.s32 2, %v14911_v54  ;;  %v1166_v26 = vmul.f32 %v14938_v55, %v1165_v61 }
 0x19c   :  { %v1146_v59 = vpop.f32.mrb[3].mxu0  ;;  %v1172_v52 = vadd.s32 8, %v14911_v54 }
 0x19d   :  { %v13548_v57 = vadd.f32 %v13547_v27, %v1144_v41  ;;  %v174_v59 = vrot.slane %v165_v37, %v173_v34  ;;  %v17398_v41 = vand.u32 4294901760, %v14801_v1 }
 0x19e   :  { %v711_v4 = vpop.f32.mrb[4].mxu1  ;;  %vm1185_vm3 = vcmp.ge.s32.totalorder %v1172_v52, 12 }
 0x19f   :  { %v1150_v21 = vpop.f32.mrb[4].mxu0  ;;  %v1176_v9 = vrot.slane %v13548_v57, 4  ;;  %v13549_v53 = vadd.f32 %v711_v4, %v170_v60  ;;  %v713_v2 = vpop.f32.mrb[5].mxu1  ;;  %v14958_v25 = vpack.c.bf16 %v17399_v49, %v17398_v41  ;;  %v1204_v4 = vmul.f32 0.0, %v1203_v13 }
 0x1a0   :  { %v1152_v63 = vpop.f32.mrb[5].mxu0  ;;  %v1259_v41 = vrot.slane %v1161_v5, %v1258_v51  ;;  %v1234_v20 = vmul.f32 %v13548_v57, %v1231_v33  ;;  %v1167_v5 = vmul.f32 %v13548_v57, %v1165_v61 }
 0x1a1   :  { %17400 = vst [vmem:[#allocation39_spill] sm:$0xff] %v14958_v25  ;;  %v1182_v27 = vsel %vm1179_vm2, %v1175_v22, %v1176_v9  ;;  %v13550_v8 = vadd.f32 %v13549_v53, %v1150_v21  ;;  %12566 = vmatpush3.bf16.xpose.msra.mxu0 %v14958_v25  ;;  %v1232_v21 = vmul.f32 0.0, %v1231_v33  ;;  %v1208_v34 = vadd.f32 %v1204_v4, %v1166_v26 }
 0x1a2   :  { %v1206_v2 = vmul.f32 %v1203_v13, %v1182_v27  ;;  %v718_v63 = vpop.f32.mrb[6].mxu1  ;;  %12567 = vmatprep.subr.bf16.mxu0 %v17397_v6 }
 0x1a3   :  { %v1156_v40 = vpop.f32.mrb[6].mxu0  ;;  %v1168_v37 = vmul.f32 %v13550_v8, %v1165_v61  ;;  %v1177_v16 = vrot.slane %v13550_v8, 4  ;;  %v13551_v1 = vadd.f32 %v718_v63, %v170_v60  ;;  %v720_v3 = vpop.f32.mrb[7].mxu1  ;;  %v1235_v51 = vmul.f32 %v13550_v8, %v1231_v33 }
 0x1a4   :  { %v1158_v31 = vpop.f32.mrb[7].mxu0  ;;  %v13553_v49 = vadd.f32 %v720_v3, %v174_v59  ;;  %v9462_v3 = vld [vmem:[%s17401_s19] ss:$0 sm:$0xff]  ;;  %v1236_v57 = vadd.f32 %v1232_v21, %v1208_v34 }
 0x1a5   :  { %v1210_v53 = vadd.f32 %v1206_v2, %v1168_v37  ;;  %v13552_v62 = vadd.f32 %v13551_v1, %v1156_v40  ;;  %v1181_v35 = vsel %vm1179_vm2, %v1176_v9, %v1177_v16 }
 0x1a6   :  { %v1207_v7 = vmul.f32 %v1203_v13, %v1181_v35  ;;  %v1262_v25 = vmul.f32 %v1259_v41, %v1181_v35  ;;  %v14967_v47 = vadd.f32 %v13553_v49, %v1158_v31 }
 0x1a7   :  { %v1169_v60 = vmul.f32 %v13552_v62, %v1165_v61  ;;  %v1178_v63 = vrot.slane %v13552_v62, 4  ;;  %v1238_v46 = vadd.f32 %v1234_v20, %v1210_v53 }
 0x1a8   :  { %10628 = vmatmul.mubr.f32.vlgmr.msra.gmra.mrb[8].mxu0 %v17348_v30 }
 0x1a9   :  { %v1180_v40 = vsel %vm1179_vm2, %v1177_v16, %v1178_v63  ;;  %v1183_v26 = vsel %vm1179_vm2, %v1178_v63, %v1175_v22  ;;  %v1211_v35 = vadd.f32 %v1207_v7, %v1169_v60  ;;  %v1266_v9 = vadd.f32 %v1262_v25, %v1238_v46  ;;  %12569 = vmatpush3.bf16.xpose.msra.mxu0 %v14690_v38 }
 0x1aa   :  { %v1197_v62 = vsel %vm1185_vm3, %v1183_v26, 0.0  ;;  %v1252_v59 = vsel %vm1240_vm4, %v1183_v26, 0.0  ;;  %v1263_v20 = vmul.f32 %v1259_v41, %v1180_v40  ;;  %10638 = vmatprep.mubr.msk.f32.mxu0 %vm13910_vm1, %v17348_v30  ;;  %12570 = vmatprep.subr.bf16.mxu0 %v17397_v6  ;;  %v1233_v46 = vmul.f32 %v14938_v55, %v1231_v33 }
 0x1ab   :  { %v1205_v8 = vmul.f32 %v1203_v13, %v1197_v62  ;;  %v1260_v61 = vmul.f32 %v1259_v41, %v1252_v59  ;;  %v1239_v16 = vadd.f32 %v1235_v51, %v1211_v35  ;;  %v1277_v4 = vadd.f32 %v9462_v3, %v1266_v9 }
 0x1ac   :  { %v1261_v25 = vmul.f32 %v1259_v41, %v1182_v27 }
 0x1ad   :  { %v1209_v7 = vadd.f32 %v1205_v8, %v1167_v5  ;;  %v1264_v22 = vadd.f32 %v1260_v61, %v1236_v57  ;;  %v9465_v54 = vmul.f32 -1.442695, %v1277_v4  ;;  %v1267_v52 = vadd.f32 %v1263_v20, %v1239_v16 }
 0x1af   :  { %v1237_v2 = vadd.f32 %v1233_v46, %v1209_v7  ;;  %v1275_v37 = vadd.f32 %v9462_v3, %v1264_v22  ;;  %13762 = vpow2.f32 %v9465_v54  ;;  %v1278_v1 = vadd.f32 %v9462_v3, %v1267_v52 }
 0x1b1   :  { %v1265_v31 = vadd.f32 %v1261_v25, %v1237_v2  ;;  %v9463_v49 = vmul.f32 -1.442695, %v1275_v37  ;;  %v9466_v21 = vmul.f32 -1.442695, %v1278_v1  ;;  %12572 = vmatpush3.bf16.xpose.msra.mxu0 %v14739_v48 }
 0x1b2   :  { %12609 = vmatprep.subr.bf16.mxu0 %v17397_v6 }
 0x1b3   :  { %v1276_v13 = vadd.f32 %v9462_v3, %v1265_v31  ;;  %13764 = vpow2.f32 %v9463_v49 }
 0x1b4   :  { %13766 = vpow2.f32 %v9466_v21 }
 0x1b5   :  { %v9464_v33 = vmul.f32 -1.442695, %v1276_v13 }
 0x1b7   :  { %13768 = vpow2.f32 %v9464_v33 }
 0x1b8   :  { %10639 = vmatmul.mubr.f32.vlgmr.msra.gmra.mrb[8].mxu0 %v17348_v30 }
 0x1b9   :  { %v13763_v55 = vpop.eup %13762  ;;  %12611 = vmatpush3.bf16.xpose.msra.mxu0 %v14690_v38  ;;  %10715 = vmatprep.mubr.msk.f32.mxu0 %vm13910_vm1, %v17348_v30 }
 0x1ba   :  { %v1293_v27 = vadd.f32 1.0, %v13763_v55  ;;  %12612 = vmatprep.subr.bf16.mxu0 %v17397_v6  ;;  %v17415_v55 = vld [vmem:[#allocation24_spill] sm:$0xff] }
 0x1bc   :  { %13770 = vrcp.f32 %v1293_v27  ;;  %v17416_v27 = vand.u32 4294901760, %v17415_v55 }
 0x1bd   :  { %v13765_v41 = vpop.eup %13764 }
 0x1be   :  { %v13767_v53 = vpop.eup %13766  ;;  %v1291_v34 = vadd.f32 1.0, %v13765_v41  ;;  %v17417_v41 = vld [vmem:[#allocation25_spill] sm:$0xff] }
 0x1bf   :  { %v1294_v60 = vadd.f32 1.0, %v13767_v53  ;;  %v17418_v53 = vand.u32 4294901760, %v17417_v41 }
 0x1c0   :  { %13772 = vrcp.f32 %v1291_v34 }
 0x1c1   :  { %v13769_v63 = vpop.eup %13768  ;;  %13774 = vrcp.f32 %v1294_v60  ;;  %12614 = vmatpush3.bf16.xpose.msra.mxu0 %v14739_v48  ;;  %v12485_v34 = vpack.c.bf16 %v17418_v53, %v17416_v27  ;;  %v17419_v60 = vld [vmem:[#allocation26_spill] sm:$0xff] }
 0x1c2   :  { %v1292_v5 = vadd.f32 1.0, %v13769_v63  ;;  %12615 = vmatprep.subr.bf16.mxu0 %v17397_v6  ;;  %v17420_v63 = vand.u32 4294901760, %v17419_v60 }
 0x1c4   :  { %13776 = vrcp.f32 %v1292_v5  ;;  %v17421_v5 = vld [vmem:[#allocation29_spill] sm:$0xff] }
 0x1c6   :  { %v13771_v51 = vpop.eup %13770 }
 0x1c7   :  { %v1305_v3 = vmul.f32 %v13771_v51, %v1277_v4  ;;  %v17422_v51 = vand.u32 4294901760, %v17421_v5 }
 0x1c9   :  { %v14993_v26 = vand.u32 4294901760, %v1305_v3 }
 0x1ca   :  { %v13773_v40 = vpop.eup %13772 }
 0x1cb   :  { %v13775_v35 = vpop.eup %13774  ;;  %v1303_v9 = vmul.f32 %v13773_v40, %v1275_v37  ;;  %v15000_v57 = vsub.f32 %v1305_v3, %v14993_v26  ;;  %v12489_v3 = vpack.c.bf16 %v17422_v51, %v17420_v63  ;;  %v17423_v40 = vld [vmem:[#allocation27_spill] sm:$0xff] }
 0x1cc   :  { %v14995_v62 = vmul.f32 %v13775_v35, %v1278_v1  ;;  %v17424_v35 = vand.u32 4294901760, %v17423_v40 }
 0x1cd   :  { %v14997_v59 = vand.u32 4294901760, %v1303_v9  ;;  %v1433_v22 = vand.u32 4294901760, %v15000_v57 }
 0x1ce   :  { %v13777_v20 = vpop.eup %13776  ;;  %v15003_v8 = vand.u32 4294901760, %v14995_v62 }
 0x1cf   :  { %v15006_v61 = vsub.f32 %v1303_v9, %v14997_v59  ;;  %v1304_v16 = vmul.f32 %v13777_v20, %v1276_v13  ;;  %v1434_v1 = vsub.f32 %v15000_v57, %v1433_v22  ;;  %v17425_v9 = vld [vmem:[#allocation28_spill] sm:$0xff] }
 0x1d0   :  { %v15013_v7 = vsub.f32 %v14995_v62, %v15003_v8  ;;  %v17426_v20 = vand.u32 4294901760, %v17425_v9 }
 0x1d1   :  { %v1413_v4 = vand.u32 4294901760, %v15006_v61  ;;  %v15009_v46 = vand.u32 4294901760, %v1304_v16  ;;  %v1435_v13 = vand.u32 4294901760, %v1434_v1  ;;  %v15165_v1 = vld [vmem:[%s17098_s8] ss:$0 sm:$0xff] }
 0x1d2   :  { %v1443_v37 = vand.u32 4294901760, %v15013_v7 }
 0x1d3   :  { %v1414_v54 = vsub.f32 %v15006_v61, %v1413_v4  ;;  %v15018_v52 = vsub.f32 %v1304_v16, %v15009_v46 }
 0x1d4   :  { %v1444_v21 = vsub.f32 %v15013_v7, %v1443_v37 }
 0x1d5   :  { %v1415_v25 = vand.u32 4294901760, %v1414_v54  ;;  %v1423_v2 = vand.u32 4294901760, %v15018_v52  ;;  %v17431_v54 = vld [vmem:[#allocation33_spill] sm:$0xff] }
 0x1d6   :  { %v1445_v33 = vand.u32 4294901760, %v1444_v21 }
 0x1d7   :  { %10379 = vmatprep.mubr.f32.mxu1 %v1415_v25  ;;  %v1424_v31 = vsub.f32 %v15018_v52, %v1423_v2  ;;  %v17433_v25 = vld [vmem:[#allocation34_spill] sm:$0xff] }
 0x1d9   :  { %v1425_v49 = vand.u32 4294901760, %v1424_v31 }
 0x1db   :  { %10380 = vmatmul.mubr.f32.vlgmr.msra.gmra.mrb[8].mxu1 %v1425_v49 }
 0x1dc   :  { %12380 = vmatpush3.bf16.msra.mxu1 %v14697_v45  ;;  %10382 = vmatprep.mubr.f32.mxu1 %v1435_v13  ;;  %v17403_v45 = vld [vmem:[#allocation17_spill] sm:$0xff] }
 0x1dd   :  { %12382 = vmatprep.subr.bf16.mxu1 %v14727_v42 }
 0x1df   :  { %10383 = vmatmul.mubr.f32.gmra.mrb[10].mxu1 %v1445_v33 }
 0x1e0   :  { %12384 = vmatpush3.bf16.msra.mxu1 %v14727_v42  ;;  %10417 = vmatprep.mubr.f32.mxu1 %v14997_v59  ;;  %v17404_v42 = vand.u32 4294901760, %v17403_v45 }
 0x1e1   :  { %12386 = vmatprep.subr.bf16.mxu1 %v14748_v36 }
 0x1e4   :  { %12388 = vmatpush3.bf16.msra.mxu1 %v14748_v36  ;;  %v17405_v36 = vld [vmem:[#allocation18_spill] sm:$0xff] }
 0x1e5   :  { %12390 = vmatprep.subr.bf16.mxu1 %v14788_v43 }
 0x1e8   :  { %12392 = vmatpush3.bf16.msra.mxu1 %v14788_v43  ;;  %v17406_v43 = vand.u32 4294901760, %v17405_v36 }
 0x1e9   :  { %12394 = vmatprep.subr.bf16.mxu1 %v14806_v11 }
 0x1ec   :  { %12396 = vmatpush3.bf16.msra.mxu1 %v14806_v11  ;;  %v12473_v11 = vpack.c.bf16 %v17406_v43, %v17404_v42  ;;  %v17436_v43 = vld [vmem:[#allocation30_spill] sm:$0xff] }
 0x1ed   :  { %12398 = vmatprep.subr.bf16.mxu1 %v14854_v12 }
 0x1f0   :  { %12400 = vmatpush3.bf16.msra.mxu1 %v14854_v12 }
 0x1f1   :  { %12402 = vmatprep.subr.bf16.mxu1 %v14860_v58 }
 0x1f4   :  { %12404 = vmatpush3.bf16.msra.mxu1 %v14860_v58  ;;  %v17402_v58 = vld [vmem:[#allocation19_spill] sm:$0xff] }
 0x1f5   :  { %12406 = vmatprep.subr.bf16.mxu1 %v14870_v0 }
 0x1f8   :  { %12408 = vmatpush3.bf16.msra.mxu1 %v14870_v0  ;;  %v17409_v0 = vld [vmem:[#allocation23_spill] sm:$0xff] }
 0x1f9   :  { %12410 = vmatprep.subr.bf16.mxu1 %v14879_v24 }
 0x1fb   :  { %10418 = vmatmul.mubr.f32.vlgmr.msra.gmra.mrb[8].mxu1 %v15009_v46 }
 0x1fc   :  { %10420 = vmatprep.mubr.f32.mxu1 %v14993_v26  ;;  %12412 = vmatpush3.bf16.msra.mxu1 %v14879_v24  ;;  %v17410_v24 = vand.u32 4294901760, %v17409_v0  ;;  %v17440_v0 = vld [vmem:[#allocation38_spill] sm:$0xff] }
 0x1fd   :  { %12414 = vmatprep.subr.bf16.mxu1 %v14887_v17 }
 0x1ff   :  { %10421 = vmatmul.mubr.f32.gmra.mrb[10].mxu1 %v15003_v8 }
 0x200   :  { %12416 = vmatpush3.bf16.msra.mxu1 %v14887_v17  ;;  %10455 = vmatprep.mubr.f32.mxu1 %v15006_v61  ;;  %v17427_v61 = vld [vmem:[#allocation31_spill] sm:$0xff] }
 0x201   :  { %12418 = vmatprep.subr.bf16.mxu1 %v14895_v10  ;;  %v17428_v16 = vand.u32 4294901760, %v17427_v61 }
 0x204   :  { %12420 = vmatpush3.bf16.msra.mxu1 %v14895_v10  ;;  %v17411_v10 = vld [vmem:[#allocation20_spill] sm:$0xff] }
 0x205   :  { %12422 = vmatprep.subr.bf16.mxu1 %v14901_v56 }
 0x208   :  { %12424 = vmatpush3.bf16.msra.mxu1 %v14901_v56  ;;  %v17412_v56 = vand.u32 4294901760, %v17411_v10 }
 0x209   :  { %12426 = vmatprep.subr.bf16.mxu1 %v14905_v50 }
 0x20c   :  { %12428 = vmatpush3.bf16.msra.mxu1 %v14905_v50  ;;  %v17413_v50 = vld [vmem:[#allocation21_spill] sm:$0xff] }
 0x20d   :  { %12430 = vmatprep.subr.bf16.mxu1 %v14916_v23 }
 0x210   :  { %12432 = vmatpush3.bf16.msra.mxu1 %v14916_v23  ;;  %v17414_v23 = vand.u32 4294901760, %v17413_v50 }
 0x211   :  { %12434 = vmatprep.subr.bf16.mxu1 %v14924_v39 }
 0x214   :  { %12436 = vmatpush3.bf16.msra.mxu1 %v14924_v39  ;;  %v12481_v39 = vpack.c.bf16 %v17414_v23, %v17412_v56 }
 0x215   :  { %12438 = vmatprep.subr.bf16.mxu1 %v14930_v18 }
 0x218   :  { %12440 = vmatpush3.bf16.msra.mxu1 %v14930_v18  ;;  %v17407_v18 = vld [vmem:[#allocation22_spill] sm:$0xff] }
 0x219   :  { %12442 = vmatprep.subr.bf16.mxu1 %v14531_v32  ;;  %v17408_v12 = vand.u32 4294901760, %v17407_v18  ;;  %v17438_v18 = vld [vmem:[#allocation36_spill] sm:$0xff] }
 0x21b   :  { %10456 = vmatmul.mubr.f32.vlgmr.msra.gmra.mrb[8].mxu1 %v15018_v52  ;;  %v12477_v17 = vpack.c.bf16 %v17410_v24, %v17408_v12  ;;  %v17432_v52 = vand.u32 4294901760, %v17431_v54  ;;  %v17439_v12 = vld [vmem:[#allocation37_spill] sm:$0xff]  ;;  %v17441_v24 = vld [vmem:[#allocation39_spill] sm:$0xff] }
 0x21c   :  { %10458 = vmatprep.mubr.f32.mxu1 %v15000_v57  ;;  %12444 = vmatpush3.bf16.msra.mxu1 %v14531_v32  ;;  %v12493_v57 = vpack.c.bf16 %v17426_v20, %v17424_v35 }
 0x21d   :  { %12446 = vmatprep.subr.bf16.mxu1 %v14547_v44 }
 0x21f   :  { %10459 = vmatmul.mubr.f32.gmra.mrb[10].mxu1 %v15013_v7 }
 0x220   :  { %12448 = vmatpush3.bf16.msra.mxu1 %v14547_v44  ;;  %10493 = vmatprep.mubr.f32.mxu1 %v1413_v4  ;;  %v17429_v4 = vld [vmem:[#allocation32_spill] sm:$0xff] }
 0x221   :  { %12450 = vmatprep.subr.bf16.mxu1 %v14567_v28  ;;  %v17430_v7 = vand.u32 4294901760, %v17429_v4 }
 0x224   :  { %12452 = vmatpush3.bf16.msra.mxu1 %v14567_v28 }
 0x225   :  { %12454 = vmatprep.subr.bf16.mxu1 %v14602_v15 }
 0x228   :  { %12456 = vmatpush3.bf16.msra.mxu1 %v14602_v15 }
 0x229   :  { %12458 = vmatprep.subr.bf16.mxu1 %v14628_v19 }
 0x22c   :  { %12460 = vmatpush3.bf16.msra.mxu1 %v14628_v19 }
 0x22d   :  { %12462 = vmatprep.subr.bf16.mxu1 %v14636_v14 }
 0x230   :  { %12464 = vmatpush3.bf16.msra.mxu1 %v14636_v14 }
 0x231   :  { %12466 = vmatprep.subr.bf16.mxu1 %v14656_v29 }
 0x234   :  { %12468 = vmatpush3.bf16.msra.mxu1 %v14656_v29 }
 0x235   :  { %12470 = vmatprep.subr.bf16.mxu1 %v17402_v58 }
 0x238   :  { %12472 = vmatpush3.bf16.msra.mxu1 %v17402_v58 }
 0x239   :  { %12474 = vmatprep.subr.bf16.mxu1 %v12473_v11 }
 0x23b   :  { %10494 = vmatmul.mubr.f32.vlgmr.msra.gmra.mrb[8].mxu1 %v1423_v2  ;;  %v17434_v2 = vand.u32 4294901760, %v17433_v25 }
 0x23c   :  { %10496 = vmatprep.mubr.f32.mxu1 %v1433_v22  ;;  %12476 = vmatpush3.bf16.msra.mxu1 %v12473_v11  ;;  %v12497_v22 = vpack.c.bf16 %v17430_v7, %v17428_v16  ;;  %v17437_v11 = vld [vmem:[#allocation35_spill] sm:$0xff] }
 0x23d   :  { %12478 = vmatprep.subr.bf16.mxu1 %v12477_v17 }
 0x23f   :  { %10497 = vmatmul.mubr.f32.gmra.mrb[10].mxu1 %v1443_v37  ;;  %v12501_v37 = vpack.c.bf16 %v17434_v2, %v17432_v52 }
 0x240   :  { %12480 = vmatpush3.bf16.msra.mxu1 %v12477_v17  ;;  %10531 = vmatprep.mubr.f32.mxu1 %v14997_v59 }
 0x241   :  { %12482 = vmatprep.subr.bf16.mxu1 %v12481_v39 }
 0x244   :  { %12484 = vmatpush3.bf16.msra.mxu1 %v12481_v39 }
 0x245   :  { %12486 = vmatprep.subr.bf16.mxu1 %v12485_v34 }
 0x248   :  { %12488 = vmatpush3.bf16.msra.mxu1 %v12485_v34 }
 0x249   :  { %12490 = vmatprep.subr.bf16.mxu1 %v12489_v3 }
 0x24c   :  { %12492 = vmatpush3.bf16.msra.mxu1 %v12489_v3 }
 0x24d   :  { %12494 = vmatprep.subr.bf16.mxu1 %v12493_v57 }
 0x250   :  { %12496 = vmatpush3.bf16.msra.mxu1 %v12493_v57 }
 0x251   :  { %12498 = vmatprep.subr.bf16.mxu1 %v12497_v22 }
 0x254   :  { %12500 = vmatpush3.bf16.msra.mxu1 %v12497_v22 }
 0x255   :  { %12502 = vmatprep.subr.bf16.mxu1 %v12501_v37 }
 0x258   :  { %12504 = vmatpush3.bf16.msra.mxu1 %v12501_v37 }
 0x259   :  { %12506 = vmatprep.subr.bf16.mxu1 %v14531_v32 }
 0x25b   :  { %10532 = vmatmul.mubr.f32.vlgmr.msra.gmra.mrb[8].mxu1 %v15009_v46 }
 0x25c   :  { %10534 = vmatprep.mubr.f32.mxu1 %v14993_v26  ;;  %12508 = vmatpush3.bf16.msra.mxu1 %v14531_v32 }
 0x25d   :  { %12510 = vmatprep.subr.bf16.mxu1 %v14547_v44 }
 0x25f   :  { %10535 = vmatmul.mubr.f32.gmra.mrb[10].mxu1 %v15003_v8 }
 0x260   :  { %12512 = vmatpush3.bf16.msra.mxu1 %v14547_v44  ;;  %10569 = vmatprep.mubr.f32.mxu1 %v14997_v59 }
 0x261   :  { %12514 = vmatprep.subr.bf16.mxu1 %v14567_v28 }
 0x264   :  { %12516 = vmatpush3.bf16.msra.mxu1 %v14567_v28  ;;  %v9467_v28 = vld [vmem:[%s17435_s24] ss:$0 sm:$0xff] }
 0x265   :  { %12518 = vmatprep.subr.bf16.mxu1 %v14602_v15 }
 0x268   :  { %12520 = vmatpush3.bf16.msra.mxu1 %v14602_v15 }
 0x269   :  { %12522 = vmatprep.subr.bf16.mxu1 %v14628_v19 }
 0x26c   :  { %12524 = vmatpush3.bf16.msra.mxu1 %v14628_v19 }
 0x26d   :  { %12526 = vmatprep.subr.bf16.mxu1 %v14636_v14 }
 0x270   :  { %12528 = vmatpush3.bf16.msra.mxu1 %v14636_v14 }
 0x271   :  { %12530 = vmatprep.subr.bf16.mxu1 %v14656_v29 }
 0x274   :  { %12532 = vmatpush3.bf16.msra.mxu1 %v14656_v29 }
 0x275   :  { %12534 = vmatprep.subr.bf16.mxu1 %v17402_v58 }
 0x278   :  { %12536 = vmatpush3.bf16.msra.mxu1 %v17402_v58 }
 0x279   :  { %12573 = vmatprep.subr.bf16.mxu1 %v17397_v6 }
 0x27b   :  { %10570 = vmatmul.mubr.f32.vlgmr.msra.gmra.mrb[8].mxu1 %v15009_v46 }
 0x27c   :  { %10572 = vmatprep.mubr.f32.mxu1 %v14993_v26 }
 0x27f   :  { %10573 = vmatmul.mubr.f32.gmra.mrb[10].mxu1 %v15003_v8 }
 0x280   :  { %10649 = vmatprep.mubr.msk.f32.mxu1 %vm13910_vm1, %v17348_v30 }
 0x281   :  { %12575 = vmatpush3.bf16.xpose.msra.mxu1 %v14690_v38 }
 0x282   :  { %12576 = vmatprep.subr.bf16.mxu1 %v17397_v6 }
 0x289   :  { %12578 = vmatpush3.bf16.xpose.msra.mxu1 %v14739_v48 }
 0x28a   :  { %12579 = vmatprep.subr.bf16.mxu1 %v17397_v6 }
 0x28b   :  { %v2614_v32 = vpop.f32.mrb[8].mxu0 }
 0x28c   :  { %v10640_v44 = vpop.f32.mrb[9].mxu0 }
 0x34e   :  { %v10571_v15 = vpop.f32.mrb[8].mxu1 }
 0x34f   :  { %v13555_v19 = vadd.f32 %v10571_v15, %v9467_v28  ;;  %v2078_v14 = vpop.f32.mrb[9].mxu1 }
 0x350   :  { %v13556_v29 = vadd.f32 %v9467_v28, %v2078_v14 }
 0x351   :  { %2102 = vst.msk [vmem:[#allocation2 + $0x8] sm:$0xff] %vm2100_vm0, %v13555_v19 }
 0x352   :  { %2101 = vst.msk [vmem:[#allocation2] sm:$0xff] %vm2100_vm0, %v13556_v29  ;;  %v10574_v26 = vpop.f32.mrb[10].mxu1 }
 0x353   :  { %v13557_v59 = vadd.f32 %v10574_v26, %v9467_v28  ;;  %v2090_v8 = vpop.f32.mrb[11].mxu1 }
 0x354   :  { %v13558_v46 = vadd.f32 %v9467_v28, %v2090_v8 }
 0x355   :  { %2104 = vst.msk [vmem:[#allocation2 + $0x18] sm:$0xff] %vm2100_vm0, %v13557_v59 }
 0x356   :  { %2103 = vst.msk [vmem:[#allocation2 + $0x10] sm:$0xff] %vm2100_vm0, %v13558_v46 }
 0x358   :  { %v3110_v60 = vld [vmem:[#allocation2 + $0x8] sm:$0xf]  ;;  %v3601_v16 = vld [vmem:[#allocation2 + $0xc] sm:$0xf] }
 0x359   :  { %v2110_v31 = vld [vmem:[#allocation2] sm:$0xf]  ;;  %v2619_v17 = vld [vmem:[#allocation2 + $0x4] sm:$0xf]  ;;  %v3111_v63 = vmul.f32 %v15165_v1, %v3110_v60  ;;  %v3602_v4 = vmul.f32 %v15165_v1, %v3601_v16 }
 0x35a   :  { %v2117_v49 = vmul.f32 %v15165_v1, %v2110_v31  ;;  %v2620_v10 = vmul.f32 %v15165_v1, %v2619_v17 }
 0x35c   :  { %v13559_v21 = vadd.f32 %v2614_v32, %v2117_v49 }
 0x35d   :  { %v4092_v28 = vld [vmem:[#allocation2 + $0x10] sm:$0xf] }
 0x35e   :  { %v2622_v13 = vsel %vm2100_vm0, %v13559_v21, 0  ;;  %v4093_v15 = vmul.f32 %v15165_v1, %v4092_v28  ;;  %v4583_v21 = vld [vmem:[#allocation2 + $0x14] sm:$0xf] }
 0x35f   :  { %v2693_v33 = vand.u32 4294901760, %v2622_v13 }
 0x361   :  { %v2694_v58 = vsub.f32 %v2622_v13, %v2693_v33  ;;  %v4584_v13 = vmul.f32 %v15165_v1, %v4583_v21 }
 0x363   :  { %v2695_v45 = vand.u32 4294901760, %v2694_v58 }
 0x365   :  { %v2696_v42 = vsub.f32 %v2694_v58, %v2695_v45 }
 0x367   :  { %v2697_v36 = vand.u32 4294901760, %v2696_v42 }
 0x369   :  { %10650 = vmatmul.mubr.f32.vlgmr.msra.gmra.mrb[12].mxu1 %v2697_v36 }
 0x36a   :  { %12581 = vmatpush3.bf16.xpose.msra.mxu1 %v17436_v43  ;;  %10660 = vmatprep.mubr.msk.f32.mxu1 %vm13910_vm1, %v17348_v30 }
 0x36b   :  { %12582 = vmatprep.subr.bf16.mxu1 %v17397_v6 }
 0x372   :  { %12584 = vmatpush3.bf16.xpose.msra.mxu1 %v17437_v11 }
 0x373   :  { %12585 = vmatprep.subr.bf16.mxu1 %v17397_v6 }
 0x379   :  { %10661 = vmatmul.mubr.f32.vlgmr.msra.gmra.mrb[12].mxu1 %v2693_v33 }
 0x37a   :  { %12587 = vmatpush3.bf16.xpose.msra.mxu1 %v17438_v18  ;;  %10671 = vmatprep.mubr.msk.f32.mxu1 %vm13910_vm1, %v17348_v30 }
 0x37b   :  { %12588 = vmatprep.subr.bf16.mxu1 %v17397_v6 }
 0x382   :  { %12590 = vmatpush3.bf16.xpose.msra.mxu1 %v17439_v12 }
 0x383   :  { %12591 = vmatprep.subr.bf16.mxu1 %v17397_v6 }
 0x389   :  { %10672 = vmatmul.mubr.f32.vlgmr.msra.gmra.mrb[12].mxu1 %v2694_v58 }
 0x38a   :  { %12593 = vmatpush3.bf16.xpose.msra.mxu1 %v14690_v38  ;;  %10682 = vmatprep.mubr.msk.f32.mxu1 %vm13910_vm1, %v17348_v30 }
 0x38b   :  { %12594 = vmatprep.subr.bf16.mxu1 %v17397_v6 }
 0x392   :  { %12596 = vmatpush3.bf16.xpose.msra.mxu1 %v14739_v48 }
 0x393   :  { %12597 = vmatprep.subr.bf16.mxu1 %v17397_v6 }
 0x399   :  { %10683 = vmatmul.mubr.f32.vlgmr.msra.gmra.mrb[12].mxu1 %v2695_v45 }
 0x39a   :  { %12599 = vmatpush3.bf16.xpose.msra.mxu1 %v17440_v0  ;;  %10693 = vmatprep.mubr.msk.f32.mxu1 %vm13910_vm1, %v17348_v30 }
 0x39b   :  { %12600 = vmatprep.subr.bf16.mxu1 %v17397_v6 }
 0x3a2   :  { %12602 = vmatpush3.bf16.xpose.msra.mxu1 %v17441_v24 }
 0x3a3   :  { %12603 = vmatprep.subr.bf16.mxu1 %v17397_v6 }
 0x3a9   :  { %10694 = vmatmul.mubr.f32.vlgmr.msra.gmra.mrb[12].mxu1 %v2693_v33 }
 0x3aa   :  { %12605 = vmatpush3.bf16.xpose.msra.mxu1 %v14690_v38  ;;  %10704 = vmatprep.mubr.msk.f32.mxu1 %vm13910_vm1, %v17348_v30 }
 0x3ab   :  { %12606 = vmatprep.subr.bf16.mxu1 %v17397_v6 }
 0x3b2   :  { %12608 = vmatpush3.bf16.xpose.msra.mxu1 %v14739_v48 }
 0x3b3   :  { %12645 = vmatprep.subr.bf16.mxu1 %v17397_v6 }
 0x3b9   :  { %10705 = vmatmul.mubr.f32.vlgmr.msra.gmra.mrb[12].mxu1 %v2693_v33 }
 0x3ba   :  { %12647 = vmatpush3.bf16.xpose.msra.mxu1 %v14690_v38  ;;  %10781 = vmatprep.mubr.msk.f32.mxu1 %vm13910_vm1, %v17348_v30 }
 0x3bb   :  { %12648 = vmatprep.subr.bf16.mxu1 %v17397_v6 }
 0x3c2   :  { %12650 = vmatpush3.bf16.xpose.msra.mxu1 %v14739_v48 }
 0x3c3   :  { %12651 = vmatprep.subr.bf16.mxu1 %v17397_v6 }
 0x48c   :  { %v3105_v56 = vpop.f32.mrb[12].mxu1 }
 0x48d   :  { %v13560_v50 = vadd.f32 %v3105_v56, %v2620_v10  ;;  %v10706_v23 = vpop.f32.mrb[13].mxu1 }
 0x48e   :  { %v5074_v23 = vld [vmem:[#allocation2 + $0x18] sm:$0xf] }
 0x48f   :  { %v3113_v39 = vsel %vm2100_vm0, %v13560_v50, 0 }
 0x490   :  { %v3184_v55 = vand.u32 4294901760, %v3113_v39 }
 0x492   :  { %v3185_v27 = vsub.f32 %v3113_v39, %v3184_v55  ;;  %v5075_v39 = vmul.f32 %v15165_v1, %v5074_v23  ;;  %v6101_v23 = vld [vmem:[%s17101_s11 + $0x70] sm:$0xff] }
 0x494   :  { %v3186_v41 = vand.u32 4294901760, %v3185_v27 }
 0x496   :  { %v3187_v53 = vsub.f32 %v3185_v27, %v3186_v41 }
 0x498   :  { %v3188_v34 = vand.u32 4294901760, %v3187_v53 }
 0x49a   :  { %10716 = vmatmul.mubr.f32.vlgmr.msra.gmra.mrb[10].mxu0 %v3188_v34 }
 0x49b   :  { %12617 = vmatpush3.bf16.xpose.msra.mxu0 %v17436_v43  ;;  %10726 = vmatprep.mubr.msk.f32.mxu0 %vm13910_vm1, %v17348_v30 }
 0x49c   :  { %12618 = vmatprep.subr.bf16.mxu0 %v17397_v6 }
 0x4a3   :  { %12620 = vmatpush3.bf16.xpose.msra.mxu0 %v17437_v11 }
 0x4a4   :  { %12621 = vmatprep.subr.bf16.mxu0 %v17397_v6 }
 0x4aa   :  { %10727 = vmatmul.mubr.f32.vlgmr.msra.gmra.mrb[10].mxu0 %v3184_v55 }
 0x4ab   :  { %12623 = vmatpush3.bf16.xpose.msra.mxu0 %v17438_v18  ;;  %10737 = vmatprep.mubr.msk.f32.mxu0 %vm13910_vm1, %v17348_v30 }
 0x4ac   :  { %12624 = vmatprep.subr.bf16.mxu0 %v17397_v6 }
 0x4b3   :  { %12626 = vmatpush3.bf16.xpose.msra.mxu0 %v17439_v12 }
 0x4b4   :  { %12627 = vmatprep.subr.bf16.mxu0 %v17397_v6 }
 0x4ba   :  { %10738 = vmatmul.mubr.f32.vlgmr.msra.gmra.mrb[10].mxu0 %v3185_v27 }
 0x4bb   :  { %12629 = vmatpush3.bf16.xpose.msra.mxu0 %v14690_v38  ;;  %10748 = vmatprep.mubr.msk.f32.mxu0 %vm13910_vm1, %v17348_v30 }
 0x4bc   :  { %12630 = vmatprep.subr.bf16.mxu0 %v17397_v6 }
 0x4c3   :  { %12632 = vmatpush3.bf16.xpose.msra.mxu0 %v14739_v48 }
 0x4c4   :  { %12633 = vmatprep.subr.bf16.mxu0 %v17397_v6 }
 0x4ca   :  { %10749 = vmatmul.mubr.f32.vlgmr.msra.gmra.mrb[10].mxu0 %v3186_v41 }
 0x4cb   :  { %12635 = vmatpush3.bf16.xpose.msra.mxu0 %v17440_v0  ;;  %10759 = vmatprep.mubr.msk.f32.mxu0 %vm13910_vm1, %v17348_v30 }
 0x4cc   :  { %12636 = vmatprep.subr.bf16.mxu0 %v17397_v6 }
 0x4d3   :  { %12638 = vmatpush3.bf16.xpose.msra.mxu0 %v17441_v24 }
 0x4d4   :  { %12639 = vmatprep.subr.bf16.mxu0 %v17397_v6 }
 0x4da   :  { %10760 = vmatmul.mubr.f32.vlgmr.msra.gmra.mrb[10].mxu0 %v3184_v55 }
 0x4db   :  { %12641 = vmatpush3.bf16.xpose.msra.mxu0 %v14690_v38  ;;  %10770 = vmatprep.mubr.msk.f32.mxu0 %vm13910_vm1, %v17348_v30 }
 0x4dc   :  { %12642 = vmatprep.subr.bf16.mxu0 %v17397_v6 }
 0x4e3   :  { %12644 = vmatpush3.bf16.xpose.msra.mxu0 %v14739_v48 }
 0x4e4   :  { %12681 = vmatprep.subr.bf16.mxu0 %v17397_v6 }
 0x4ea   :  { %10771 = vmatmul.mubr.f32.vlgmr.msra.gmra.mrb[10].mxu0 %v3184_v55 }
 0x4eb   :  { %12683 = vmatpush3.bf16.xpose.msra.mxu0 %v14690_v38  ;;  %10847 = vmatprep.mubr.msk.f32.mxu0 %vm13910_vm1, %v17348_v30 }
 0x4ec   :  { %12684 = vmatprep.subr.bf16.mxu0 %v17397_v6 }
 0x4f3   :  { %12686 = vmatpush3.bf16.xpose.msra.mxu0 %v14739_v48 }
 0x4f4   :  { %12687 = vmatprep.subr.bf16.mxu0 %v17397_v6 }
 0x5bd   :  { %v3596_v5 = vpop.f32.mrb[10].mxu0 }
 0x5be   :  { %v13561_v51 = vadd.f32 %v3596_v5, %v3111_v63  ;;  %v10772_v3 = vpop.f32.mrb[11].mxu0 }
 0x5bf   :  { %v6092_v3 = vld [vmem:[%s17101_s11 + $0x28] sm:$0xff] }
 0x5c0   :  { %v3604_v40 = vsel %vm2100_vm0, %v13561_v51, 0 }
 0x5c1   :  { %v3675_v35 = vand.u32 4294901760, %v3604_v40 }
 0x5c3   :  { %v3676_v9 = vsub.f32 %v3604_v40, %v3675_v35 }
 0x5c5   :  { %v3677_v20 = vand.u32 4294901760, %v3676_v9 }
 0x5c7   :  { %v3678_v57 = vsub.f32 %v3676_v9, %v3677_v20 }
 0x5c9   :  { %v3679_v61 = vand.u32 4294901760, %v3678_v57 }
 0x5cb   :  { %10782 = vmatmul.mubr.f32.vlgmr.msra.gmra.mrb[14].mxu1 %v3679_v61 }
 0x5cc   :  { %12653 = vmatpush3.bf16.xpose.msra.mxu1 %v17436_v43  ;;  %10792 = vmatprep.mubr.msk.f32.mxu1 %vm13910_vm1, %v17348_v30 }
 0x5cd   :  { %12654 = vmatprep.subr.bf16.mxu1 %v17397_v6 }
 0x5d4   :  { %12656 = vmatpush3.bf16.xpose.msra.mxu1 %v17437_v11 }
 0x5d5   :  { %12657 = vmatprep.subr.bf16.mxu1 %v17397_v6 }
 0x5db   :  { %10793 = vmatmul.mubr.f32.vlgmr.msra.gmra.mrb[14].mxu1 %v3675_v35 }
 0x5dc   :  { %12659 = vmatpush3.bf16.xpose.msra.mxu1 %v17438_v18  ;;  %10803 = vmatprep.mubr.msk.f32.mxu1 %vm13910_vm1, %v17348_v30 }
 0x5dd   :  { %12660 = vmatprep.subr.bf16.mxu1 %v17397_v6 }
 0x5e4   :  { %12662 = vmatpush3.bf16.xpose.msra.mxu1 %v17439_v12 }
 0x5e5   :  { %12663 = vmatprep.subr.bf16.mxu1 %v17397_v6 }
 0x5eb   :  { %10804 = vmatmul.mubr.f32.vlgmr.msra.gmra.mrb[14].mxu1 %v3676_v9  ;;  %v6129_v9 = vand.u32 4294901760, %v6092_v3 }
 0x5ec   :  { %12665 = vmatpush3.bf16.xpose.msra.mxu1 %v14690_v38  ;;  %10814 = vmatprep.mubr.msk.f32.mxu1 %vm13910_vm1, %v17348_v30 }
 0x5ed   :  { %12666 = vmatprep.subr.bf16.mxu1 %v17397_v6 }
 0x5f4   :  { %12668 = vmatpush3.bf16.xpose.msra.mxu1 %v14739_v48 }
 0x5f5   :  { %12669 = vmatprep.subr.bf16.mxu1 %v17397_v6 }
 0x5fb   :  { %10815 = vmatmul.mubr.f32.vlgmr.msra.gmra.mrb[14].mxu1 %v3677_v20 }
 0x5fc   :  { %12671 = vmatpush3.bf16.xpose.msra.mxu1 %v17440_v0  ;;  %10825 = vmatprep.mubr.msk.f32.mxu1 %vm13910_vm1, %v17348_v30 }
 0x5fd   :  { %12672 = vmatprep.subr.bf16.mxu1 %v17397_v6 }
 0x604   :  { %12674 = vmatpush3.bf16.xpose.msra.mxu1 %v17441_v24 }
 0x605   :  { %12675 = vmatprep.subr.bf16.mxu1 %v17397_v6 }
 0x60b   :  { %10826 = vmatmul.mubr.f32.vlgmr.msra.gmra.mrb[14].mxu1 %v3675_v35 }
 0x60c   :  { %12677 = vmatpush3.bf16.xpose.msra.mxu1 %v14690_v38  ;;  %10836 = vmatprep.mubr.msk.f32.mxu1 %vm13910_vm1, %v17348_v30 }
 0x60d   :  { %12678 = vmatprep.subr.bf16.mxu1 %v17397_v6 }
 0x614   :  { %12680 = vmatpush3.bf16.xpose.msra.mxu1 %v14739_v48 }
 0x615   :  { %12717 = vmatprep.subr.bf16.mxu1 %v17397_v6 }
 0x61b   :  { %10837 = vmatmul.mubr.f32.vlgmr.msra.gmra.mrb[14].mxu1 %v3675_v35 }
 0x61c   :  { %12719 = vmatpush3.bf16.xpose.msra.mxu1 %v14690_v38  ;;  %10913 = vmatprep.mubr.msk.f32.mxu1 %vm13910_vm1, %v17348_v30 }
 0x61d   :  { %12720 = vmatprep.subr.bf16.mxu1 %v17397_v6 }
 0x624   :  { %12722 = vmatpush3.bf16.xpose.msra.mxu1 %v14739_v48 }
 0x625   :  { %12723 = vmatprep.subr.bf16.mxu1 %v17397_v6 }
 0x6ee   :  { %v4087_v7 = vpop.f32.mrb[14].mxu1 }
 0x6ef   :  { %v13562_v22 = vadd.f32 %v4087_v7, %v3602_v4  ;;  %v10838_v54 = vpop.f32.mrb[15].mxu1 }
 0x6f0   :  { %v15458_v54 = vsub.f32 %v6092_v3, %v6129_v9 }
 0x6f1   :  { %v4095_v52 = vsel %vm2100_vm0, %v13562_v22, 0 }
 0x6f2   :  { %v4166_v25 = vand.u32 4294901760, %v4095_v52 }
 0x6f4   :  { %v4167_v2 = vsub.f32 %v4095_v52, %v4166_v25 }
 0x6f6   :  { %v4168_v37 = vand.u32 4294901760, %v4167_v2 }
 0x6f8   :  { %v4169_v32 = vsub.f32 %v4167_v2, %v4168_v37 }
 0x6fa   :  { %v4170_v44 = vand.u32 4294901760, %v4169_v32  ;;  %v9469_v32 = vld [vmem:[%s17099_s9] ss:$0 sm:$0xff] }
 0x6fc   :  { %10848 = vmatmul.mubr.f32.vlgmr.msra.gmra.mrb[12].mxu0 %v4170_v44 }
 0x6fd   :  { %12689 = vmatpush3.bf16.xpose.msra.mxu0 %v17436_v43  ;;  %10858 = vmatprep.mubr.msk.f32.mxu0 %vm13910_vm1, %v17348_v30 }
 0x6fe   :  { %12690 = vmatprep.subr.bf16.mxu0 %v17397_v6 }
 0x705   :  { %12692 = vmatpush3.bf16.xpose.msra.mxu0 %v17437_v11 }
 0x706   :  { %12693 = vmatprep.subr.bf16.mxu0 %v17397_v6 }
 0x70c   :  { %10859 = vmatmul.mubr.f32.vlgmr.msra.gmra.mrb[12].mxu0 %v4166_v25 }
 0x70d   :  { %12695 = vmatpush3.bf16.xpose.msra.mxu0 %v17438_v18  ;;  %10869 = vmatprep.mubr.msk.f32.mxu0 %vm13910_vm1, %v17348_v30 }
 0x70e   :  { %12696 = vmatprep.subr.bf16.mxu0 %v17397_v6 }
 0x715   :  { %12698 = vmatpush3.bf16.xpose.msra.mxu0 %v17439_v12 }
 0x716   :  { %12699 = vmatprep.subr.bf16.mxu0 %v17397_v6 }
 0x71c   :  { %10870 = vmatmul.mubr.f32.vlgmr.msra.gmra.mrb[12].mxu0 %v4167_v2 }
 0x71d   :  { %12701 = vmatpush3.bf16.xpose.msra.mxu0 %v14690_v38  ;;  %10880 = vmatprep.mubr.msk.f32.mxu0 %vm13910_vm1, %v17348_v30 }
 0x71e   :  { %12702 = vmatprep.subr.bf16.mxu0 %v17397_v6 }
 0x725   :  { %12704 = vmatpush3.bf16.xpose.msra.mxu0 %v14739_v48 }
 0x726   :  { %12705 = vmatprep.subr.bf16.mxu0 %v17397_v6 }
 0x72c   :  { %10881 = vmatmul.mubr.f32.vlgmr.msra.gmra.mrb[12].mxu0 %v4168_v37 }
 0x72d   :  { %12707 = vmatpush3.bf16.xpose.msra.mxu0 %v17440_v0  ;;  %10891 = vmatprep.mubr.msk.f32.mxu0 %vm13910_vm1, %v17348_v30 }
 0x72e   :  { %12708 = vmatprep.subr.bf16.mxu0 %v17397_v6 }
 0x735   :  { %12710 = vmatpush3.bf16.xpose.msra.mxu0 %v17441_v24 }
 0x736   :  { %12711 = vmatprep.subr.bf16.mxu0 %v17397_v6 }
 0x73c   :  { %10892 = vmatmul.mubr.f32.vlgmr.msra.gmra.mrb[12].mxu0 %v4166_v25 }
 0x73d   :  { %12713 = vmatpush3.bf16.xpose.msra.mxu0 %v14690_v38  ;;  %10902 = vmatprep.mubr.msk.f32.mxu0 %vm13910_vm1, %v17348_v30 }
 0x73e   :  { %12714 = vmatprep.subr.bf16.mxu0 %v17397_v6 }
 0x745   :  { %12716 = vmatpush3.bf16.xpose.msra.mxu0 %v14739_v48 }
 0x746   :  { %12753 = vmatprep.subr.bf16.mxu0 %v17397_v6 }
 0x74c   :  { %10903 = vmatmul.mubr.f32.vlgmr.msra.gmra.mrb[12].mxu0 %v4166_v25  ;;  %v5565_v25 = vld [vmem:[#allocation2 + $0x1c] sm:$0xf] }
 0x74d   :  { %12755 = vmatpush3.bf16.xpose.msra.mxu0 %v14690_v38  ;;  %10979 = vmatprep.mubr.msk.f32.mxu0 %vm13910_vm1, %v17348_v30  ;;  %v5566_v2 = vmul.f32 %v15165_v1, %v5565_v25 }
 0x74e   :  { %12756 = vmatprep.subr.bf16.mxu0 %v17397_v6 }
 0x755   :  { %12758 = vmatpush3.bf16.xpose.msra.mxu0 %v14739_v48 }
 0x756   :  { %12759 = vmatprep.subr.bf16.mxu0 %v17397_v6 }
 0x81f   :  { %v4578_v19 = vpop.f32.mrb[12].mxu0 }
 0x820   :  { %v13563_v14 = vadd.f32 %v4578_v19, %v4093_v15  ;;  %v10904_v29 = vpop.f32.mrb[13].mxu0 }
 0x821   :  { %v6094_v29 = vld [vmem:[%s17101_s11 + $0x38] sm:$0xff] }
 0x822   :  { %v4586_v26 = vsel %vm2100_vm0, %v13563_v14, 0  ;;  %v6093_v14 = vld [vmem:[%s17101_s11 + $0x30] sm:$0xff] }
 0x823   :  { %v4657_v59 = vand.u32 4294901760, %v4586_v26  ;;  %v6132_v1 = vand.u32 4294901760, %v6093_v14 }
 0x825   :  { %v4658_v8 = vsub.f32 %v4586_v26, %v4657_v59  ;;  %v6135_v26 = vand.u32 4294901760, %v6094_v29 }
 0x827   :  { %v4659_v46 = vand.u32 4294901760, %v4658_v8 }
 0x829   :  { %v4660_v31 = vsub.f32 %v4658_v8, %v4659_v46 }
 0x82b   :  { %v4661_v49 = vand.u32 4294901760, %v4660_v31 }
 0x82d   :  { %10914 = vmatmul.mubr.f32.vlgmr.msra.gmra.mrb[16].mxu1 %v4661_v49 }
 0x82e   :  { %12725 = vmatpush3.bf16.xpose.msra.mxu1 %v17436_v43  ;;  %10924 = vmatprep.mubr.msk.f32.mxu1 %vm13910_vm1, %v17348_v30 }
 0x82f   :  { %12726 = vmatprep.subr.bf16.mxu1 %v17397_v6 }
 0x836   :  { %12728 = vmatpush3.bf16.xpose.msra.mxu1 %v17437_v11 }
 0x837   :  { %12729 = vmatprep.subr.bf16.mxu1 %v17397_v6 }
 0x83d   :  { %10925 = vmatmul.mubr.f32.vlgmr.msra.gmra.mrb[16].mxu1 %v4657_v59 }
 0x83e   :  { %12731 = vmatpush3.bf16.xpose.msra.mxu1 %v17438_v18  ;;  %10935 = vmatprep.mubr.msk.f32.mxu1 %vm13910_vm1, %v17348_v30 }
 0x83f   :  { %12732 = vmatprep.subr.bf16.mxu1 %v17397_v6 }
 0x846   :  { %12734 = vmatpush3.bf16.xpose.msra.mxu1 %v17439_v12 }
 0x847   :  { %12735 = vmatprep.subr.bf16.mxu1 %v17397_v6 }
 0x84d   :  { %10936 = vmatmul.mubr.f32.vlgmr.msra.gmra.mrb[16].mxu1 %v4658_v8  ;;  %v6095_v8 = vld [vmem:[%s17101_s11 + $0x40] sm:$0xff] }
 0x84e   :  { %12737 = vmatpush3.bf16.xpose.msra.mxu1 %v14690_v38  ;;  %10946 = vmatprep.mubr.msk.f32.mxu1 %vm13910_vm1, %v17348_v30  ;;  %v6138_v31 = vand.u32 4294901760, %v6095_v8 }
 0x84f   :  { %12738 = vmatprep.subr.bf16.mxu1 %v17397_v6 }
 0x856   :  { %12740 = vmatpush3.bf16.xpose.msra.mxu1 %v14739_v48 }
 0x857   :  { %12741 = vmatprep.subr.bf16.mxu1 %v17397_v6 }
 0x85d   :  { %10947 = vmatmul.mubr.f32.vlgmr.msra.gmra.mrb[16].mxu1 %v4659_v46  ;;  %v6096_v46 = vld [vmem:[%s17101_s11 + $0x48] sm:$0xff] }
 0x85e   :  { %12743 = vmatpush3.bf16.xpose.msra.mxu1 %v17440_v0  ;;  %10957 = vmatprep.mubr.msk.f32.mxu1 %vm13910_vm1, %v17348_v30  ;;  %v6141_v49 = vand.u32 4294901760, %v6096_v46 }
 0x85f   :  { %12744 = vmatprep.subr.bf16.mxu1 %v17397_v6 }
 0x860   :  { %v15487_v21 = vpack.c.bf16 %v6141_v49, %v6138_v31 }
 0x866   :  { %12746 = vmatpush3.bf16.xpose.msra.mxu1 %v17441_v24 }
 0x867   :  { %12747 = vmatprep.subr.bf16.mxu1 %v17397_v6 }
 0x86d   :  { %10958 = vmatmul.mubr.f32.vlgmr.msra.gmra.mrb[16].mxu1 %v4657_v59 }
 0x86e   :  { %12749 = vmatpush3.bf16.xpose.msra.mxu1 %v14690_v38  ;;  %10968 = vmatprep.mubr.msk.f32.mxu1 %vm13910_vm1, %v17348_v30 }
 0x86f   :  { %12750 = vmatprep.subr.bf16.mxu1 %v17397_v6 }
 0x876   :  { %12752 = vmatpush3.bf16.xpose.msra.mxu1 %v14739_v48 }
 0x877   :  { %12789 = vmatprep.subr.bf16.mxu1 %v17397_v6 }
 0x87d   :  { %10969 = vmatmul.mubr.f32.vlgmr.msra.gmra.mrb[16].mxu1 %v4657_v59  ;;  %v15477_v59 = vpack.c.bf16 %v6135_v26, %v6132_v1 }
 0x87e   :  { %12791 = vmatpush3.bf16.xpose.msra.mxu1 %v14690_v38  ;;  %11045 = vmatprep.mubr.msk.f32.mxu1 %vm13910_vm1, %v17348_v30 }
 0x87f   :  { %12792 = vmatprep.subr.bf16.mxu1 %v17397_v6 }
 0x886   :  { %12794 = vmatpush3.bf16.xpose.msra.mxu1 %v14739_v48 }
 0x887   :  { %12795 = vmatprep.subr.bf16.mxu1 %v17397_v6 }
 0x950   :  { %v5069_v33 = vpop.f32.mrb[16].mxu1 }
 0x951   :  { %v13564_v58 = vadd.f32 %v5069_v33, %v4584_v13  ;;  %v10970_v45 = vpop.f32.mrb[17].mxu1  ;;  %v6097_v13 = vld [vmem:[%s17101_s11 + $0x50] sm:$0xff]  ;;  %v6098_v33 = vld [vmem:[%s17101_s11 + $0x58] sm:$0xff] }
 0x952   :  { %v6147_v45 = vand.u32 4294901760, %v6098_v33 }
 0x953   :  { %v5077_v42 = vsel %vm2100_vm0, %v13564_v58, 0  ;;  %v6144_v58 = vand.u32 4294901760, %v6097_v13 }
 0x954   :  { %v5148_v36 = vand.u32 4294901760, %v5077_v42 }
 0x956   :  { %v5149_v17 = vsub.f32 %v5077_v42, %v5148_v36  ;;  %v15497_v42 = vpack.c.bf16 %v6147_v45, %v6144_v58 }
 0x958   :  { %v5150_v10 = vand.u32 4294901760, %v5149_v17 }
 0x95a   :  { %v5151_v56 = vsub.f32 %v5149_v17, %v5150_v10 }
 0x95c   :  { %v5152_v50 = vand.u32 4294901760, %v5151_v56 }
 0x95e   :  { %10980 = vmatmul.mubr.f32.vlgmr.msra.gmra.mrb[14].mxu0 %v5152_v50 }
 0x95f   :  { %12761 = vmatpush3.bf16.xpose.msra.mxu0 %v17436_v43  ;;  %10990 = vmatprep.mubr.msk.f32.mxu0 %vm13910_vm1, %v17348_v30 }
 0x960   :  { %12762 = vmatprep.subr.bf16.mxu0 %v17397_v6 }
 0x967   :  { %12764 = vmatpush3.bf16.xpose.msra.mxu0 %v17437_v11 }
 0x968   :  { %12765 = vmatprep.subr.bf16.mxu0 %v17397_v6 }
 0x96e   :  { %10991 = vmatmul.mubr.f32.vlgmr.msra.gmra.mrb[14].mxu0 %v5148_v36 }
 0x96f   :  { %12767 = vmatpush3.bf16.xpose.msra.mxu0 %v17438_v18  ;;  %11001 = vmatprep.mubr.msk.f32.mxu0 %vm13910_vm1, %v17348_v30 }
 0x970   :  { %12768 = vmatprep.subr.bf16.mxu0 %v17397_v6 }
 0x977   :  { %12770 = vmatpush3.bf16.xpose.msra.mxu0 %v17439_v12 }
 0x978   :  { %12771 = vmatprep.subr.bf16.mxu0 %v17397_v6 }
 0x97e   :  { %11002 = vmatmul.mubr.f32.vlgmr.msra.gmra.mrb[14].mxu0 %v5149_v17  ;;  %v6100_v17 = vld [vmem:[%s17101_s11 + $0x68] sm:$0xff] }
 0x97f   :  { %12773 = vmatpush3.bf16.xpose.msra.mxu0 %v14690_v38  ;;  %11012 = vmatprep.mubr.msk.f32.mxu0 %vm13910_vm1, %v17348_v30  ;;  %v6153_v56 = vand.u32 4294901760, %v6100_v17 }
 0x980   :  { %12774 = vmatprep.subr.bf16.mxu0 %v17397_v6 }
 0x987   :  { %12776 = vmatpush3.bf16.xpose.msra.mxu0 %v14739_v48 }
 0x988   :  { %12777 = vmatprep.subr.bf16.mxu0 %v17397_v6 }
 0x98e   :  { %11013 = vmatmul.mubr.f32.vlgmr.msra.gmra.mrb[14].mxu0 %v5150_v10 }
 0x98f   :  { %12779 = vmatpush3.bf16.xpose.msra.mxu0 %v17440_v0  ;;  %11023 = vmatprep.mubr.msk.f32.mxu0 %vm13910_vm1, %v17348_v30 }
 0x990   :  { %12780 = vmatprep.subr.bf16.mxu0 %v17397_v6 }
 0x997   :  { %12782 = vmatpush3.bf16.xpose.msra.mxu0 %v17441_v24 }
 0x998   :  { %12783 = vmatprep.subr.bf16.mxu0 %v17397_v6 }
 0x99e   :  { %11024 = vmatmul.mubr.f32.vlgmr.msra.gmra.mrb[14].mxu0 %v5148_v36 }
 0x99f   :  { %12785 = vmatpush3.bf16.xpose.msra.mxu0 %v14690_v38  ;;  %11034 = vmatprep.mubr.msk.f32.mxu0 %vm13910_vm1, %v17348_v30 }
 0x9a0   :  { %12786 = vmatprep.subr.bf16.mxu0 %v17397_v6 }
 0x9a7   :  { %12788 = vmatpush3.bf16.xpose.msra.mxu0 %v14739_v48 }
 0x9a8   :  { %12825 = vmatprep.subr.bf16.mxu0 %v17397_v6 }
 0x9ae   :  { %11035 = vmatmul.mubr.f32.vlgmr.msra.gmra.mrb[14].mxu0 %v5148_v36  ;;  %v6099_v36 = vld [vmem:[%s17101_s11 + $0x60] sm:$0xff] }
 0x9af   :  { %11135 = vmatprep.mubr.msk.f32.mxu0 %vm13910_vm1, %v17348_v30  ;;  %v6150_v10 = vand.u32 4294901760, %v6099_v36 }
 0x9b1   :  { %v15507_v50 = vpack.c.bf16 %v6153_v56, %v6150_v10 }
 0xa81   :  { %v5560_v55 = vpop.f32.mrb[14].mxu0 }
 0xa82   :  { %v13565_v27 = vadd.f32 %v5560_v55, %v5075_v39  ;;  %v11036_v41 = vpop.f32.mrb[15].mxu0  ;;  %v6102_v39 = vld [vmem:[%s17101_s11 + $0x78] sm:$0xff]  ;;  %v15515_v55 = vsub.f32 %v6093_v14, %v6132_v1 }
 0xa83   :  { %v15519_v41 = vsub.f32 %v6095_v8, %v6138_v31 }
 0xa84   :  { %v5568_v53 = vsel %vm2100_vm0, %v13565_v27, 0  ;;  %v15517_v27 = vsub.f32 %v6094_v29, %v6135_v26  ;;  %v17202_v26 = vand.u32 4294901760, %v15515_v55 }
 0xa85   :  { %v5639_v34 = vand.u32 4294901760, %v5568_v53 }
 0xa86   :  { %v17199_v8 = vand.u32 4294901760, %v15517_v27  ;;  %v6250_v31 = vsub.f32 %v15515_v55, %v17202_v26 }
 0xa87   :  { %v5640_v60 = vsub.f32 %v5568_v53, %v5639_v34  ;;  %v15521_v53 = vsub.f32 %v6096_v46, %v6141_v49 }
 0xa88   :  { %v6257_v49 = vsub.f32 %v15517_v27, %v17199_v8 }
 0xa89   :  { %v5641_v63 = vand.u32 4294901760, %v5640_v60 }
 0xa8b   :  { %v5642_v5 = vsub.f32 %v5640_v60, %v5641_v63 }
 0xa8d   :  { %v5643_v51 = vand.u32 4294901760, %v5642_v5  ;;  %v15530_v5 = vsub.f32 %v6100_v17, %v6153_v56 }
 0xa8f   :  { %11046 = vmatmul.mubr.f32.vlgmr.msra.gmra.mrb[18].mxu1 %v5643_v51  ;;  %v6156_v51 = vand.u32 4294901760, %v6101_v23 }
 0xa90   :  { %12797 = vmatpush3.bf16.xpose.msra.mxu1 %v17436_v43  ;;  %11056 = vmatprep.mubr.msk.f32.mxu1 %vm13910_vm1, %v17348_v30  ;;  %v6087_v43 = vld [vmem:[%s17101_s11] sm:$0xff] }
 0xa91   :  { %12798 = vmatprep.subr.bf16.mxu1 %v17397_v6 }
 0xa98   :  { %12800 = vmatpush3.bf16.xpose.msra.mxu1 %v17437_v11  ;;  %v6089_v11 = vld [vmem:[%s17101_s11 + $0x10] sm:$0xff] }
 0xa99   :  { %12801 = vmatprep.subr.bf16.mxu1 %v17397_v6 }
 0xa9f   :  { %11057 = vmatmul.mubr.f32.vlgmr.msra.gmra.mrb[18].mxu1 %v5639_v34 }
 0xaa0   :  { %12803 = vmatpush3.bf16.xpose.msra.mxu1 %v17438_v18  ;;  %11067 = vmatprep.mubr.msk.f32.mxu1 %vm13910_vm1, %v17348_v30  ;;  %v6114_v18 = vand.u32 4294901760, %v6087_v43 }
 0xaa1   :  { %12804 = vmatprep.subr.bf16.mxu1 %v17397_v6 }
 0xaa2   :  { %v15445_v57 = vsub.f32 %v6087_v43, %v6114_v18  ;;  %v6159_v43 = vand.u32 4294901760, %v6102_v39 }
 0xaa8   :  { %12806 = vmatpush3.bf16.xpose.msra.mxu1 %v17439_v12  ;;  %v6090_v12 = vld [vmem:[%s17101_s11 + $0x18] sm:$0xff] }
 0xaa9   :  { %12807 = vmatprep.subr.bf16.mxu1 %v17397_v6  ;;  %v6123_v40 = vand.u32 4294901760, %v6090_v12 }
 0xaab   :  { %v15451_v4 = vsub.f32 %v6090_v12, %v6123_v40  ;;  %v15539_v12 = vsub.f32 %v6102_v39, %v6159_v43 }
 0xaaf   :  { %11068 = vmatmul.mubr.f32.vlgmr.msra.gmra.mrb[18].mxu1 %v5640_v60  ;;  %v15526_v60 = vsub.f32 %v6098_v33, %v6147_v45  ;;  %v6251_v33 = vand.u32 4294901760, %v6250_v31  ;;  %v17198_v45 = vand.u32 4294901760, %v15519_v41 }
 0xab0   :  { %12809 = vmatpush3.bf16.xpose.msra.mxu1 %v14690_v38  ;;  %11078 = vmatprep.mubr.msk.f32.mxu1 %vm13910_vm1, %v17348_v30 }
 0xab1   :  { %12810 = vmatprep.subr.bf16.mxu1 %v17397_v6 }
 0xab8   :  { %12812 = vmatpush3.bf16.xpose.msra.mxu1 %v14739_v48 }
 0xab9   :  { %12813 = vmatprep.subr.bf16.mxu1 %v17397_v6 }
 0xabf   :  { %11079 = vmatmul.mubr.f32.vlgmr.msra.gmra.mrb[18].mxu1 %v5641_v63  ;;  %v15528_v63 = vsub.f32 %v6099_v36, %v6150_v10  ;;  %v17197_v36 = vand.u32 4294901760, %v15521_v53  ;;  %v6264_v10 = vsub.f32 %v15519_v41, %v17198_v45 }
 0xac0   :  { %12815 = vmatpush3.bf16.xpose.msra.mxu1 %v17440_v0  ;;  %11089 = vmatprep.mubr.msk.f32.mxu1 %vm13910_vm1, %v17348_v30  ;;  %v6120_v0 = vand.u32 4294901760, %v6089_v11 }
 0xac1   :  { %12816 = vmatprep.subr.bf16.mxu1 %v17397_v6  ;;  %v6271_v56 = vsub.f32 %v15521_v53, %v17197_v36 }
 0xac2   :  { %v15449_v16 = vsub.f32 %v6089_v11, %v6120_v0  ;;  %v15456_v22 = vpack.c.bf16 %v6123_v40, %v6120_v0  ;;  %v17207_v40 = vand.u32 4294901760, %v15451_v4 }
 0xac3   :  { %v6272_v39 = vand.u32 4294901760, %v6271_v56 }
 0xac4   :  { %v17208_v3 = vand.u32 4294901760, %v15449_v16 }
 0xac6   :  { %v6222_v25 = vsub.f32 %v15449_v16, %v17208_v3  ;;  %v6766_v3 = vld [vmem:[#allocation7 + $0x38] sm:$0xff] }
 0xac8   :  { %12818 = vmatpush3.bf16.xpose.msra.mxu1 %v17441_v24  ;;  %v6091_v24 = vld [vmem:[%s17101_s11 + $0x20] sm:$0xff] }
 0xac9   :  { %12819 = vmatprep.subr.bf16.mxu1 %v17397_v6  ;;  %v6126_v35 = vand.u32 4294901760, %v6091_v24 }
 0xacb   :  { %v15453_v7 = vsub.f32 %v6091_v24, %v6126_v35  ;;  %v15462_v52 = vpack.c.bf16 %v6129_v9, %v6126_v35 }
 0xacf   :  { %11090 = vmatmul.mubr.f32.vlgmr.msra.gmra.mrb[18].mxu1 %v5639_v34 }
 0xad0   :  { %12821 = vmatpush3.bf16.xpose.msra.mxu1 %v14690_v38  ;;  %11100 = vmatprep.mubr.msk.f32.mxu1 %vm13910_vm1, %v17348_v30  ;;  %v6088_v38 = vld [vmem:[%s17101_s11 + $0x8] sm:$0xff] }
 0xad1   :  { %12822 = vmatprep.subr.bf16.mxu1 %v17397_v6 }
 0xad8   :  { %12824 = vmatpush3.bf16.xpose.msra.mxu1 %v14739_v48  ;;  %v6117_v48 = vand.u32 4294901760, %v6088_v38 }
 0xad9   :  { %12969 = vmatprep.subr.bf16.mxu1 %v17397_v6 }
 0xada   :  { %v15443_v20 = vpack.c.bf16 %v6117_v48, %v6114_v18  ;;  %v15447_v61 = vsub.f32 %v6088_v38, %v6117_v48  ;;  %v17211_v38 = vand.u32 4294901760, %v15445_v57  ;;  %v15535_v18 = vpack.c.bf16 %v6159_v43, %v6156_v51 }
 0xadb   :  { %v15537_v48 = vsub.f32 %v6101_v23, %v6156_v51  ;;  %v6265_v23 = vand.u32 4294901760, %v6264_v10  ;;  %v17195_v43 = vand.u32 4294901760, %v15526_v60 }
 0xadc   :  { %12827 = vmatpush3.bf16.msra.mxu0 %v15443_v20  ;;  %v17210_v11 = vand.u32 4294901760, %v15447_v61  ;;  %v6208_v0 = vsub.f32 %v15445_v57, %v17211_v38  ;;  %v6797_v38 = vand.u32 4294901760, %v6766_v3 }
 0xadd   :  { %12828 = vmatprep.subr.bf16.mxu0 %v17397_v6  ;;  %v17192_v31 = vand.u32 4294901760, %v15537_v48 }
 0xade   :  { %v6215_v24 = vsub.f32 %v15447_v61, %v17210_v11  ;;  %v6209_v35 = vand.u32 4294901760, %v6208_v0  ;;  %v12862_v0 = vpack.c.bf16 %v6272_v39, %v6265_v23 }
 0xadf   :  { %11101 = vmatmul.mubr.f32.vlgmr.msra.gmra.mrb[18].mxu1 %v5639_v34  ;;  %v15524_v34 = vsub.f32 %v6097_v13, %v6144_v58  ;;  %v6258_v58 = vand.u32 4294901760, %v6257_v49  ;;  %v17191_v49 = vand.u32 4294901760, %v15539_v12 }
 0xae0   :  { %11345 = vmatprep.mubr.msk.f32.mxu1 %vm13910_vm1, %v17348_v30  ;;  %12830 = vmatpush3.bf16.msra.mxu0 %v15456_v22  ;;  %v6216_v9 = vand.u32 4294901760, %v6215_v24 }
 0xae1   :  { %12831 = vmatprep.subr.bf16.mxu0 %v17397_v6  ;;  %v12859_v17 = vpack.c.bf16 %v6258_v58, %v6251_v33  ;;  %v17196_v51 = vand.u32 4294901760, %v15524_v34  ;;  %v6306_v58 = vsub.f32 %v15537_v48, %v17192_v31  ;;  %v6313_v10 = vsub.f32 %v15539_v12, %v17191_v49 }
 0xae3   :  { %v6278_v24 = vsub.f32 %v15524_v34, %v17196_v51  ;;  %v6307_v56 = vand.u32 4294901760, %v6306_v58  ;;  %v6314_v23 = vand.u32 4294901760, %v6313_v10  ;;  %v9471_v58 = vmul.f32 -1.442695, %v14967_v47 }
 0xae4   :  { %12833 = vmatpush3.bf16.msra.mxu0 %v15462_v52 }
 0xae5   :  { %12834 = vmatprep.subr.bf16.mxu0 %v17397_v6  ;;  %v12871_v39 = vpack.c.bf16 %v6314_v23, %v6307_v56  ;;  %13778 = vpow2.f32 %v9471_v58  ;;  %v9470_v23 = vld [vmem:[%s17100_s10] ss:$0 sm:$0xff] }
 0xae8   :  { %12836 = vmatpush3.bf16.msra.mxu0 %v15477_v59 }
 0xae9   :  { %12837 = vmatprep.subr.bf16.mxu0 %v17397_v6 }
 0xaec   :  { %12839 = vmatpush3.bf16.msra.mxu0 %v15487_v21 }
 0xaed   :  { %12840 = vmatprep.subr.bf16.mxu0 %v17397_v6 }
 0xaef   :  { %v13779_v10 = vpop.eup %13778 }
 0xaf0   :  { %12842 = vmatpush3.bf16.msra.mxu0 %v15497_v42  ;;  %v6082_v56 = vadd.f32 1.0, %v13779_v10 }
 0xaf1   :  { %12843 = vmatprep.subr.bf16.mxu0 %v17397_v6 }
 0xaf2   :  { %13780 = vrcp.f32 %v6082_v56 }
 0xaf4   :  { %12845 = vmatpush3.bf16.msra.mxu0 %v15507_v50 }
 0xaf5   :  { %12846 = vmatprep.subr.bf16.mxu0 %v17397_v6 }
 0xaf8   :  { %12848 = vmatpush3.bf16.msra.mxu0 %v15535_v18 }
 0xaf9   :  { %12849 = vmatprep.subr.bf16.mxu0 %v17397_v6 }
 0xbb2   :  { %v6051_v37 = vpop.f32.mrb[18].mxu1 }
 0xbb3   :  { %v13566_v44 = vadd.f32 %v6051_v37, %v5566_v2  ;;  %v11102_v28 = vpop.f32.mrb[19].mxu1  ;;  %v6229_v2 = vsub.f32 %v15451_v4, %v17207_v40  ;;  %v15557_v37 = vpack.c.bf16 %v6216_v9, %v6209_v35  ;;  %v6285_v35 = vsub.f32 %v15526_v60, %v17195_v43  ;;  %v6765_v40 = vld [vmem:[#allocation7 + $0x30] sm:$0xff] }
 0xbb4   :  { %v17204_v28 = vand.u32 4294901760, %v15453_v7  ;;  %v6279_v9 = vand.u32 4294901760, %v6278_v24  ;;  %v12874_v24 = vpack.c.bf16 %v15447_v61, %v15445_v57  ;;  %v6794_v11 = vand.u32 4294901760, %v6765_v40 }
 0xbb5   :  { %v6062_v15 = vmul.f32 %v13566_v44, %v9469_v32  ;;  %v6223_v32 = vand.u32 4294901760, %v6222_v25  ;;  %v6230_v44 = vand.u32 4294901760, %v6229_v2  ;;  %v6286_v25 = vand.u32 4294901760, %v6285_v35 }
 0xbb6   :  { %v6236_v14 = vsub.f32 %v15453_v7, %v17204_v28  ;;  %v17194_v2 = vand.u32 4294901760, %v15528_v63  ;;  %v12877_v35 = vpack.c.bf16 %v15451_v4, %v15449_v16  ;;  %v15711_v28 = vld [vmem:[#allocation9 + $0x28] sm:$0xff] }
 0xbb7   :  { %v6064_v19 = vsel %vm6063_vm5, %v6062_v15, 0.0  ;;  %v17203_v15 = vand.u32 4294901760, %v15458_v54 }
 0xbb8   :  { %6065 = vadd.xlane.f32.xlu0 %v6064_v19  ;;  %v15561_v19 = vpack.c.bf16 %v6230_v44, %v6223_v32  ;;  %v6237_v1 = vand.u32 4294901760, %v6236_v14  ;;  %v17193_v32 = vand.u32 4294901760, %v15530_v5  ;;  %v12865_v44 = vpack.c.bf16 %v6286_v25, %v6279_v9 }
 0xbb9   :  { %v6243_v29 = vsub.f32 %v15458_v54, %v17203_v15  ;;  %v6292_v14 = vsub.f32 %v15528_v63, %v17194_v2  ;;  %v12880_v9 = vpack.c.bf16 %v15458_v54, %v15453_v7  ;;  %v12883_v25 = vpack.c.bf16 %v15517_v27, %v15515_v55 }
 0xbbb   :  { %v6244_v46 = vand.u32 4294901760, %v6243_v29  ;;  %v6299_v29 = vsub.f32 %v15530_v5, %v17193_v32  ;;  %v13781_v32 = vpop.eup %13780 }
 0xbbc   :  { %v6085_v43 = vmul.f32 %v13781_v32, %v14967_v47  ;;  %v6759_v47 = vld [vmem:[#allocation7] sm:$0xff] }
 0xbbd   :  { %v15577_v13 = vpack.c.bf16 %v6244_v46, %v6237_v1  ;;  %v6293_v1 = vand.u32 4294901760, %v6292_v14  ;;  %v6300_v46 = vand.u32 4294901760, %v6299_v29  ;;  %v6767_v29 = vld [vmem:[#allocation7 + $0x40] sm:$0xff]  ;;  %v6768_v14 = vld [vmem:[#allocation7 + $0x48] sm:$0xff] }
 0xbbf   :  { %v12868_v33 = vpack.c.bf16 %v6300_v46, %v6293_v1  ;;  %v15749_v46 = vsub.f32 %v6765_v40, %v6794_v11  ;;  %v15767_v40 = vld [vmem:[#allocation9 + $0x48] sm:$0xff] }
 0xc45   :  { %v6066_v49 = vpop.xlane.xlu0 %6065 }
 0xc46   :  { %v6074_v31 = vadd.f32 %v9470_v23, %v6066_v49 }
 0xc48   :  { %v6076_v2 = vrot.slane %v6074_v31, 4 }
 0xc4a   :  { %v6078_v51 = vmul.f32 %v6076_v2, %v14995_v62  ;;  %v6760_v62 = vld [vmem:[#allocation7 + $0x8] sm:$0xff] }
 0xc4c   :  { %v6086_v36 = vmul.f32 %v6085_v43, %v6078_v51  ;;  %v6761_v51 = vld [vmem:[#allocation7 + $0x10] sm:$0xff]  ;;  %v6762_v43 = vld [vmem:[#allocation7 + $0x18] sm:$0xff] }
 0xc4d   :  { %v6785_v23 = vand.u32 4294901760, %v6762_v43 }
 0xc4e   :  { %v6111_v45 = vrot.slane %v6086_v36, 4 }
 0xc50   :  { %v15633_v8 = vand.u32 4294901760, %v6111_v45 }
 0xc52   :  { %v15636_v58 = vsub.f32 %v6111_v45, %v15633_v8  ;;  %v15660_v45 = vld [vmem:[#allocation9 + $0x8] sm:$0xff] }
 0xc54   :  { %v17209_v10 = vand.u32 4294901760, %v15636_v58 }
 0xc56   :  { %v6197_v56 = vsub.f32 %v15636_v58, %v17209_v10  ;;  %v15727_v10 = vld [vmem:[#allocation9 + $0x30] sm:$0xff] }
 0xc58   :  { %v6198_v49 = vand.u32 4294901760, %v6197_v56 }
 0xc5a   :  { %11136 = vmatmul.mubr.f32.vlgmr.msra.gmra.mrb[16].mxu0 %v6198_v49 }
 0xc5b   :  { %12851 = vmatpush3.bf16.msra.mxu0 %v15557_v37  ;;  %11170 = vmatprep.mubr.msk.f32.mxu0 %vm13910_vm1, %v17348_v30  ;;  %v15656_v37 = vld [vmem:[#allocation9] sm:$0xff] }
 0xc5c   :  { %12852 = vmatprep.subr.bf16.mxu0 %v17397_v6  ;;  %v17201_v36 = vand.u32 4294901760, %v15656_v37 }
 0xc5e   :  { %v15676_v31 = vsub.f32 %v15656_v37, %v17201_v36  ;;  %v15699_v36 = vld [vmem:[#allocation9 + $0x20] sm:$0xff] }
 0xc5f   :  { %12854 = vmatpush3.bf16.msra.mxu0 %v15561_v19  ;;  %v6776_v19 = vand.u32 4294901760, %v6759_v47 }
 0xc60   :  { %12855 = vmatprep.subr.bf16.mxu0 %v17397_v6 }
 0xc61   :  { %v15669_v32 = vsub.f32 %v6759_v47, %v6776_v19 }
 0xc63   :  { %12857 = vmatpush3.bf16.msra.mxu0 %v15577_v13  ;;  %v6779_v13 = vand.u32 4294901760, %v6760_v62 }
 0xc64   :  { %12858 = vmatprep.subr.bf16.mxu0 %v17397_v6 }
 0xc65   :  { %v15667_v2 = vpack.c.bf16 %v6779_v13, %v6776_v19  ;;  %v15697_v19 = vsub.f32 %v6762_v43, %v6785_v23 }
 0xc67   :  { %12860 = vmatpush3.bf16.msra.mxu0 %v12859_v17  ;;  %v17200_v17 = vand.u32 4294901760, %v15660_v45  ;;  %17442 = vst [vmem:[#allocation19_spill] sm:$0xff] %v15667_v2  ;;  %12971 = vmatpush3.bf16.msra.mxu1 %v15667_v2 }
 0xc68   :  { %12861 = vmatprep.subr.bf16.mxu0 %v17397_v6  ;;  %12972 = vmatprep.subr.bf16.mxu1 %v17397_v6 }
 0xc6b   :  { %12863 = vmatpush3.bf16.msra.mxu0 %v12862_v0  ;;  %v15665_v0 = vld [vmem:[#allocation9 + $0x10] sm:$0xff] }
 0xc6c   :  { %12864 = vmatprep.subr.bf16.mxu0 %v17397_v6  ;;  %v17206_v56 = vand.u32 4294901760, %v15665_v0 }
 0xc6f   :  { %12866 = vmatpush3.bf16.msra.mxu0 %v12865_v44  ;;  %v15671_v44 = vsub.f32 %v6760_v62, %v6779_v13  ;;  %v6763_v13 = vld [vmem:[#allocation7 + $0x20] sm:$0xff] }
 0xc70   :  { %12867 = vmatprep.subr.bf16.mxu0 %v17397_v6  ;;  %v6788_v15 = vand.u32 4294901760, %v6763_v13 }
 0xc72   :  { %v15717_v43 = vsub.f32 %v6763_v13, %v6788_v15 }
 0xc73   :  { %12869 = vmatpush3.bf16.msra.mxu0 %v12868_v33  ;;  %v15678_v33 = vld [vmem:[#allocation9 + $0x18] sm:$0xff] }
 0xc74   :  { %12870 = vmatprep.subr.bf16.mxu0 %v17397_v6  ;;  %v17205_v49 = vand.u32 4294901760, %v15678_v33 }
 0xc76   :  { %v15709_v26 = vsub.f32 %v15678_v33, %v17205_v49 }
 0xc77   :  { %12872 = vmatpush3.bf16.msra.mxu0 %v12871_v39  ;;  %v15683_v39 = vsub.f32 %v15660_v45, %v17200_v17  ;;  %v6764_v17 = vld [vmem:[#allocation7 + $0x28] sm:$0xff] }
 0xc78   :  { %12873 = vmatprep.subr.bf16.mxu0 %v17397_v6 }
 0xc7a   :  { %11171 = vmatmul.mubr.f32.vlgmr.msra.gmra.mrb[16].mxu0 %v15633_v8 }
 0xc7b   :  { %12875 = vmatpush3.bf16.msra.mxu0 %v12874_v24  ;;  %11205 = vmatprep.mubr.msk.f32.mxu0 %vm13910_vm1, %v17348_v30  ;;  %v6782_v24 = vand.u32 4294901760, %v6761_v51 }
 0xc7c   :  { %12876 = vmatprep.subr.bf16.mxu0 %v17397_v6 }
 0xc7d   :  { %v15693_v47 = vpack.c.bf16 %v6785_v23, %v6782_v24  ;;  %v15695_v62 = vsub.f32 %v6761_v51, %v6782_v24  ;;  %v6791_v51 = vand.u32 4294901760, %v6764_v17  ;;  %v17212_v24 = vand.u32 4294901760, %v15699_v36 }
 0xc7e   :  { %v17213_v23 = vand.u32 4294901760, %v15711_v28 }
 0xc7f   :  { %12878 = vmatpush3.bf16.msra.mxu0 %v12877_v35  ;;  %17443 = vst [vmem:[#allocation17_spill] sm:$0xff] %v15693_v47  ;;  %v15704_v35 = vsub.f32 %v15665_v0, %v17206_v56  ;;  %12974 = vmatpush3.bf16.msra.mxu1 %v15693_v47  ;;  %v15723_v49 = vpack.c.bf16 %v6791_v51, %v6788_v15  ;;  %v15739_v15 = vld [vmem:[#allocation9 + $0x38] sm:$0xff] }
 0xc80   :  { %12879 = vmatprep.subr.bf16.mxu0 %v17397_v6  ;;  %12975 = vmatprep.subr.bf16.mxu1 %v17397_v6  ;;  %v15725_v56 = vsub.f32 %v6764_v17, %v6791_v51  ;;  %v15737_v13 = vsub.f32 %v15711_v28, %v17213_v23  ;;  %v17218_v17 = vand.u32 4294901760, %v15727_v10  ;;  %v17219_v51 = vand.u32 4294901760, %v15739_v15 }
 0xc81   :  { %17444 = vst [vmem:[#allocation18_spill] sm:$0xff] %v15723_v49  ;;  %v15751_v23 = vsub.f32 %v6766_v3, %v6797_v38  ;;  %v6803_v3 = vand.u32 4294901760, %v6768_v14 }
 0xc82   :  { %v15758_v1 = vsub.f32 %v15727_v10, %v17218_v17  ;;  %v17448_v17 = vpack.c.bf16 %v15521_v53, %v15519_v41 }
 0xc83   :  { %12881 = vmatpush3.bf16.msra.mxu0 %v12880_v9  ;;  %v15732_v9 = vsub.f32 %v15699_v36, %v17212_v24  ;;  %12977 = vmatpush3.bf16.msra.mxu1 %v15723_v49  ;;  %v15747_v24 = vpack.c.bf16 %v6797_v38, %v6794_v11  ;;  %v15765_v11 = vld [vmem:[#allocation9 + $0x40] sm:$0xff]  ;;  %v6800_v38 = vand.u32 4294901760, %v6767_v29 }
 0xc84   :  { %12882 = vmatprep.subr.bf16.mxu0 %v17397_v6  ;;  %12978 = vmatprep.subr.bf16.mxu1 %v17397_v6  ;;  %17446 = vst [vmem:[#allocation23_spill] sm:$0xff] %v15758_v1  ;;  %v17224_v49 = vand.u32 4294901760, %v15765_v11  ;;  %v17450_v1 = vand.u32 4294901760, %v15767_v40 }
 0xc85   :  { %17445 = vst [vmem:[#allocation22_spill] sm:$0xff] %v15747_v24  ;;  %v15777_v2 = vsub.f32 %v6767_v29, %v6800_v38  ;;  %v17451_v29 = vpack.c.bf16 %v15526_v60, %v15524_v34 }
 0xc86   :  { %v15786_v47 = vsub.f32 %v15765_v11, %v17224_v49  ;;  %v17458_v49 = vand.u32 4294901760, %v15451_v4 }
 0xc87   :  { %12884 = vmatpush3.bf16.msra.mxu0 %v12883_v25  ;;  %v15763_v25 = vsub.f32 %v15739_v15, %v17219_v51  ;;  %12980 = vmatpush3.bf16.msra.mxu1 %v15747_v24  ;;  %v15775_v51 = vpack.c.bf16 %v6803_v3, %v6800_v38  ;;  %v17454_v38 = vand.u32 4294901760, %v15445_v57  ;;  %v17459_v57 = vand.u32 4294901760, %v15453_v7 }
 0xc88   :  { %12885 = vmatprep.subr.bf16.mxu0 %v17397_v6  ;;  %12981 = vmatprep.subr.bf16.mxu1 %v17397_v6  ;;  %v17465_v7 = vand.u32 4294901760, %v15524_v34  ;;  %v17478_v34 = vand.u32 4294901760, %v15711_v28 }
 0xc89   :  { %17447 = vst [vmem:[#allocation20_spill] sm:$0xff] %v15763_v25  ;;  %17449 = vst [vmem:[#allocation21_spill] sm:$0xff] %v15775_v51  ;;  %v15779_v25 = vsub.f32 %v6768_v14, %v6803_v3  ;;  %v17452_v14 = vpack.c.bf16 %v15530_v5, %v15528_v63  ;;  %v17455_v3 = vand.u32 4294901760, %v15447_v61  ;;  %v17460_v61 = vand.u32 4294901760, %v15458_v54 }
 0xc8a   :  { %v17466_v54 = vand.u32 4294901760, %v15526_v60 }
 0xc8b   :  { %12887 = vmatpush3.bf16.msra.mxu0 %v17448_v17  ;;  %v15791_v17 = vsub.f32 %v15767_v40, %v17450_v1  ;;  %12983 = vmatpush3.bf16.msra.mxu1 %v15775_v51  ;;  %v17453_v1 = vpack.c.bf16 %v15539_v12, %v15537_v48 }
 0xc8c   :  { %12888 = vmatprep.subr.bf16.mxu0 %v17397_v6  ;;  %12984 = vmatprep.subr.bf16.mxu1 %v17397_v6 }
 0xc8f   :  { %12890 = vmatpush3.bf16.msra.mxu0 %v17451_v29  ;;  %v12922_v29 = vpack.c.bf16 %v17455_v3, %v17454_v38  ;;  %v12928_v38 = vpack.c.bf16 %v17460_v61, %v17459_v57  ;;  %v6772_v61 = vld [vmem:[#allocation7 + $0x68] sm:$0xff] }
 0xc90   :  { %12891 = vmatprep.subr.bf16.mxu0 %v17397_v6 }
 0xc93   :  { %12893 = vmatpush3.bf16.msra.mxu0 %v17452_v14  ;;  %v17456_v14 = vand.u32 4294901760, %v15636_v58 }
 0xc94   :  { %12894 = vmatprep.subr.bf16.mxu0 %v17397_v6 }
 0xc97   :  { %12896 = vmatpush3.bf16.msra.mxu0 %v17453_v1  ;;  %v17457_v1 = vand.u32 4294901760, %v15449_v16  ;;  %v17462_v16 = vand.u32 4294901760, %v15517_v27  ;;  %v17468_v27 = vand.u32 4294901760, %v15530_v5  ;;  %v17481_v5 = vand.u32 4294901760, %v15739_v15 }
 0xc98   :  { %12897 = vmatprep.subr.bf16.mxu0 %v17397_v6 }
 0xc99   :  { %v12925_v51 = vpack.c.bf16 %v17458_v49, %v17457_v1  ;;  %v17463_v49 = vand.u32 4294901760, %v15519_v41  ;;  %v17469_v41 = vand.u32 4294901760, %v15537_v48  ;;  %v17483_v48 = vand.u32 4294901760, %v15765_v11 }
 0xc9a   :  { %11206 = vmatmul.mubr.f32.vlgmr.msra.gmra.mrb[16].mxu0 %v15636_v58  ;;  %v17461_v58 = vand.u32 4294901760, %v15515_v55  ;;  %v17467_v55 = vand.u32 4294901760, %v15528_v63  ;;  %v17480_v63 = vand.u32 4294901760, %v15727_v10  ;;  %v6770_v10 = vld [vmem:[#allocation7 + $0x58] sm:$0xff] }
 0xc9b   :  { %12899 = vmatpush3.bf16.msra.mxu0 %v15443_v20  ;;  %11240 = vmatprep.mubr.msk.f32.mxu0 %vm13910_vm1, %v17348_v30 }
 0xc9c   :  { %12900 = vmatprep.subr.bf16.mxu0 %v17397_v6  ;;  %v12931_v4 = vpack.c.bf16 %v17462_v16, %v17461_v58  ;;  %v6815_v16 = vand.u32 4294901760, %v6772_v61 }
 0xc9f   :  { %12902 = vmatpush3.bf16.msra.mxu0 %v15456_v22 }
 0xca0   :  { %12903 = vmatprep.subr.bf16.mxu0 %v17397_v6 }
 0xca3   :  { %12905 = vmatpush3.bf16.msra.mxu0 %v15462_v52 }
 0xca4   :  { %12906 = vmatprep.subr.bf16.mxu0 %v17397_v6 }
 0xca7   :  { %12908 = vmatpush3.bf16.msra.mxu0 %v15477_v59 }
 0xca8   :  { %12909 = vmatprep.subr.bf16.mxu0 %v17397_v6 }
 0xcab   :  { %12911 = vmatpush3.bf16.msra.mxu0 %v15487_v21 }
 0xcac   :  { %12912 = vmatprep.subr.bf16.mxu0 %v17397_v6 }
 0xcaf   :  { %12914 = vmatpush3.bf16.msra.mxu0 %v15497_v42 }
 0xcb0   :  { %12915 = vmatprep.subr.bf16.mxu0 %v17397_v6 }
 0xcb3   :  { %12917 = vmatpush3.bf16.msra.mxu0 %v15507_v50 }
 0xcb4   :  { %12918 = vmatprep.subr.bf16.mxu0 %v17397_v6 }
 0xcb7   :  { %12920 = vmatpush3.bf16.msra.mxu0 %v15535_v18 }
 0xcb8   :  { %12921 = vmatprep.subr.bf16.mxu0 %v17397_v6 }
 0xcba   :  { %11241 = vmatmul.mubr.f32.vlgmr.msra.gmra.mrb[16].mxu0 %v17456_v14  ;;  %v12940_v14 = vpack.c.bf16 %v17468_v27, %v17467_v55  ;;  %v7430_v55 = vld [vmem:[#allocation9 + $0x70] sm:$0xff] }
 0xcbb   :  { %12923 = vmatpush3.bf16.msra.mxu0 %v12922_v29  ;;  %11275 = vmatprep.mubr.msk.f32.mxu0 %vm13910_vm1, %v17348_v30  ;;  %v12937_v29 = vpack.c.bf16 %v17466_v54, %v17465_v7  ;;  %v6773_v54 = vld [vmem:[#allocation7 + $0x70] sm:$0xff] }
 0xcbc   :  { %12924 = vmatprep.subr.bf16.mxu0 %v17397_v6 }
 0xcbf   :  { %12926 = vmatpush3.bf16.msra.mxu0 %v12925_v51  ;;  %v17464_v51 = vand.u32 4294901760, %v15521_v53  ;;  %v17470_v53 = vand.u32 4294901760, %v15539_v12  ;;  %v17484_v12 = vand.u32 4294901760, %v15767_v40  ;;  %v6771_v40 = vld [vmem:[#allocation7 + $0x60] sm:$0xff] }
 0xcc0   :  { %12927 = vmatprep.subr.bf16.mxu0 %v17397_v6  ;;  %v6812_v58 = vand.u32 4294901760, %v6771_v40 }
 0xcc1   :  { %v12934_v3 = vpack.c.bf16 %v17464_v51, %v17463_v49  ;;  %v12943_v1 = vpack.c.bf16 %v17470_v53, %v17469_v41  ;;  %v15927_v28 = vpack.c.bf16 %v17484_v12, %v17483_v48  ;;  %v17236_v48 = vand.u32 4294901760, %v15669_v32 }
 0xcc2   :  { %v17235_v12 = vand.u32 4294901760, %v15671_v44 }
 0xcc3   :  { %12929 = vmatpush3.bf16.msra.mxu0 %v12928_v38  ;;  %17485 = vst [vmem:[#allocation27_spill] sm:$0xff] %v15927_v28  ;;  %v7428_v38 = vld [vmem:[#allocation9 + $0x60] sm:$0xff] }
 0xcc4   :  { %12930 = vmatprep.subr.bf16.mxu0 %v17397_v6  ;;  %v7469_v49 = vand.u32 4294901760, %v7428_v38 }
 0xcc7   :  { %12932 = vmatpush3.bf16.msra.mxu0 %v12931_v4  ;;  %v7429_v4 = vld [vmem:[#allocation9 + $0x68] sm:$0xff] }
 0xcc8   :  { %12933 = vmatprep.subr.bf16.mxu0 %v17397_v6  ;;  %v7472_v51 = vand.u32 4294901760, %v7429_v4 }
 0xcca   :  { %v15942_v7 = vpack.c.bf16 %v7472_v51, %v7469_v49 }
 0xccb   :  { %12935 = vmatpush3.bf16.msra.mxu0 %v12934_v3  ;;  %v15940_v3 = vpack.c.bf16 %v6815_v16, %v6812_v58 }
 0xccc   :  { %12936 = vmatprep.subr.bf16.mxu0 %v17397_v6  ;;  %17489 = vst [vmem:[#allocation33_spill] sm:$0xff] %v15942_v7 }
 0xccd   :  { %17488 = vst [vmem:[#allocation32_spill] sm:$0xff] %v15940_v3 }
 0xccf   :  { %12938 = vmatpush3.bf16.msra.mxu0 %v12937_v29  ;;  %v6774_v29 = vld [vmem:[#allocation7 + $0x78] sm:$0xff] }
 0xcd0   :  { %12939 = vmatprep.subr.bf16.mxu0 %v17397_v6 }
 0xcd3   :  { %12941 = vmatpush3.bf16.msra.mxu0 %v12940_v14 }
 0xcd4   :  { %12942 = vmatprep.subr.bf16.mxu0 %v17397_v6 }
 0xcd7   :  { %12944 = vmatpush3.bf16.msra.mxu0 %v12943_v1  ;;  %v7431_v1 = vld [vmem:[#allocation9 + $0x78] sm:$0xff] }
 0xcd8   :  { %12945 = vmatprep.subr.bf16.mxu0 %v17397_v6 }
 0xcda   :  { %11276 = vmatmul.mubr.f32.vlgmr.msra.gmra.mrb[16].mxu0 %v15633_v8 }
 0xcdb   :  { %12947 = vmatpush3.bf16.msra.mxu0 %v15443_v20  ;;  %11310 = vmatprep.mubr.msk.f32.mxu0 %vm13910_vm1, %v17348_v30  ;;  %v17471_v20 = vand.u32 4294901760, %v15656_v37  ;;  %v7426_v37 = vld [vmem:[#allocation9 + $0x50] sm:$0xff] }
 0xcdc   :  { %12948 = vmatprep.subr.bf16.mxu0 %v17397_v6 }
 0xcdf   :  { %12950 = vmatpush3.bf16.msra.mxu0 %v15456_v22  ;;  %v17472_v22 = vand.u32 4294901760, %v15660_v45 }
 0xce0   :  { %12951 = vmatprep.subr.bf16.mxu0 %v17397_v6 }
 0xce3   :  { %12953 = vmatpush3.bf16.msra.mxu0 %v15462_v52  ;;  %v15892_v52 = vpack.c.bf16 %v17472_v22, %v17471_v20  ;;  %v15953_v20 = vsub.f32 %v6771_v40, %v6812_v58  ;;  %v15955_v22 = vsub.f32 %v6772_v61, %v6815_v16  ;;  %v6870_v40 = vsub.f32 %v15669_v32, %v17236_v48 }
 0xce4   :  { %12954 = vmatprep.subr.bf16.mxu0 %v17397_v6  ;;  %v6877_v61 = vsub.f32 %v15671_v44, %v17235_v12  ;;  %v17227_v16 = vand.u32 4294901760, %v15695_v62 }
 0xce5   :  { %17473 = vst [vmem:[#allocation24_spill] sm:$0xff] %v15892_v52 }
 0xce7   :  { %12956 = vmatpush3.bf16.msra.mxu0 %v15477_v59  ;;  %v17474_v59 = vand.u32 4294901760, %v15665_v0  ;;  %v7427_v0 = vld [vmem:[#allocation9 + $0x58] sm:$0xff] }
 0xce8   :  { %12957 = vmatprep.subr.bf16.mxu0 %v17397_v6  ;;  %v7466_v15 = vand.u32 4294901760, %v7427_v0 }
 0xcea   :  { %v15950_v53 = vsub.f32 %v7427_v0, %v7466_v15 }
 0xceb   :  { %12959 = vmatpush3.bf16.msra.mxu0 %v15487_v21  ;;  %v17475_v21 = vand.u32 4294901760, %v15678_v33  ;;  %v7463_v33 = vand.u32 4294901760, %v7426_v37 }
 0xcec   :  { %12960 = vmatprep.subr.bf16.mxu0 %v17397_v6 }
 0xced   :  { %v15934_v11 = vpack.c.bf16 %v7466_v15, %v7463_v33  ;;  %v15948_v41 = vsub.f32 %v7426_v37, %v7463_v33 }
 0xcef   :  { %12962 = vmatpush3.bf16.msra.mxu0 %v15497_v42  ;;  %v15901_v42 = vpack.c.bf16 %v17475_v21, %v17474_v59  ;;  %17487 = vst [vmem:[#allocation31_spill] sm:$0xff] %v15934_v11  ;;  %v15958_v59 = vsub.f32 %v7428_v38, %v7469_v49  ;;  %v15960_v21 = vsub.f32 %v7429_v4, %v7472_v51  ;;  %v17230_v4 = vand.u32 4294901760, %v15697_v19 }
 0xcf0   :  { %12963 = vmatprep.subr.bf16.mxu0 %v17397_v6  ;;  %v6871_v49 = vand.u32 4294901760, %v6870_v40  ;;  %v6878_v51 = vand.u32 4294901760, %v6877_v61  ;;  %v17233_v61 = vand.u32 4294901760, %v15717_v43 }
 0xcf1   :  { %17476 = vst [vmem:[#allocation25_spill] sm:$0xff] %v15901_v42 }
 0xcf3   :  { %12965 = vmatpush3.bf16.msra.mxu0 %v15507_v50  ;;  %v17477_v50 = vand.u32 4294901760, %v15699_v36  ;;  %v6809_v36 = vand.u32 4294901760, %v6770_v10 }
 0xcf4   :  { %12966 = vmatprep.subr.bf16.mxu0 %v17397_v6 }
 0xcf5   :  { %v15911_v60 = vpack.c.bf16 %v17478_v34, %v17477_v50  ;;  %v15946_v14 = vsub.f32 %v6770_v10, %v6809_v36  ;;  %v6818_v50 = vand.u32 4294901760, %v6773_v54  ;;  %v6821_v34 = vand.u32 4294901760, %v6774_v29 }
 0xcf6   :  { %v17228_v10 = vand.u32 4294901760, %v15683_v39 }
 0xcf7   :  { %12968 = vmatpush3.bf16.msra.mxu0 %v15535_v18  ;;  %17479 = vst [vmem:[#allocation26_spill] sm:$0xff] %v15911_v60  ;;  %v15919_v18 = vpack.c.bf16 %v17481_v5, %v17480_v63  ;;  %v7475_v63 = vand.u32 4294901760, %v7430_v55  ;;  %v7478_v5 = vand.u32 4294901760, %v7431_v1  ;;  %v15968_v37 = vpack.c.bf16 %v6821_v34, %v6818_v50 }
 0xcf8   :  { %13113 = vmatprep.subr.bf16.mxu0 %v17397_v6  ;;  %v7534_v58 = vsub.f32 %v15683_v39, %v17228_v10  ;;  %v17234_v10 = vand.u32 4294901760, %v15725_v56 }
 0xcf9   :  { %17482 = vst [vmem:[#allocation29_spill] sm:$0xff] %v15919_v18  ;;  %17490 = vst [vmem:[#allocation34_spill] sm:$0xff] %v15968_v37  ;;  %v15974_v0 = vpack.c.bf16 %v7478_v5, %v7475_v63  ;;  %v15976_v33 = vsub.f32 %v7430_v55, %v7475_v63  ;;  %v15978_v15 = vsub.f32 %v7431_v1, %v7478_v5 }
 0xcfa   :  { %11311 = vmatmul.mubr.f32.vlgmr.msra.gmra.mrb[16].mxu0 %v15633_v8  ;;  %v6769_v8 = vld [vmem:[#allocation7 + $0x50] sm:$0xff]  ;;  %v7535_v1 = vand.u32 4294901760, %v7534_v58  ;;  %v16006_v63 = vpack.c.bf16 %v6878_v51, %v6871_v49  ;;  %v6898_v49 = vsub.f32 %v15717_v43, %v17233_v61  ;;  %v17237_v51 = vand.u32 4294901760, %v15732_v9 }
 0xcfb   :  { %13115 = vmatpush3.bf16.msra.mxu0 %v15892_v52  ;;  %11555 = vmatprep.mubr.msk.f32.mxu0 %vm13910_vm1, %v17348_v30  ;;  %v6806_v45 = vand.u32 4294901760, %v6769_v8  ;;  %17491 = vst [vmem:[#allocation30_spill] sm:$0xff] %v15974_v0  ;;  %v17492_v61 = vld [vmem:[#allocation23_spill] sm:$0xff]  ;;  %v13018_v52 = vpack.c.bf16 %v15671_v44, %v15669_v32 }
 0xcfc   :  { %13116 = vmatprep.subr.bf16.mxu0 %v17397_v6 }
 0xcfd   :  { %v15932_v57 = vpack.c.bf16 %v6809_v36, %v6806_v45  ;;  %v15944_v27 = vsub.f32 %v6769_v8, %v6806_v45  ;;  %v17229_v8 = vand.u32 4294901760, %v15676_v31  ;;  %v15970_v45 = vsub.f32 %v6773_v54, %v6818_v50 }
 0xcfe   :  { %v15972_v36 = vsub.f32 %v6774_v29, %v6821_v34  ;;  %v17231_v54 = vand.u32 4294901760, %v15704_v35  ;;  %v17232_v29 = vand.u32 4294901760, %v15709_v26  ;;  %v6884_v50 = vsub.f32 %v15695_v62, %v17227_v16 }
 0xcff   :  { %13118 = vmatpush3.bf16.msra.mxu0 %v15901_v42  ;;  %17486 = vst [vmem:[#allocation28_spill] sm:$0xff] %v15932_v57  ;;  %12986 = vmatpush3.bf16.msra.mxu1 %v15932_v57  ;;  %v7527_v38 = vsub.f32 %v15676_v31, %v17229_v8  ;;  %v6891_v34 = vsub.f32 %v15697_v19, %v17230_v4  ;;  %v17277_v24 = vand.u32 4294901760, %v15970_v45 }
 0xd00   :  { %13119 = vmatprep.subr.bf16.mxu0 %v17397_v6  ;;  %12987 = vmatprep.subr.bf16.mxu1 %v17397_v6  ;;  %v7541_v5 = vsub.f32 %v15704_v35, %v17231_v54  ;;  %v7548_v40 = vsub.f32 %v15709_v26, %v17232_v29  ;;  %v6885_v58 = vand.u32 4294901760, %v6884_v50  ;;  %v6905_v29 = vsub.f32 %v15725_v56, %v17234_v10 }
 0xd01   :  { %v7528_v55 = vand.u32 4294901760, %v7527_v38  ;;  %v6892_v16 = vand.u32 4294901760, %v6891_v34  ;;  %v6899_v50 = vand.u32 4294901760, %v6898_v49  ;;  %v7555_v34 = vsub.f32 %v15732_v9, %v17237_v51 }
 0xd02   :  { %v7542_v8 = vand.u32 4294901760, %v7541_v5  ;;  %v7549_v4 = vand.u32 4294901760, %v7548_v40  ;;  %v17241_v5 = vand.u32 4294901760, %v15749_v46  ;;  %v6906_v40 = vand.u32 4294901760, %v6905_v29 }
 0xd03   :  { %13121 = vmatpush3.bf16.msra.mxu0 %v15911_v60  ;;  %12989 = vmatpush3.bf16.msra.mxu1 %v15940_v3  ;;  %v16015_v38 = vpack.c.bf16 %v7535_v1, %v7528_v55  ;;  %v16022_v54 = vpack.c.bf16 %v6892_v16, %v6885_v58  ;;  %v17238_v55 = vand.u32 4294901760, %v15737_v13  ;;  %v17246_v58 = vand.u32 4294901760, %v15751_v23 }
 0xd04   :  { %13122 = vmatprep.subr.bf16.mxu0 %v17397_v6  ;;  %12990 = vmatprep.subr.bf16.mxu1 %v17397_v6  ;;  %v16028_v1 = vpack.c.bf16 %v7549_v4, %v7542_v8  ;;  %v17247_v10 = vand.u32 4294901760, %v17492_v61  ;;  %v7556_v12 = vand.u32 4294901760, %v7555_v34  ;;  %v6912_v8 = vsub.f32 %v15749_v46, %v17241_v5  ;;  %v17493_v4 = vld [vmem:[#allocation20_spill] sm:$0xff] }
 0xd05   :  { %v7562_v16 = vsub.f32 %v15737_v13, %v17238_v55  ;;  %v17248_v49 = vand.u32 4294901760, %v17493_v4  ;;  %v16043_v48 = vpack.c.bf16 %v6906_v40, %v6899_v50  ;;  %v6919_v29 = vsub.f32 %v15751_v23, %v17246_v58 }
 0xd06   :  { %v7569_v55 = vsub.f32 %v17492_v61, %v17247_v10  ;;  %v17251_v5 = vand.u32 4294901760, %v15777_v2 }
 0xd07   :  { %13124 = vmatpush3.bf16.msra.mxu0 %v15919_v18  ;;  %12992 = vmatpush3.bf16.msra.mxu1 %v15968_v37  ;;  %v7563_v51 = vand.u32 4294901760, %v7562_v16  ;;  %v7576_v34 = vsub.f32 %v17493_v4, %v17248_v49  ;;  %v17254_v37 = vand.u32 4294901760, %v15779_v25  ;;  %v6920_v40 = vand.u32 4294901760, %v6919_v29 }
 0xd08   :  { %13125 = vmatprep.subr.bf16.mxu0 %v17397_v6  ;;  %12993 = vmatprep.subr.bf16.mxu1 %v17397_v6  ;;  %v7570_v16 = vand.u32 4294901760, %v7569_v55  ;;  %v6926_v10 = vsub.f32 %v15777_v2, %v17251_v5  ;;  %v17259_v49 = vand.u32 4294901760, %v15791_v17 }
 0xd09   :  { %v16056_v50 = vpack.c.bf16 %v7563_v51, %v7556_v12  ;;  %v7577_v58 = vand.u32 4294901760, %v7576_v34 }
 0xd0a   :  { %v6927_v55 = vand.u32 4294901760, %v6926_v10  ;;  %v7590_v34 = vsub.f32 %v15791_v17, %v17259_v49 }
 0xd0b   :  { %13127 = vmatpush3.bf16.msra.mxu0 %v15927_v28  ;;  %v16071_v51 = vpack.c.bf16 %v7577_v58, %v7570_v16  ;;  %v17273_v28 = vand.u32 4294901760, %v15958_v59 }
 0xd0c   :  { %13128 = vmatprep.subr.bf16.mxu0 %v17397_v6  ;;  %v7591_v57 = vand.u32 4294901760, %v7590_v34 }
 0xd0f   :  { %13130 = vmatpush3.bf16.msra.mxu0 %v15934_v11  ;;  %v17258_v11 = vand.u32 4294901760, %v15944_v27 }
 0xd10   :  { %13131 = vmatprep.subr.bf16.mxu0 %v17397_v6 }
 0xd11   :  { %v6940_v10 = vsub.f32 %v15944_v27, %v17258_v11 }
 0xd13   :  { %13133 = vmatpush3.bf16.msra.mxu0 %v15942_v7  ;;  %v17257_v7 = vand.u32 4294901760, %v15786_v47  ;;  %v6941_v34 = vand.u32 4294901760, %v6940_v10  ;;  %v7611_v10 = vsub.f32 %v15958_v59, %v17273_v28  ;;  %v17281_v28 = vand.u32 4294901760, %v15978_v15 }
 0xd14   :  { %13134 = vmatprep.subr.bf16.mxu0 %v17397_v6 }
 0xd15   :  { %v7583_v12 = vsub.f32 %v15786_v47, %v17257_v7  ;;  %v17264_v7 = vand.u32 4294901760, %v15950_v53  ;;  %v7612_v18 = vand.u32 4294901760, %v7611_v10 }
 0xd17   :  { %13136 = vmatpush3.bf16.msra.mxu0 %v15974_v0  ;;  %v6913_v0 = vand.u32 4294901760, %v6912_v8  ;;  %v6933_v8 = vsub.f32 %v15779_v25, %v17254_v37  ;;  %v7584_v5 = vand.u32 4294901760, %v7583_v12  ;;  %v17262_v37 = vand.u32 4294901760, %v15946_v14 }
 0xd18   :  { %13137 = vmatprep.subr.bf16.mxu0 %v17397_v6  ;;  %v7604_v12 = vsub.f32 %v15950_v53, %v17264_v7 }
 0xd19   :  { %v16066_v3 = vpack.c.bf16 %v6920_v40, %v6913_v0  ;;  %v6934_v29 = vand.u32 4294901760, %v6933_v8  ;;  %v17263_v0 = vand.u32 4294901760, %v15948_v41  ;;  %v6947_v58 = vsub.f32 %v15946_v14, %v17262_v37 }
 0xd1a   :  { %v16091_v8 = vpack.c.bf16 %v7591_v57, %v7584_v5  ;;  %v7605_v37 = vand.u32 4294901760, %v7604_v12  ;;  %v17274_v5 = vand.u32 4294901760, %v15960_v21 }
 0xd1b   :  { %v16079_v40 = vpack.c.bf16 %v6934_v29, %v6927_v55  ;;  %v7597_v16 = vsub.f32 %v15948_v41, %v17263_v0  ;;  %v17265_v55 = vand.u32 4294901760, %v15953_v20  ;;  %v17270_v29 = vand.u32 4294901760, %v15955_v22 }
 0xd1c   :  { %v6948_v11 = vand.u32 4294901760, %v6947_v58 }
 0xd1d   :  { %v7598_v49 = vand.u32 4294901760, %v7597_v16  ;;  %v6954_v0 = vsub.f32 %v15953_v20, %v17265_v55  ;;  %v6961_v57 = vsub.f32 %v15955_v22, %v17270_v29  ;;  %v7618_v55 = vsub.f32 %v15960_v21, %v17274_v5 }
 0xd1e   :  { %v16106_v7 = vpack.c.bf16 %v6948_v11, %v6941_v34  ;;  %v17280_v29 = vand.u32 4294901760, %v15972_v36  ;;  %v17282_v11 = vand.u32 4294901760, %v15976_v33 }
 0xd1f   :  { %v16111_v58 = vpack.c.bf16 %v7605_v37, %v7598_v49  ;;  %v6955_v16 = vand.u32 4294901760, %v6954_v0  ;;  %v6962_v12 = vand.u32 4294901760, %v6961_v57  ;;  %v7619_v60 = vand.u32 4294901760, %v7618_v55 }
 0xd20   :  { %v6968_v37 = vsub.f32 %v15970_v45, %v17277_v24  ;;  %v6975_v49 = vsub.f32 %v15972_v36, %v17280_v29  ;;  %v7625_v0 = vsub.f32 %v15976_v33, %v17282_v11  ;;  %v7632_v55 = vsub.f32 %v15978_v15, %v17281_v28 }
 0xd21   :  { %v16119_v34 = vpack.c.bf16 %v6962_v12, %v6955_v16  ;;  %v16131_v57 = vpack.c.bf16 %v7619_v60, %v7612_v18  ;;  %v13162_v29 = vpack.c.bf16 %v15683_v39, %v15676_v31  ;;  %v13021_v60 = vpack.c.bf16 %v15697_v19, %v15695_v62 }
 0xd22   :  { %v6969_v10 = vand.u32 4294901760, %v6968_v37  ;;  %v6976_v16 = vand.u32 4294901760, %v6975_v49  ;;  %v7626_v12 = vand.u32 4294901760, %v7625_v0  ;;  %v7633_v5 = vand.u32 4294901760, %v7632_v55 }
 0xd24   :  { %v13015_v42 = vpack.c.bf16 %v6976_v16, %v6969_v10  ;;  %v13159_v24 = vpack.c.bf16 %v7633_v5, %v7626_v12  ;;  %v9472_v10 = vld [vmem:[%s17102_s12] ss:$0 sm:$0xff] }
 0xdcd   :  { %v6750_v16 = vpop.f32.mrb[16].mxu0 }
 0xdce   :  { %v13567_v5 = vadd.f32 %v9472_v10, %v6750_v16  ;;  %v11312_v49 = vpop.f32.mrb[17].mxu0  ;;  %v17519_v10 = vld [vmem:[#allocation31_spill] sm:$0xff]  ;;  %v17520_v16 = vld [vmem:[#allocation32_spill] sm:$0xff] }
 0xdcf   :  { %v17516_v49 = vld [vmem:[#allocation21_spill] sm:$0xff] }
 0xdd0   :  { %v16171_v12 = vand.u32 4294901760, %v13567_v5  ;;  %v6754_v28 = vmul.f32 %v13567_v5, %v13567_v5 }
 0xdd2   :  { %v16174_v37 = vsub.f32 %v13567_v5, %v16171_v12  ;;  %v6756_v11 = vsel %vm6755_vm6, %v6754_v28, 0.0  ;;  %v17498_v28 = vpack.c.bf16 %v15751_v23, %v15749_v46  ;;  %v17517_v5 = vld [vmem:[#allocation27_spill] sm:$0xff] }
 0xdd3   :  { %6757 = vadd.xlane.f32.xlu0 %v6756_v11  ;;  %v17512_v11 = vld [vmem:[#allocation18_spill] sm:$0xff] }
 0xdd4   :  { %v16178_v0 = vand.u32 4294901760, %v16174_v37 }
 0xdd6   :  { %17494 = vst [vmem:[#allocation35_spill] sm:$0xff] %v16178_v0  ;;  %v6859_v55 = vsub.f32 %v16174_v37, %v16178_v0 }
 0xdd8   :  { %v16182_v18 = vand.u32 4294901760, %v6859_v55  ;;  %v17518_v55 = vld [vmem:[#allocation28_spill] sm:$0xff] }
 0xdda   :  { %11346 = vmatmul.mubr.f32.vlgmr.msra.gmra.mrb[20].mxu1 %v16182_v18  ;;  %11556 = vmatmul.mubr.f32.vlgmr.msra.gmra.mrb[18].mxu0 %v16182_v18 }
 0xddb   :  { %12995 = vmatpush3.bf16.msra.mxu1 %v16006_v63  ;;  %13139 = vmatpush3.bf16.msra.mxu0 %v16015_v38  ;;  %v17503_v63 = vpack.c.bf16 %v15950_v53, %v15948_v41  ;;  %v17504_v38 = vpack.c.bf16 %v15955_v22, %v15953_v20 }
 0xddc   :  { %12996 = vmatprep.subr.bf16.mxu1 %v17397_v6  ;;  %13140 = vmatprep.subr.bf16.mxu0 %v17397_v6 }
 0xddd   :  { %11380 = vmatprep.mubr.msk.f32.mxu1 %vm13910_vm1, %v17348_v30  ;;  %11590 = vmatprep.mubr.msk.f32.mxu0 %vm13910_vm1, %v17348_v30 }
 0xddf   :  { %12998 = vmatpush3.bf16.msra.mxu1 %v16022_v54  ;;  %13142 = vmatpush3.bf16.msra.mxu0 %v16028_v1  ;;  %v17502_v54 = vpack.c.bf16 %v15946_v14, %v15944_v27  ;;  %v17505_v1 = vpack.c.bf16 %v15960_v21, %v15958_v59 }
 0xde0   :  { %12999 = vmatprep.subr.bf16.mxu1 %v17397_v6  ;;  %13143 = vmatprep.subr.bf16.mxu0 %v17397_v6 }
 0xde3   :  { %13001 = vmatpush3.bf16.msra.mxu1 %v16043_v48  ;;  %13145 = vmatpush3.bf16.msra.mxu0 %v16056_v50  ;;  %v17501_v48 = vpack.c.bf16 %v15791_v17, %v15786_v47  ;;  %v17506_v50 = vpack.c.bf16 %v15972_v36, %v15970_v45 }
 0xde4   :  { %13002 = vmatprep.subr.bf16.mxu1 %v17397_v6  ;;  %13146 = vmatprep.subr.bf16.mxu0 %v17397_v6 }
 0xde7   :  { %13004 = vmatpush3.bf16.msra.mxu1 %v16066_v3  ;;  %13148 = vmatpush3.bf16.msra.mxu0 %v16071_v51  ;;  %v17499_v3 = vpack.c.bf16 %v17493_v4, %v17492_v61  ;;  %v17507_v51 = vpack.c.bf16 %v15978_v15, %v15976_v33 }
 0xde8   :  { %13005 = vmatprep.subr.bf16.mxu1 %v17397_v6  ;;  %13149 = vmatprep.subr.bf16.mxu0 %v17397_v6 }
 0xdeb   :  { %13007 = vmatpush3.bf16.msra.mxu1 %v16079_v40  ;;  %13151 = vmatpush3.bf16.msra.mxu0 %v16091_v8  ;;  %v17508_v40 = vld [vmem:[#allocation19_spill] sm:$0xff]  ;;  %v17509_v8 = vld [vmem:[#allocation24_spill] sm:$0xff] }
 0xdec   :  { %13008 = vmatprep.subr.bf16.mxu1 %v17397_v6  ;;  %13152 = vmatprep.subr.bf16.mxu0 %v17397_v6 }
 0xdef   :  { %13010 = vmatpush3.bf16.msra.mxu1 %v16106_v7  ;;  %13154 = vmatpush3.bf16.msra.mxu0 %v16111_v58  ;;  %v17500_v7 = vpack.c.bf16 %v15779_v25, %v15777_v2  ;;  %v17511_v58 = vld [vmem:[#allocation25_spill] sm:$0xff] }
 0xdf0   :  { %13011 = vmatprep.subr.bf16.mxu1 %v17397_v6  ;;  %13155 = vmatprep.subr.bf16.mxu0 %v17397_v6 }
 0xdf3   :  { %13013 = vmatpush3.bf16.msra.mxu1 %v16119_v34  ;;  %13157 = vmatpush3.bf16.msra.mxu0 %v16131_v57  ;;  %v17513_v34 = vld [vmem:[#allocation26_spill] sm:$0xff] }
 0xdf4   :  { %13014 = vmatprep.subr.bf16.mxu1 %v17397_v6  ;;  %13158 = vmatprep.subr.bf16.mxu0 %v17397_v6  ;;  %v17514_v57 = vld [vmem:[#allocation22_spill] sm:$0xff] }
 0xdf7   :  { %13016 = vmatpush3.bf16.msra.mxu1 %v13015_v42  ;;  %13160 = vmatpush3.bf16.msra.mxu0 %v13159_v24  ;;  %v17495_v24 = vpack.c.bf16 %v15709_v26, %v15704_v35  ;;  %v17497_v42 = vpack.c.bf16 %v15737_v13, %v15732_v9 }
 0xdf8   :  { %13017 = vmatprep.subr.bf16.mxu1 %v17397_v6  ;;  %13161 = vmatprep.subr.bf16.mxu0 %v17397_v6 }
 0xdfa   :  { %11381 = vmatmul.mubr.f32.vlgmr.msra.gmra.mrb[20].mxu1 %v16171_v12  ;;  %11591 = vmatmul.mubr.f32.vlgmr.msra.gmra.mrb[18].mxu0 %v16171_v12 }
 0xdfb   :  { %13019 = vmatpush3.bf16.msra.mxu1 %v13018_v52  ;;  %13163 = vmatpush3.bf16.msra.mxu0 %v13162_v29  ;;  %v17496_v52 = vpack.c.bf16 %v15725_v56, %v15717_v43  ;;  %v17510_v29 = vld [vmem:[#allocation17_spill] sm:$0xff] }
 0xdfc   :  { %13020 = vmatprep.subr.bf16.mxu1 %v17397_v6  ;;  %13164 = vmatprep.subr.bf16.mxu0 %v17397_v6 }
 0xdfd   :  { %11415 = vmatprep.mubr.msk.f32.mxu1 %vm13910_vm1, %v17348_v30  ;;  %11625 = vmatprep.mubr.msk.f32.mxu0 %vm13910_vm1, %v17348_v30 }
 0xdff   :  { %13022 = vmatpush3.bf16.msra.mxu1 %v13021_v60  ;;  %13166 = vmatpush3.bf16.msra.mxu0 %v17495_v24  ;;  %v17515_v60 = vld [vmem:[#allocation29_spill] sm:$0xff] }
 0xe00   :  { %13023 = vmatprep.subr.bf16.mxu1 %v17397_v6  ;;  %13167 = vmatprep.subr.bf16.mxu0 %v17397_v6  ;;  %v17521_v24 = vld [vmem:[#allocation33_spill] sm:$0xff] }
 0xe03   :  { %13025 = vmatpush3.bf16.msra.mxu1 %v17496_v52  ;;  %13169 = vmatpush3.bf16.msra.mxu0 %v17497_v42  ;;  %v17522_v52 = vld [vmem:[#allocation34_spill] sm:$0xff] }
 0xe04   :  { %13026 = vmatprep.subr.bf16.mxu1 %v17397_v6  ;;  %13170 = vmatprep.subr.bf16.mxu0 %v17397_v6  ;;  %v17523_v42 = vld [vmem:[#allocation30_spill] sm:$0xff] }
 0xe07   :  { %13028 = vmatpush3.bf16.msra.mxu1 %v17498_v28  ;;  %13172 = vmatpush3.bf16.msra.mxu0 %v17499_v3  ;;  %v17524_v28 = vand.u32 4294901760, %v15669_v32  ;;  %v17525_v3 = vand.u32 4294901760, %v15671_v44  ;;  %v17528_v32 = vand.u32 4294901760, %v15695_v62  ;;  %v17529_v44 = vand.u32 4294901760, %v15697_v19 }
 0xe08   :  { %13029 = vmatprep.subr.bf16.mxu1 %v17397_v6  ;;  %13173 = vmatprep.subr.bf16.mxu0 %v17397_v6  ;;  %v17532_v62 = vand.u32 4294901760, %v15717_v43  ;;  %v17533_v19 = vand.u32 4294901760, %v15725_v56  ;;  %v17538_v43 = vand.u32 4294901760, %v17492_v61  ;;  %v17539_v56 = vand.u32 4294901760, %v17493_v4 }
 0xe09   :  { %v17544_v61 = vand.u32 4294901760, %v15944_v27  ;;  %v17545_v4 = vand.u32 4294901760, %v15946_v14  ;;  %v17550_v27 = vand.u32 4294901760, %v15958_v59  ;;  %v17551_v14 = vand.u32 4294901760, %v15960_v21  ;;  %v8107_v59 = vld [vmem:[%s17107_s17] sm:$0xff]  ;;  %v8108_v21 = vld [vmem:[%s17107_s17 + $0x8] sm:$0xff] }
 0xe0b   :  { %13031 = vmatpush3.bf16.msra.mxu1 %v17500_v7  ;;  %13175 = vmatpush3.bf16.msra.mxu0 %v17501_v48  ;;  %v13066_v7 = vpack.c.bf16 %v17525_v3, %v17524_v28  ;;  %v17526_v48 = vand.u32 4294901760, %v15676_v31  ;;  %v17530_v31 = vand.u32 4294901760, %v15704_v35  ;;  %v13072_v35 = vpack.c.bf16 %v17533_v19, %v17532_v62  ;;  %v8776_v62 = vld [vmem:[#allocation10 + $0x20] sm:$0xff] }
 0xe0c   :  { %13032 = vmatprep.subr.bf16.mxu1 %v17397_v6  ;;  %13176 = vmatprep.subr.bf16.mxu0 %v17397_v6  ;;  %v17536_v28 = vand.u32 4294901760, %v15749_v46  ;;  %v17537_v3 = vand.u32 4294901760, %v15751_v23  ;;  %v17542_v46 = vand.u32 4294901760, %v15786_v47  ;;  %v17543_v23 = vand.u32 4294901760, %v15791_v17 }
 0xe0d   :  { %v17548_v47 = vand.u32 4294901760, %v15953_v20  ;;  %v17549_v17 = vand.u32 4294901760, %v15955_v22  ;;  %v17554_v20 = vand.u32 4294901760, %v15976_v33  ;;  %v17555_v22 = vand.u32 4294901760, %v15978_v15  ;;  %v8109_v15 = vld [vmem:[%s17107_s17 + $0x10] sm:$0xff] }
 0xe0e   :  { %v8131_v33 = vand.u32 4294901760, %v8107_v59 }
 0xe0f   :  { %13034 = vmatpush3.bf16.msra.mxu1 %v17502_v54  ;;  %13178 = vmatpush3.bf16.msra.mxu0 %v17503_v63  ;;  %v17527_v54 = vand.u32 4294901760, %v15683_v39  ;;  %v17531_v39 = vand.u32 4294901760, %v15709_v26  ;;  %v17534_v26 = vand.u32 4294901760, %v15732_v9  ;;  %v17540_v9 = vand.u32 4294901760, %v15777_v2 }
 0xe10   :  { %13035 = vmatprep.subr.bf16.mxu1 %v17397_v6  ;;  %13179 = vmatprep.subr.bf16.mxu0 %v17397_v6  ;;  %v17546_v2 = vand.u32 4294901760, %v15948_v41  ;;  %v17552_v41 = vand.u32 4294901760, %v15970_v45  ;;  %v8772_v45 = vld [vmem:[#allocation10] sm:$0xff] }
 0xe11   :  { %v13210_v63 = vpack.c.bf16 %v17527_v54, %v17526_v48  ;;  %v13219_v48 = vpack.c.bf16 %v17539_v56, %v17538_v43  ;;  %v8779_v43 = vld [vmem:[#allocation10 + $0x38] sm:$0xff] }
 0xe13   :  { %13037 = vmatpush3.bf16.msra.mxu1 %v17504_v38  ;;  %13181 = vmatpush3.bf16.msra.mxu0 %v17505_v1  ;;  %v13069_v38 = vpack.c.bf16 %v17529_v44, %v17528_v32  ;;  %v13213_v1 = vpack.c.bf16 %v17531_v39, %v17530_v31  ;;  %v13081_v32 = vpack.c.bf16 %v17545_v4, %v17544_v61  ;;  %v8116_v4 = vld [vmem:[%s17107_s17 + $0x48] sm:$0xff] }
 0xe14   :  { %13038 = vmatprep.subr.bf16.mxu1 %v17397_v6  ;;  %13182 = vmatprep.subr.bf16.mxu0 %v17397_v6  ;;  %v13228_v31 = vpack.c.bf16 %v17551_v14, %v17550_v27 }
 0xe17   :  { %13040 = vmatpush3.bf16.msra.mxu1 %v17506_v50  ;;  %13184 = vmatpush3.bf16.msra.mxu0 %v17507_v51  ;;  %v17535_v50 = vand.u32 4294901760, %v15737_v13  ;;  %v17541_v13 = vand.u32 4294901760, %v15779_v25  ;;  %v17547_v25 = vand.u32 4294901760, %v15950_v53  ;;  %v17553_v53 = vand.u32 4294901760, %v15972_v36  ;;  %v8773_v36 = vld [vmem:[#allocation10 + $0x8] sm:$0xff] }
 0xe18   :  { %13041 = vmatprep.subr.bf16.mxu1 %v17397_v6  ;;  %13185 = vmatprep.subr.bf16.mxu0 %v17397_v6 }
 0xe19   :  { %v13216_v51 = vpack.c.bf16 %v17535_v50, %v17534_v26  ;;  %v13078_v54 = vpack.c.bf16 %v17541_v13, %v17540_v9  ;;  %v13225_v44 = vpack.c.bf16 %v17547_v25, %v17546_v2  ;;  %v13087_v39 = vpack.c.bf16 %v17553_v53, %v17552_v41  ;;  %v8781_v2 = vld [vmem:[#allocation10 + $0x48] sm:$0xff] }
 0xe1a   :  { %11416 = vmatmul.mubr.f32.vlgmr.msra.gmra.mrb[20].mxu1 %v16174_v37  ;;  %11626 = vmatmul.mubr.f32.vlgmr.msra.gmra.mrb[18].mxu0 %v16174_v37  ;;  %v8808_v50 = vand.u32 4294901760, %v8776_v62  ;;  %v8117_v41 = vld [vmem:[%s17107_s17 + $0x50] sm:$0xff] }
 0xe1b   :  { %13043 = vmatpush3.bf16.msra.mxu1 %v17508_v40  ;;  %13187 = vmatpush3.bf16.msra.mxu0 %v17509_v8 }
 0xe1c   :  { %13044 = vmatprep.subr.bf16.mxu1 %v17397_v6  ;;  %13188 = vmatprep.subr.bf16.mxu0 %v17397_v6 }
 0xe1d   :  { %11450 = vmatprep.mubr.msk.f32.mxu1 %vm13910_vm1, %v17348_v30  ;;  %11660 = vmatprep.mubr.msk.f32.mxu0 %vm13910_vm1, %v17348_v30 }
 0xe1f   :  { %13046 = vmatpush3.bf16.msra.mxu1 %v17510_v29  ;;  %13190 = vmatpush3.bf16.msra.mxu0 %v17511_v58 }
 0xe20   :  { %13047 = vmatprep.subr.bf16.mxu1 %v17397_v6  ;;  %13191 = vmatprep.subr.bf16.mxu0 %v17397_v6 }
 0xe23   :  { %13049 = vmatpush3.bf16.msra.mxu1 %v17512_v11  ;;  %13193 = vmatpush3.bf16.msra.mxu0 %v17513_v34 }
 0xe24   :  { %13050 = vmatprep.subr.bf16.mxu1 %v17397_v6  ;;  %13194 = vmatprep.subr.bf16.mxu0 %v17397_v6 }
 0xe27   :  { %13052 = vmatpush3.bf16.msra.mxu1 %v17514_v57  ;;  %13196 = vmatpush3.bf16.msra.mxu0 %v17515_v60 }
 0xe28   :  { %13053 = vmatprep.subr.bf16.mxu1 %v17397_v6  ;;  %13197 = vmatprep.subr.bf16.mxu0 %v17397_v6 }
 0xe2b   :  { %13055 = vmatpush3.bf16.msra.mxu1 %v17516_v49  ;;  %13199 = vmatpush3.bf16.msra.mxu0 %v17517_v5 }
 0xe2c   :  { %13056 = vmatprep.subr.bf16.mxu1 %v17397_v6  ;;  %13200 = vmatprep.subr.bf16.mxu0 %v17397_v6 }
 0xe2f   :  { %13058 = vmatpush3.bf16.msra.mxu1 %v17518_v55  ;;  %13202 = vmatpush3.bf16.msra.mxu0 %v17519_v10 }
 0xe30   :  { %13059 = vmatprep.subr.bf16.mxu1 %v17397_v6  ;;  %13203 = vmatprep.subr.bf16.mxu0 %v17397_v6 }
 0xe33   :  { %13061 = vmatpush3.bf16.msra.mxu1 %v17520_v16  ;;  %13205 = vmatpush3.bf16.msra.mxu0 %v17521_v24 }
 0xe34   :  { %13062 = vmatprep.subr.bf16.mxu1 %v17397_v6  ;;  %13206 = vmatprep.subr.bf16.mxu0 %v17397_v6 }
 0xe37   :  { %13064 = vmatpush3.bf16.msra.mxu1 %v17522_v52  ;;  %13208 = vmatpush3.bf16.msra.mxu0 %v17523_v42 }
 0xe38   :  { %13065 = vmatprep.subr.bf16.mxu1 %v17397_v6  ;;  %13209 = vmatprep.subr.bf16.mxu0 %v17397_v6 }
 0xe3a   :  { %11451 = vmatmul.mubr.f32.vlgmr.msra.gmra.mrb[20].mxu1 %v16178_v0  ;;  %11661 = vmatmul.mubr.f32.vlgmr.msra.gmra.mrb[18].mxu0 %v16178_v0 }
 0xe3b   :  { %13067 = vmatpush3.bf16.msra.mxu1 %v13066_v7  ;;  %13211 = vmatpush3.bf16.msra.mxu0 %v13210_v63  ;;  %v13075_v7 = vpack.c.bf16 %v17537_v3, %v17536_v28  ;;  %v13222_v63 = vpack.c.bf16 %v17543_v23, %v17542_v46  ;;  %v8113_v28 = vld [vmem:[%s17107_s17 + $0x30] sm:$0xff]  ;;  %v8114_v3 = vld [vmem:[%s17107_s17 + $0x38] sm:$0xff]  ;;  %v8817_v46 = vand.u32 4294901760, %v8779_v43  ;;  %v8115_v23 = vld [vmem:[%s17107_s17 + $0x40] sm:$0xff] }
 0xe3c   :  { %13068 = vmatprep.subr.bf16.mxu1 %v17397_v6  ;;  %13212 = vmatprep.subr.bf16.mxu0 %v17397_v6  ;;  %v8149_v56 = vand.u32 4294901760, %v8113_v28 }
 0xe3d   :  { %11485 = vmatprep.mubr.msk.f32.mxu1 %vm13910_vm1, %v17348_v30  ;;  %11695 = vmatprep.mubr.msk.f32.mxu0 %vm13910_vm1, %v17348_v30 }
 0xe3f   :  { %13070 = vmatpush3.bf16.msra.mxu1 %v13069_v38  ;;  %13214 = vmatpush3.bf16.msra.mxu0 %v13213_v1  ;;  %v13084_v38 = vpack.c.bf16 %v17549_v17, %v17548_v47  ;;  %v13231_v1 = vpack.c.bf16 %v17555_v22, %v17554_v20  ;;  %v8823_v22 = vand.u32 4294901760, %v8781_v2 }
 0xe40   :  { %13071 = vmatprep.subr.bf16.mxu1 %v17397_v6  ;;  %13215 = vmatprep.subr.bf16.mxu0 %v17397_v6 }
 0xe43   :  { %13073 = vmatpush3.bf16.msra.mxu1 %v13072_v35  ;;  %13217 = vmatpush3.bf16.msra.mxu0 %v13216_v51 }
 0xe44   :  { %13074 = vmatprep.subr.bf16.mxu1 %v17397_v6  ;;  %13218 = vmatprep.subr.bf16.mxu0 %v17397_v6 }
 0xe47   :  { %13076 = vmatpush3.bf16.msra.mxu1 %v13075_v7  ;;  %13220 = vmatpush3.bf16.msra.mxu0 %v13219_v48  ;;  %v8778_v7 = vld [vmem:[#allocation10 + $0x30] sm:$0xff]  ;;  %v8152_v48 = vand.u32 4294901760, %v8114_v3 }
 0xe48   :  { %13077 = vmatprep.subr.bf16.mxu1 %v17397_v6  ;;  %13221 = vmatprep.subr.bf16.mxu0 %v17397_v6 }
 0xe49   :  { %v16524_v14 = vpack.c.bf16 %v8152_v48, %v8149_v56 }
 0xe4b   :  { %13079 = vmatpush3.bf16.msra.mxu1 %v13078_v54  ;;  %13223 = vmatpush3.bf16.msra.mxu0 %v13222_v63  ;;  %v8814_v54 = vand.u32 4294901760, %v8778_v7  ;;  %v16503_v63 = vsub.f32 %v8107_v59, %v8131_v33  ;;  %17560 = vst [vmem:[#allocation23_spill] sm:$0xff] %v16524_v14  ;;  %v8782_v59 = vld [vmem:[#allocation10 + $0x50] sm:$0xff] }
 0xe4c   :  { %13080 = vmatprep.subr.bf16.mxu1 %v17397_v6  ;;  %13224 = vmatprep.subr.bf16.mxu0 %v17397_v6 }
 0xe4d   :  { %v16531_v53 = vpack.c.bf16 %v8817_v46, %v8814_v54 }
 0xe4f   :  { %13082 = vmatpush3.bf16.msra.mxu1 %v13081_v32  ;;  %13226 = vmatpush3.bf16.msra.mxu0 %v13225_v44  ;;  %v8780_v32 = vld [vmem:[#allocation10 + $0x40] sm:$0xff]  ;;  %17561 = vst [vmem:[#allocation20_spill] sm:$0xff] %v16531_v53 }
 0xe50   :  { %13083 = vmatprep.subr.bf16.mxu1 %v17397_v6  ;;  %13227 = vmatprep.subr.bf16.mxu0 %v17397_v6  ;;  %v8820_v20 = vand.u32 4294901760, %v8780_v32 }
 0xe53   :  { %13085 = vmatpush3.bf16.msra.mxu1 %v13084_v38  ;;  %13229 = vmatpush3.bf16.msra.mxu0 %v13228_v31  ;;  %v8155_v31 = vand.u32 4294901760, %v8115_v23 }
 0xe54   :  { %13086 = vmatprep.subr.bf16.mxu1 %v17397_v6  ;;  %13230 = vmatprep.subr.bf16.mxu0 %v17397_v6 }
 0xe57   :  { %13088 = vmatpush3.bf16.msra.mxu1 %v13087_v39  ;;  %13232 = vmatpush3.bf16.msra.mxu0 %v13231_v1  ;;  %v8158_v39 = vand.u32 4294901760, %v8116_v4  ;;  %v8118_v1 = vld [vmem:[%s17107_s17 + $0x58] sm:$0xff] }
 0xe58   :  { %13089 = vmatprep.subr.bf16.mxu1 %v17397_v6  ;;  %13233 = vmatprep.subr.bf16.mxu0 %v17397_v6 }
 0xe5a   :  { %11486 = vmatmul.mubr.f32.vlgmr.msra.gmra.mrb[20].mxu1 %v16171_v12  ;;  %11696 = vmatmul.mubr.f32.vlgmr.msra.gmra.mrb[18].mxu0 %v16171_v12 }
 0xe5b   :  { %13091 = vmatpush3.bf16.msra.mxu1 %v17508_v40  ;;  %13235 = vmatpush3.bf16.msra.mxu0 %v17509_v8  ;;  %v8134_v40 = vand.u32 4294901760, %v8108_v21  ;;  %v8796_v8 = vand.u32 4294901760, %v8772_v45 }
 0xe5c   :  { %13092 = vmatprep.subr.bf16.mxu1 %v17397_v6  ;;  %13236 = vmatprep.subr.bf16.mxu0 %v17397_v6 }
 0xe5d   :  { %11520 = vmatprep.mubr.msk.f32.mxu1 %vm13910_vm1, %v17348_v30  ;;  %11730 = vmatprep.mubr.msk.f32.mxu0 %vm13910_vm1, %v17348_v30  ;;  %v16505_v61 = vsub.f32 %v8108_v21, %v8134_v40  ;;  %v16512_v25 = vsub.f32 %v8772_v45, %v8796_v8  ;;  %v16536_v21 = vld [vmem:[#allocation10 + $0x58] sm:$0xff] }
 0xe5f   :  { %13094 = vmatpush3.bf16.msra.mxu1 %v17510_v29  ;;  %13238 = vmatpush3.bf16.msra.mxu0 %v17511_v58  ;;  %v8799_v29 = vand.u32 4294901760, %v8773_v36  ;;  %v8110_v58 = vld [vmem:[%s17107_s17 + $0x18] sm:$0xff] }
 0xe60   :  { %13095 = vmatprep.subr.bf16.mxu1 %v17397_v6  ;;  %13239 = vmatprep.subr.bf16.mxu0 %v17397_v6 }
 0xe61   :  { %v16514_v44 = vsub.f32 %v8773_v36, %v8799_v29 }
 0xe63   :  { %13097 = vmatpush3.bf16.msra.mxu1 %v17512_v11  ;;  %13241 = vmatpush3.bf16.msra.mxu0 %v17513_v34  ;;  %v8774_v11 = vld [vmem:[#allocation10 + $0x10] sm:$0xff]  ;;  %v8775_v34 = vld [vmem:[#allocation10 + $0x18] sm:$0xff] }
 0xe64   :  { %13098 = vmatprep.subr.bf16.mxu1 %v17397_v6  ;;  %13242 = vmatprep.subr.bf16.mxu0 %v17397_v6 }
 0xe67   :  { %13100 = vmatpush3.bf16.msra.mxu1 %v17514_v57  ;;  %13244 = vmatpush3.bf16.msra.mxu0 %v17515_v60  ;;  %v8137_v57 = vand.u32 4294901760, %v8109_v15  ;;  %v8140_v60 = vand.u32 4294901760, %v8110_v58 }
 0xe68   :  { %13101 = vmatprep.subr.bf16.mxu1 %v17397_v6  ;;  %13245 = vmatprep.subr.bf16.mxu0 %v17397_v6 }
 0xe69   :  { %v16516_v47 = vsub.f32 %v8109_v15, %v8137_v57  ;;  %v16518_v17 = vsub.f32 %v8110_v58, %v8140_v60  ;;  %v16557_v58 = vld [vmem:[%s17107_s17 + $0x60] sm:$0xff] }
 0xe6b   :  { %13103 = vmatpush3.bf16.msra.mxu1 %v17516_v49  ;;  %13247 = vmatpush3.bf16.msra.mxu0 %v17517_v5  ;;  %v8802_v49 = vand.u32 4294901760, %v8774_v11  ;;  %v8805_v5 = vand.u32 4294901760, %v8775_v34 }
 0xe6c   :  { %13104 = vmatprep.subr.bf16.mxu1 %v17397_v6  ;;  %13248 = vmatprep.subr.bf16.mxu0 %v17397_v6 }
 0xe6d   :  { %v16478_v19 = vpack.c.bf16 %v8805_v5, %v8802_v49  ;;  %v16520_v38 = vsub.f32 %v8774_v11, %v8802_v49  ;;  %v16522_v27 = vsub.f32 %v8775_v34, %v8805_v5  ;;  %v16562_v11 = vld [vmem:[%s17107_s17 + $0x68] sm:$0xff]  ;;  %v8161_v34 = vand.u32 4294901760, %v8117_v41 }
 0xe6e   :  { %v8829_v49 = vand.u32 4294901760, %v16536_v21  ;;  %v16565_v5 = vld [vmem:[#allocation10 + $0x60] sm:$0xff] }
 0xe6f   :  { %13106 = vmatpush3.bf16.msra.mxu1 %v17518_v55  ;;  %13250 = vmatpush3.bf16.msra.mxu0 %v17519_v10  ;;  %v16462_v55 = vpack.c.bf16 %v8134_v40, %v8131_v33  ;;  %v16464_v10 = vpack.c.bf16 %v8799_v29, %v8796_v8  ;;  %17557 = vst [vmem:[#allocation37_spill] sm:$0xff] %v16478_v19 }
 0xe70   :  { %13107 = vmatprep.subr.bf16.mxu1 %v17397_v6  ;;  %13251 = vmatprep.subr.bf16.mxu0 %v17397_v6  ;;  %v16542_v33 = vsub.f32 %v8776_v62, %v8808_v50  ;;  %v16548_v40 = vsub.f32 %v8113_v28, %v8149_v56  ;;  %v16550_v8 = vsub.f32 %v8114_v3, %v8152_v48 }
 0xe71   :  { %v16552_v29 = vsub.f32 %v8778_v7, %v8814_v54  ;;  %v16573_v62 = vpack.c.bf16 %v8158_v39, %v8155_v31  ;;  %v16585_v28 = vsub.f32 %v8780_v32, %v8820_v20  ;;  %v16587_v3 = vsub.f32 %v8781_v2, %v8823_v22  ;;  %v16610_v32 = vld [vmem:[%s17107_s17 + $0x78] sm:$0xff] }
 0xe72   :  { %v17286_v7 = vand.u32 4294901760, %v16565_v5  ;;  %v16593_v48 = vsub.f32 %v8117_v41, %v8161_v34  ;;  %v16612_v2 = vld [vmem:[#allocation10 + $0x70] sm:$0xff] }
 0xe73   :  { %13109 = vmatpush3.bf16.msra.mxu1 %v17520_v16  ;;  %13253 = vmatpush3.bf16.msra.mxu0 %v17521_v24  ;;  %v8111_v16 = vld [vmem:[%s17107_s17 + $0x20] sm:$0xff]  ;;  %v8112_v24 = vld [vmem:[%s17107_s17 + $0x28] sm:$0xff]  ;;  %17562 = vst [vmem:[#allocation19_spill] sm:$0xff] %v16573_v62 }
 0xe74   :  { %13110 = vmatprep.subr.bf16.mxu1 %v17397_v6  ;;  %13254 = vmatprep.subr.bf16.mxu0 %v17397_v6  ;;  %v8143_v35 = vand.u32 4294901760, %v8111_v16  ;;  %v8146_v26 = vand.u32 4294901760, %v8112_v24 }
 0xe76   :  { %v16496_v9 = vpack.c.bf16 %v8146_v26, %v8143_v35  ;;  %v16538_v45 = vsub.f32 %v8111_v16, %v8143_v35  ;;  %v16540_v36 = vsub.f32 %v8112_v24, %v8146_v26  ;;  %v16567_v16 = vld [vmem:[#allocation10 + $0x68] sm:$0xff]  ;;  %v16571_v24 = vsub.f32 %v8779_v43, %v8817_v46 }
 0xe77   :  { %13112 = vmatpush3.bf16.msra.mxu1 %v17522_v52  ;;  %13256 = vmatpush3.bf16.msra.mxu0 %v17523_v42  ;;  %v8777_v52 = vld [vmem:[#allocation10 + $0x28] sm:$0xff]  ;;  %v16476_v42 = vpack.c.bf16 %v8140_v60, %v8137_v57  ;;  %v8164_v57 = vand.u32 4294901760, %v8118_v1  ;;  %v8826_v60 = vand.u32 4294901760, %v8782_v59  ;;  %v16579_v35 = vsub.f32 %v8115_v23, %v8155_v31  ;;  %v16614_v31 = vld [vmem:[#allocation10 + $0x78] sm:$0xff] }
 0xe78   :  { %13257 = vmatprep.subr.bf16.mxu1 %v17397_v6  ;;  %13401 = vmatprep.subr.bf16.mxu0 %v17397_v6  ;;  %v8811_v51 = vand.u32 4294901760, %v8777_v52  ;;  %17558 = vst [vmem:[#allocation38_spill] sm:$0xff] %v16496_v9  ;;  %v16581_v26 = vsub.f32 %v8116_v4, %v8158_v39  ;;  %v17285_v43 = vand.u32 4294901760, %v16567_v16  ;;  %v16600_v46 = vld [vmem:[%s17107_s17 + $0x70] sm:$0xff]  ;;  %v16654_v23 = vsub.f32 %v16536_v21, %v8829_v49 }
 0xe79   :  { %17556 = vst [vmem:[#allocation36_spill] sm:$0xff] %v16476_v42  ;;  %v16591_v56 = vpack.c.bf16 %v8164_v57, %v8161_v34  ;;  %v16595_v54 = vpack.c.bf16 %v8829_v49, %v8826_v60  ;;  %v16605_v4 = vsub.f32 %v8118_v1, %v8164_v57  ;;  %v17568_v57 = vand.u32 4294901760, %v16503_v63 }
 0xe7a   :  { %11521 = vmatmul.mubr.f32.vlgmr.msra.gmra.mrb[20].mxu1 %v16171_v12  ;;  %11731 = vmatmul.mubr.f32.vlgmr.msra.gmra.mrb[18].mxu0 %v16171_v12  ;;  %v16498_v13 = vpack.c.bf16 %v8811_v51, %v8808_v50  ;;  %v16546_v15 = vsub.f32 %v8777_v52, %v8811_v51  ;;  %v16575_v52 = vpack.c.bf16 %v8823_v22, %v8820_v20  ;;  %v8167_v50 = vand.u32 4294901760, %v16557_v58 }
 0xe7b   :  { %13259 = vmatpush3.bf16.msra.mxu1 %v16462_v55  ;;  %13403 = vmatpush3.bf16.msra.mxu0 %v16464_v10  ;;  %v8170_v51 = vand.u32 4294901760, %v16562_v11  ;;  %17564 = vst [vmem:[#allocation17_spill] sm:$0xff] %v16591_v56  ;;  %17565 = vst [vmem:[#allocation25_spill] sm:$0xff] %v16595_v54  ;;  %v16621_v22 = vsub.f32 %v8782_v59, %v8826_v60  ;;  %v16631_v41 = vpack.c.bf16 %v17285_v43, %v17286_v7 }
 0xe7c   :  { %13260 = vmatprep.subr.bf16.mxu1 %v17397_v6  ;;  %13404 = vmatprep.subr.bf16.mxu0 %v17397_v6  ;;  %17559 = vst [vmem:[#allocation39_spill] sm:$0xff] %v16498_v13  ;;  %17563 = vst [vmem:[#allocation24_spill] sm:$0xff] %v16575_v52  ;;  %v8225_v0 = vsub.f32 %v16503_v63, %v17568_v57  ;;  %v17569_v43 = vand.u32 4294901760, %v16505_v61  ;;  %v17570_v20 = vand.u32 4294901760, %v16512_v25  ;;  %v17571_v60 = vand.u32 4294901760, %v16514_v44 }
 0xe7d   :  { %11765 = vmatprep.mubr.msk.f32.mxu1 %vm13910_vm1, %v17348_v30  ;;  %11975 = vmatprep.mubr.msk.f32.mxu0 %vm13910_vm1, %v17348_v30  ;;  %v16623_v1 = vpack.c.bf16 %v8170_v51, %v8167_v50  ;;  %17567 = vst [vmem:[#allocation26_spill] sm:$0xff] %v16631_v41  ;;  %v17572_v57 = vand.u32 4294901760, %v16516_v47 }
 0xe7e   :  { %v8232_v7 = vsub.f32 %v16505_v61, %v17569_v43  ;;  %v8890_v59 = vsub.f32 %v16512_v25, %v17570_v20  ;;  %v8897_v34 = vsub.f32 %v16514_v44, %v17571_v60  ;;  %v17573_v43 = vand.u32 4294901760, %v16518_v17 }
 0xe7f   :  { %13262 = vmatpush3.bf16.msra.mxu1 %v16476_v42  ;;  %13406 = vmatpush3.bf16.msra.mxu0 %v16478_v19  ;;  %17566 = vst [vmem:[#allocation18_spill] sm:$0xff] %v16623_v1  ;;  %v8239_v39 = vsub.f32 %v16516_v47, %v17572_v57  ;;  %v17574_v20 = vand.u32 4294901760, %v16520_v38  ;;  %v17575_v60 = vand.u32 4294901760, %v16522_v27  ;;  %v17577_v57 = vand.u32 4294901760, %v16610_v32 }
 0xe80   :  { %13263 = vmatprep.subr.bf16.mxu1 %v17397_v6  ;;  %13407 = vmatprep.subr.bf16.mxu0 %v17397_v6  ;;  %v8233_v49 = vand.u32 4294901760, %v8232_v7  ;;  %v8898_v19 = vand.u32 4294901760, %v8897_v34  ;;  %v17583_v7 = vand.u32 4294901760, %v16540_v36 }
 0xe81   :  { %v8911_v21 = vsub.f32 %v16522_v27, %v17575_v60 }
 0xe83   :  { %13265 = vmatpush3.bf16.msra.mxu1 %v16496_v9  ;;  %13409 = vmatpush3.bf16.msra.mxu0 %v16498_v13  ;;  %v8891_v9 = vand.u32 4294901760, %v8890_v59 }
 0xe84   :  { %13266 = vmatprep.subr.bf16.mxu1 %v17397_v6  ;;  %13410 = vmatprep.subr.bf16.mxu0 %v17397_v6 }
 0xe87   :  { %13268 = vmatpush3.bf16.msra.mxu1 %v16524_v14  ;;  %13412 = vmatpush3.bf16.msra.mxu0 %v16531_v53  ;;  %v17580_v14 = vand.u32 4294901760, %v16614_v31 }
 0xe88   :  { %13269 = vmatprep.subr.bf16.mxu1 %v17397_v6  ;;  %13413 = vmatprep.subr.bf16.mxu0 %v17397_v6 }
 0xe8b   :  { %13271 = vmatpush3.bf16.msra.mxu1 %v16573_v62  ;;  %13415 = vmatpush3.bf16.msra.mxu0 %v16575_v52  ;;  %v17576_v62 = vand.u32 4294901760, %v16600_v46  ;;  %v8226_v52 = vand.u32 4294901760, %v8225_v0 }
 0xe8c   :  { %13272 = vmatprep.subr.bf16.mxu1 %v17397_v6  ;;  %13416 = vmatprep.subr.bf16.mxu0 %v17397_v6 }
 0xe8d   :  { %v16676_v53 = vpack.c.bf16 %v17577_v57, %v17576_v62  ;;  %v16689_v62 = vsub.f32 %v16557_v58, %v8167_v50  ;;  %v16692_v57 = vsub.f32 %v16562_v11, %v8170_v51  ;;  %v8260_v58 = vsub.f32 %v16540_v36, %v17583_v7 }
 0xe8e   :  { %v17584_v50 = vand.u32 4294901760, %v16542_v33  ;;  %v17585_v51 = vand.u32 4294901760, %v16546_v15  ;;  %v17586_v7 = vand.u32 4294901760, %v16565_v5 }
 0xe8f   :  { %13274 = vmatpush3.bf16.msra.mxu1 %v16591_v56  ;;  %13418 = vmatpush3.bf16.msra.mxu0 %v16595_v54  ;;  %v8246_v54 = vsub.f32 %v16518_v17, %v17573_v43  ;;  %v8904_v56 = vsub.f32 %v16520_v38, %v17574_v20  ;;  %17578 = vst [vmem:[#allocation22_spill] sm:$0xff] %v16676_v53  ;;  %v17579_v43 = vand.u32 4294901760, %v16612_v2  ;;  %v8912_v20 = vand.u32 4294901760, %v8911_v21 }
 0xe90   :  { %13275 = vmatprep.subr.bf16.mxu1 %v17397_v6  ;;  %13419 = vmatprep.subr.bf16.mxu0 %v17397_v6  ;;  %v8918_v11 = vsub.f32 %v16542_v33, %v17584_v50  ;;  %v8925_v34 = vsub.f32 %v16546_v15, %v17585_v51  ;;  %v16717_v50 = vsub.f32 %v16565_v5, %v17586_v7  ;;  %v17587_v51 = vand.u32 4294901760, %v16567_v16 }
 0xe91   :  { %v16682_v13 = vpack.c.bf16 %v17580_v14, %v17579_v43  ;;  %v8240_v14 = vand.u32 4294901760, %v8239_v39  ;;  %v8247_v43 = vand.u32 4294901760, %v8246_v54  ;;  %v8905_v60 = vand.u32 4294901760, %v8904_v56 }
 0xe92   :  { %v17307_v56 = vand.u32 4294901760, %v16550_v8  ;;  %v13426_v39 = vpack.c.bf16 %v8898_v19, %v8891_v9  ;;  %v16722_v54 = vsub.f32 %v16567_v16, %v17587_v51  ;;  %v17308_v9 = vand.u32 4294901760, %v16581_v26 }
 0xe93   :  { %17581 = vst [vmem:[#allocation29_spill] sm:$0xff] %v16682_v13  ;;  %13277 = vmatpush3.bf16.msra.mxu1 %v16623_v1  ;;  %13421 = vmatpush3.bf16.msra.mxu0 %v16631_v41  ;;  %v17582_v41 = vand.u32 4294901760, %v16538_v45  ;;  %v8261_v59 = vand.u32 4294901760, %v8260_v58  ;;  %v8919_v5 = vand.u32 4294901760, %v8918_v11  ;;  %v8926_v7 = vand.u32 4294901760, %v8925_v34 }
 0xe94   :  { %13278 = vmatprep.subr.bf16.mxu1 %v17397_v6  ;;  %13422 = vmatprep.subr.bf16.mxu0 %v17397_v6  ;;  %v17588_v16 = vand.u32 4294901760, %v16548_v40  ;;  %v8274_v19 = vsub.f32 %v16550_v8, %v17307_v56  ;;  %v17591_v58 = vand.u32 4294901760, %v16600_v46  ;;  %v17592_v34 = vand.u32 4294901760, %v16579_v35 }
 0xe95   :  { %v8253_v0 = vsub.f32 %v16538_v45, %v17582_v41  ;;  %v13282_v41 = vpack.c.bf16 %v8233_v49, %v8226_v52  ;;  %v13285_v52 = vpack.c.bf16 %v8247_v43, %v8240_v14  ;;  %v13429_v49 = vpack.c.bf16 %v8912_v20, %v8905_v60 }
 0xe96   :  { %v8267_v51 = vsub.f32 %v16548_v40, %v17588_v16  ;;  %v17589_v20 = vand.u32 4294901760, %v16552_v29  ;;  %v17590_v14 = vand.u32 4294901760, %v16571_v24  ;;  %v17313_v43 = vand.u32 4294901760, %v16585_v28 }
 0xe97   :  { %13280 = vmatpush3.bf16.msra.mxu1 %v16676_v53  ;;  %13424 = vmatpush3.bf16.msra.mxu0 %v16682_v13  ;;  %v8254_v21 = vand.u32 4294901760, %v8253_v0  ;;  %v16747_v11 = vsub.f32 %v16600_v46, %v17591_v58  ;;  %v8275_v0 = vand.u32 4294901760, %v8274_v19  ;;  %v17594_v56 = vand.u32 4294901760, %v16587_v3 }
 0xe98   :  { %13281 = vmatprep.subr.bf16.mxu1 %v17397_v6  ;;  %13425 = vmatprep.subr.bf16.mxu0 %v17397_v6  ;;  %v8932_v60 = vsub.f32 %v16552_v29, %v17589_v20  ;;  %v17593_v20 = vand.u32 4294901760, %v16610_v32  ;;  %v8268_v16 = vand.u32 4294901760, %v8267_v51  ;;  %v8946_v58 = vsub.f32 %v16585_v28, %v17313_v43 }
 0xe99   :  { %v8953_v46 = vsub.f32 %v16587_v3, %v17594_v56  ;;  %v17595_v13 = vand.u32 4294901760, %v16612_v2  ;;  %v17596_v19 = vand.u32 4294901760, %v16593_v48  ;;  %v17598_v56 = vand.u32 4294901760, %v16621_v22 }
 0xe9a   :  { %11766 = vmatmul.mubr.f32.vlgmr.msra.gmra.mrb[22].mxu1 %v16182_v18  ;;  %11976 = vmatmul.mubr.f32.vlgmr.msra.gmra.mrb[20].mxu0 %v16182_v18  ;;  %v8939_v18 = vsub.f32 %v16571_v24, %v17590_v14  ;;  %v16761_v14 = vsub.f32 %v16610_v32, %v17593_v20  ;;  %v8933_v32 = vand.u32 4294901760, %v8932_v60  ;;  %v17600_v60 = vand.u32 4294901760, %v16614_v31 }
 0xe9b   :  { %13283 = vmatpush3.bf16.msra.mxu1 %v13282_v41  ;;  %13427 = vmatpush3.bf16.msra.mxu0 %v13426_v39  ;;  %v8281_v41 = vsub.f32 %v16579_v35, %v17592_v34  ;;  %v8288_v39 = vsub.f32 %v16581_v26, %v17308_v9  ;;  %v13288_v34 = vpack.c.bf16 %v8261_v59, %v8254_v21  ;;  %v8947_v43 = vand.u32 4294901760, %v8946_v58 }
 0xe9c   :  { %13284 = vmatprep.subr.bf16.mxu1 %v17397_v6  ;;  %13428 = vmatprep.subr.bf16.mxu0 %v17397_v6  ;;  %v13432_v9 = vpack.c.bf16 %v8926_v7, %v8919_v5  ;;  %v8940_v20 = vand.u32 4294901760, %v8939_v18  ;;  %v16779_v53 = vsub.f32 %v16612_v2, %v17595_v13  ;;  %v8960_v7 = vsub.f32 %v16621_v22, %v17598_v56 }
 0xe9d   :  { %11800 = vmatprep.mubr.msk.f32.mxu1 %vm13910_vm1, %v17348_v30  ;;  %12010 = vmatprep.mubr.msk.f32.mxu0 %vm13910_vm1, %v17348_v30  ;;  %v8282_v59 = vand.u32 4294901760, %v8281_v41  ;;  %v8289_v21 = vand.u32 4294901760, %v8288_v39  ;;  %v17599_v13 = vand.u32 4294901760, %v16654_v23  ;;  %v16799_v18 = vsub.f32 %v16614_v31, %v17600_v60 }
 0xe9e   :  { %v13435_v56 = vpack.c.bf16 %v8940_v20, %v8933_v32  ;;  %v8954_v1 = vand.u32 4294901760, %v8953_v46  ;;  %v8961_v60 = vand.u32 4294901760, %v8960_v7  ;;  %v17601_v41 = vand.u32 4294901760, %v16689_v62 }
 0xe9f   :  { %13286 = vmatpush3.bf16.msra.mxu1 %v13285_v52  ;;  %13430 = vmatpush3.bf16.msra.mxu0 %v13429_v49  ;;  %v8295_v52 = vsub.f32 %v16593_v48, %v17596_v19  ;;  %v17597_v49 = vand.u32 4294901760, %v16605_v4  ;;  %v8967_v2 = vsub.f32 %v16654_v23, %v17599_v13  ;;  %v8980_v19 = vand.u32 4294901760, %v16722_v54 }
 0xea0   :  { %13287 = vmatprep.subr.bf16.mxu1 %v17397_v6  ;;  %13431 = vmatprep.subr.bf16.mxu0 %v17397_v6  ;;  %v13294_v13 = vpack.c.bf16 %v8289_v21, %v8282_v59  ;;  %v8309_v39 = vsub.f32 %v16689_v62, %v17601_v41  ;;  %v8322_v58 = vand.u32 4294901760, %v16747_v11  ;;  %v13438_v32 = vpack.c.bf16 %v8954_v1, %v8947_v43 }
 0xea1   :  { %v8302_v5 = vsub.f32 %v16605_v4, %v17597_v49  ;;  %v13291_v49 = vpack.c.bf16 %v8275_v0, %v8268_v16  ;;  %v8296_v51 = vand.u32 4294901760, %v8295_v52  ;;  %v8968_v42 = vand.u32 4294901760, %v8967_v2 }
 0xea2   :  { %v17603_v0 = vand.u32 4294901760, %v16717_v50  ;;  %v8981_v46 = vsub.f32 %v16722_v54, %v8980_v19  ;;  %v8329_v20 = vand.u32 4294901760, %v16761_v14  ;;  %v8987_v59 = vand.u32 4294901760, %v16779_v53 }
 0xea3   :  { %13289 = vmatpush3.bf16.msra.mxu1 %v13288_v34  ;;  %13433 = vmatpush3.bf16.msra.mxu0 %v13432_v9  ;;  %v8303_v31 = vand.u32 4294901760, %v8302_v5  ;;  %v17602_v34 = vand.u32 4294901760, %v16692_v57  ;;  %v8994_v21 = vand.u32 4294901760, %v16799_v18  ;;  %v13441_v5 = vpack.c.bf16 %v8968_v42, %v8961_v60 }
 0xea4   :  { %13290 = vmatprep.subr.bf16.mxu1 %v17397_v6  ;;  %13434 = vmatprep.subr.bf16.mxu0 %v17397_v6  ;;  %v8974_v16 = vsub.f32 %v16717_v50, %v17603_v0  ;;  %v8310_v7 = vand.u32 4294901760, %v8309_v39  ;;  %v8323_v1 = vsub.f32 %v16747_v11, %v8322_v58  ;;  %v8330_v43 = vsub.f32 %v16761_v14, %v8329_v20 }
 0xea5   :  { %v8316_v9 = vsub.f32 %v16692_v57, %v17602_v34  ;;  %v13297_v52 = vpack.c.bf16 %v8303_v31, %v8296_v51  ;;  %v8982_v34 = vand.u32 4294901760, %v8981_v46  ;;  %v8995_v42 = vsub.f32 %v16799_v18, %v8994_v21 }
 0xea6   :  { %v8975_v41 = vand.u32 4294901760, %v8974_v16  ;;  %v13306_v16 = vpack.c.bf16 %v16505_v61, %v16503_v63  ;;  %v13450_v46 = vpack.c.bf16 %v16514_v44, %v16512_v25 }
 0xea7   :  { %13292 = vmatpush3.bf16.msra.mxu1 %v13291_v49  ;;  %13436 = vmatpush3.bf16.msra.mxu0 %v13435_v56  ;;  %v8317_v2 = vand.u32 4294901760, %v8316_v9  ;;  %v8988_v49 = vsub.f32 %v16779_v53, %v8987_v59  ;;  %v8324_v56 = vand.u32 4294901760, %v8323_v1  ;;  %v8996_v60 = vand.u32 4294901760, %v8995_v42 }
 0xea8   :  { %13293 = vmatprep.subr.bf16.mxu1 %v17397_v6  ;;  %13437 = vmatprep.subr.bf16.mxu0 %v17397_v6  ;;  %v13444_v39 = vpack.c.bf16 %v8982_v34, %v8975_v41  ;;  %v13459_v41 = vpack.c.bf16 %v16571_v24, %v16552_v29  ;;  %v13318_v34 = vpack.c.bf16 %v16581_v26, %v16579_v35 }
 0xea9   :  { %v13300_v51 = vpack.c.bf16 %v8317_v2, %v8310_v7  ;;  %v8989_v31 = vand.u32 4294901760, %v8988_v49  ;;  %v13456_v7 = vpack.c.bf16 %v16546_v15, %v16542_v33  ;;  %v13315_v2 = vpack.c.bf16 %v16550_v8, %v16548_v40 }
 0xeaa   :  { %v13462_v1 = vpack.c.bf16 %v16587_v3, %v16585_v28  ;;  %v13465_v49 = vpack.c.bf16 %v16654_v23, %v16621_v22  ;;  %v13324_v42 = vpack.c.bf16 %v16692_v57, %v16689_v62 }
 0xeab   :  { %13295 = vmatpush3.bf16.msra.mxu1 %v13294_v13  ;;  %13439 = vmatpush3.bf16.msra.mxu0 %v13438_v32  ;;  %v8331_v13 = vand.u32 4294901760, %v8330_v43  ;;  %v13447_v0 = vpack.c.bf16 %v8996_v60, %v8989_v31  ;;  %v13309_v32 = vpack.c.bf16 %v16518_v17, %v16516_v47  ;;  %v13321_v43 = vpack.c.bf16 %v16605_v4, %v16593_v48  ;;  %v17605_v31 = vld [vmem:[#allocation37_spill] sm:$0xff]  ;;  %v17607_v60 = vld [vmem:[#allocation39_spill] sm:$0xff] }
 0xeac   :  { %13296 = vmatprep.subr.bf16.mxu1 %v17397_v6  ;;  %13440 = vmatprep.subr.bf16.mxu0 %v17397_v6 }
 0xead   :  { %v13303_v9 = vpack.c.bf16 %v8331_v13, %v8324_v56  ;;  %v13471_v56 = vpack.c.bf16 %v16799_v18, %v16779_v53  ;;  %v17604_v13 = vld [vmem:[#allocation36_spill] sm:$0xff] }
 0xeaf   :  { %13298 = vmatpush3.bf16.msra.mxu1 %v13297_v52  ;;  %13442 = vmatpush3.bf16.msra.mxu0 %v13441_v5  ;;  %v13453_v52 = vpack.c.bf16 %v16522_v27, %v16520_v38  ;;  %v13312_v5 = vpack.c.bf16 %v16540_v36, %v16538_v45 }
 0xeb0   :  { %13299 = vmatprep.subr.bf16.mxu1 %v17397_v6  ;;  %13443 = vmatprep.subr.bf16.mxu0 %v17397_v6 }
 0xeb3   :  { %13301 = vmatpush3.bf16.msra.mxu1 %v13300_v51  ;;  %13445 = vmatpush3.bf16.msra.mxu0 %v13444_v39  ;;  %v13468_v51 = vpack.c.bf16 %v16722_v54, %v16717_v50  ;;  %v13327_v39 = vpack.c.bf16 %v16761_v14, %v16747_v11 }
 0xeb4   :  { %13302 = vmatprep.subr.bf16.mxu1 %v17397_v6  ;;  %13446 = vmatprep.subr.bf16.mxu0 %v17397_v6 }
 0xeb7   :  { %13304 = vmatpush3.bf16.msra.mxu1 %v13303_v9  ;;  %13448 = vmatpush3.bf16.msra.mxu0 %v13447_v0  ;;  %v17608_v9 = vld [vmem:[#allocation23_spill] sm:$0xff]  ;;  %v17609_v0 = vld [vmem:[#allocation20_spill] sm:$0xff] }
 0xeb8   :  { %13305 = vmatprep.subr.bf16.mxu1 %v17397_v6  ;;  %13449 = vmatprep.subr.bf16.mxu0 %v17397_v6 }
 0xeba   :  { %11801 = vmatmul.mubr.f32.vlgmr.msra.gmra.mrb[22].mxu1 %v16171_v12  ;;  %12011 = vmatmul.mubr.f32.vlgmr.msra.gmra.mrb[20].mxu0 %v16171_v12 }
 0xebb   :  { %13307 = vmatpush3.bf16.msra.mxu1 %v13306_v16  ;;  %13451 = vmatpush3.bf16.msra.mxu0 %v13450_v46  ;;  %v17610_v16 = vld [vmem:[#allocation19_spill] sm:$0xff]  ;;  %v17611_v46 = vld [vmem:[#allocation24_spill] sm:$0xff] }
 0xebc   :  { %13308 = vmatprep.subr.bf16.mxu1 %v17397_v6  ;;  %13452 = vmatprep.subr.bf16.mxu0 %v17397_v6 }
 0xebd   :  { %11835 = vmatprep.mubr.msk.f32.mxu1 %vm13910_vm1, %v17348_v30  ;;  %12045 = vmatprep.mubr.msk.f32.mxu0 %vm13910_vm1, %v17348_v30 }
 0xebf   :  { %13310 = vmatpush3.bf16.msra.mxu1 %v13309_v32  ;;  %13454 = vmatpush3.bf16.msra.mxu0 %v13453_v52  ;;  %v17612_v32 = vld [vmem:[#allocation17_spill] sm:$0xff] }
 0xec0   :  { %13311 = vmatprep.subr.bf16.mxu1 %v17397_v6  ;;  %13455 = vmatprep.subr.bf16.mxu0 %v17397_v6  ;;  %v17613_v52 = vld [vmem:[#allocation25_spill] sm:$0xff] }
 0xec3   :  { %13313 = vmatpush3.bf16.msra.mxu1 %v13312_v5  ;;  %13457 = vmatpush3.bf16.msra.mxu0 %v13456_v7  ;;  %v17614_v5 = vld [vmem:[#allocation18_spill] sm:$0xff] }
 0xec4   :  { %13314 = vmatprep.subr.bf16.mxu1 %v17397_v6  ;;  %13458 = vmatprep.subr.bf16.mxu0 %v17397_v6  ;;  %v17615_v7 = vld [vmem:[#allocation26_spill] sm:$0xff] }
 0xec7   :  { %13316 = vmatpush3.bf16.msra.mxu1 %v13315_v2  ;;  %13460 = vmatpush3.bf16.msra.mxu0 %v13459_v41  ;;  %v17616_v2 = vld [vmem:[#allocation22_spill] sm:$0xff]  ;;  %v17617_v41 = vld [vmem:[#allocation29_spill] sm:$0xff] }
 0xec8   :  { %13317 = vmatprep.subr.bf16.mxu1 %v17397_v6  ;;  %13461 = vmatprep.subr.bf16.mxu0 %v17397_v6 }
 0xecb   :  { %13319 = vmatpush3.bf16.msra.mxu1 %v13318_v34  ;;  %13463 = vmatpush3.bf16.msra.mxu0 %v13462_v1  ;;  %v17618_v34 = vand.u32 4294901760, %v16503_v63  ;;  %v17619_v1 = vand.u32 4294901760, %v16505_v61  ;;  %v17623_v63 = vand.u32 4294901760, %v16516_v47  ;;  %v17624_v61 = vand.u32 4294901760, %v16518_v17 }
 0xecc   :  { %13320 = vmatprep.subr.bf16.mxu1 %v17397_v6  ;;  %13464 = vmatprep.subr.bf16.mxu0 %v17397_v6  ;;  %v17627_v47 = vand.u32 4294901760, %v16538_v45  ;;  %v17628_v17 = vand.u32 4294901760, %v16540_v36  ;;  %v17633_v45 = vand.u32 4294901760, %v16552_v29  ;;  %v17634_v36 = vand.u32 4294901760, %v16571_v24 }
 0xecd   :  { %v17639_v29 = vand.u32 4294901760, %v16593_v48  ;;  %v17640_v24 = vand.u32 4294901760, %v16605_v4  ;;  %v17645_v48 = vand.u32 4294901760, %v16717_v50 }
 0xecf   :  { %13322 = vmatpush3.bf16.msra.mxu1 %v13321_v43  ;;  %13466 = vmatpush3.bf16.msra.mxu0 %v13465_v49  ;;  %v13354_v43 = vpack.c.bf16 %v17619_v1, %v17618_v34  ;;  %v17620_v49 = vand.u32 4294901760, %v16512_v25  ;;  %v17625_v25 = vand.u32 4294901760, %v16520_v38  ;;  %v13360_v38 = vpack.c.bf16 %v17628_v17, %v17627_v47 }
 0xed0   :  { %13323 = vmatprep.subr.bf16.mxu1 %v17397_v6  ;;  %13467 = vmatprep.subr.bf16.mxu0 %v17397_v6  ;;  %v17630_v1 = vand.u32 4294901760, %v16546_v15  ;;  %v17636_v15 = vand.u32 4294901760, %v16581_v26  ;;  %v17642_v26 = vand.u32 4294901760, %v16654_v23  ;;  %v13516_v4 = vpack.c.bf16 %v8980_v19, %v17645_v48 }
 0xed1   :  { %v13375_v23 = vpack.c.bf16 %v8329_v20, %v8322_v58 }
 0xed3   :  { %13325 = vmatpush3.bf16.msra.mxu1 %v13324_v42  ;;  %13469 = vmatpush3.bf16.msra.mxu0 %v13468_v51  ;;  %v17621_v42 = vand.u32 4294901760, %v16514_v44  ;;  %v17626_v44 = vand.u32 4294901760, %v16522_v27  ;;  %v17629_v27 = vand.u32 4294901760, %v16542_v33  ;;  %v17635_v33 = vand.u32 4294901760, %v16579_v35 }
 0xed4   :  { %13326 = vmatprep.subr.bf16.mxu1 %v17397_v6  ;;  %13470 = vmatprep.subr.bf16.mxu0 %v17397_v6  ;;  %v17641_v35 = vand.u32 4294901760, %v16621_v22  ;;  %v13519_v22 = vpack.c.bf16 %v8994_v21, %v8987_v59 }
 0xed5   :  { %v13498_v51 = vpack.c.bf16 %v17621_v42, %v17620_v49  ;;  %v13501_v34 = vpack.c.bf16 %v17626_v44, %v17625_v25  ;;  %v17631_v49 = vand.u32 4294901760, %v16548_v40  ;;  %v17632_v42 = vand.u32 4294901760, %v16550_v8 }
 0xed6   :  { %v17637_v40 = vand.u32 4294901760, %v16585_v28  ;;  %v17638_v8 = vand.u32 4294901760, %v16587_v3  ;;  %v13513_v25 = vpack.c.bf16 %v17642_v26, %v17641_v35  ;;  %v17643_v28 = vand.u32 4294901760, %v16689_v62 }
 0xed7   :  { %13328 = vmatpush3.bf16.msra.mxu1 %v13327_v39  ;;  %13472 = vmatpush3.bf16.msra.mxu0 %v13471_v56  ;;  %v17622_v39 = vld [vmem:[#allocation35_spill] sm:$0xff]  ;;  %v13357_v56 = vpack.c.bf16 %v17624_v61, %v17623_v63  ;;  %v13366_v63 = vpack.c.bf16 %v17636_v15, %v17635_v33  ;;  %v17644_v3 = vand.u32 4294901760, %v16692_v57 }
 0xed8   :  { %13329 = vmatprep.subr.bf16.mxu1 %v17397_v6  ;;  %13473 = vmatprep.subr.bf16.mxu0 %v17397_v6  ;;  %v13510_v61 = vpack.c.bf16 %v17638_v8, %v17637_v40 }
 0xed9   :  { %v13372_v44 = vpack.c.bf16 %v17644_v3, %v17643_v28 }
 0xeda   :  { %11836 = vmatmul.mubr.f32.vlgmr.msra.gmra.mrb[22].mxu1 %v16174_v37  ;;  %12046 = vmatmul.mubr.f32.vlgmr.msra.gmra.mrb[20].mxu0 %v16174_v37  ;;  %v17606_v37 = vld [vmem:[#allocation38_spill] sm:$0xff] }
 0xedb   :  { %13331 = vmatpush3.bf16.msra.mxu1 %v16462_v55  ;;  %13475 = vmatpush3.bf16.msra.mxu0 %v16464_v10 }
 0xedc   :  { %13332 = vmatprep.subr.bf16.mxu1 %v17397_v6  ;;  %13476 = vmatprep.subr.bf16.mxu0 %v17397_v6 }
 0xedd   :  { %11870 = vmatprep.mubr.msk.f32.mxu1 %vm13910_vm1, %v17348_v30  ;;  %12080 = vmatprep.mubr.msk.f32.mxu0 %vm13910_vm1, %v17348_v30 }
 0xedf   :  { %13334 = vmatpush3.bf16.msra.mxu1 %v17604_v13  ;;  %13478 = vmatpush3.bf16.msra.mxu0 %v17605_v31 }
 0xee0   :  { %13335 = vmatprep.subr.bf16.mxu1 %v17397_v6  ;;  %13479 = vmatprep.subr.bf16.mxu0 %v17397_v6 }
 0xee3   :  { %13337 = vmatpush3.bf16.msra.mxu1 %v17606_v37  ;;  %13481 = vmatpush3.bf16.msra.mxu0 %v17607_v60 }
 0xee4   :  { %13338 = vmatprep.subr.bf16.mxu1 %v17397_v6  ;;  %13482 = vmatprep.subr.bf16.mxu0 %v17397_v6 }
 0xee7   :  { %13340 = vmatpush3.bf16.msra.mxu1 %v17608_v9  ;;  %13484 = vmatpush3.bf16.msra.mxu0 %v17609_v0 }
 0xee8   :  { %13341 = vmatprep.subr.bf16.mxu1 %v17397_v6  ;;  %13485 = vmatprep.subr.bf16.mxu0 %v17397_v6 }
 0xeeb   :  { %13343 = vmatpush3.bf16.msra.mxu1 %v17610_v16  ;;  %13487 = vmatpush3.bf16.msra.mxu0 %v17611_v46 }
 0xeec   :  { %13344 = vmatprep.subr.bf16.mxu1 %v17397_v6  ;;  %13488 = vmatprep.subr.bf16.mxu0 %v17397_v6 }
 0xeef   :  { %13346 = vmatpush3.bf16.msra.mxu1 %v17612_v32  ;;  %13490 = vmatpush3.bf16.msra.mxu0 %v17613_v52 }
 0xef0   :  { %13347 = vmatprep.subr.bf16.mxu1 %v17397_v6  ;;  %13491 = vmatprep.subr.bf16.mxu0 %v17397_v6 }
 0xef3   :  { %13349 = vmatpush3.bf16.msra.mxu1 %v17614_v5  ;;  %13493 = vmatpush3.bf16.msra.mxu0 %v17615_v7 }
 0xef4   :  { %13350 = vmatprep.subr.bf16.mxu1 %v17397_v6  ;;  %13494 = vmatprep.subr.bf16.mxu0 %v17397_v6 }
 0xef7   :  { %13352 = vmatpush3.bf16.msra.mxu1 %v17616_v2  ;;  %13496 = vmatpush3.bf16.msra.mxu0 %v17617_v41 }
 0xef8   :  { %13353 = vmatprep.subr.bf16.mxu1 %v17397_v6  ;;  %13497 = vmatprep.subr.bf16.mxu0 %v17397_v6 }
 0xefa   :  { %11871 = vmatmul.mubr.f32.vlgmr.msra.gmra.mrb[22].mxu1 %v17622_v39  ;;  %12081 = vmatmul.mubr.f32.vlgmr.msra.gmra.mrb[20].mxu0 %v17622_v39  ;;  %v13507_v39 = vpack.c.bf16 %v17634_v36, %v17633_v45 }
 0xefb   :  { %13355 = vmatpush3.bf16.msra.mxu1 %v13354_v43  ;;  %13499 = vmatpush3.bf16.msra.mxu0 %v13498_v51  ;;  %v13504_v43 = vpack.c.bf16 %v17630_v1, %v17629_v27  ;;  %v13363_v51 = vpack.c.bf16 %v17632_v42, %v17631_v49 }
 0xefc   :  { %13356 = vmatprep.subr.bf16.mxu1 %v17397_v6  ;;  %13500 = vmatprep.subr.bf16.mxu0 %v17397_v6 }
 0xefd   :  { %11905 = vmatprep.mubr.msk.f32.mxu1 %vm13910_vm1, %v17348_v30  ;;  %12115 = vmatprep.mubr.msk.f32.mxu0 %vm13910_vm1, %v17348_v30 }
 0xeff   :  { %13358 = vmatpush3.bf16.msra.mxu1 %v13357_v56  ;;  %13502 = vmatpush3.bf16.msra.mxu0 %v13501_v34  ;;  %v13369_v56 = vpack.c.bf16 %v17640_v24, %v17639_v29 }
 0xf00   :  { %13359 = vmatprep.subr.bf16.mxu1 %v17397_v6  ;;  %13503 = vmatprep.subr.bf16.mxu0 %v17397_v6 }
 0xf03   :  { %13361 = vmatpush3.bf16.msra.mxu1 %v13360_v38  ;;  %13505 = vmatpush3.bf16.msra.mxu0 %v13504_v43 }
 0xf04   :  { %13362 = vmatprep.subr.bf16.mxu1 %v17397_v6  ;;  %13506 = vmatprep.subr.bf16.mxu0 %v17397_v6 }
 0xf07   :  { %13364 = vmatpush3.bf16.msra.mxu1 %v13363_v51  ;;  %13508 = vmatpush3.bf16.msra.mxu0 %v13507_v39 }
 0xf08   :  { %13365 = vmatprep.subr.bf16.mxu1 %v17397_v6  ;;  %13509 = vmatprep.subr.bf16.mxu0 %v17397_v6 }
 0xf0b   :  { %13367 = vmatpush3.bf16.msra.mxu1 %v13366_v63  ;;  %13511 = vmatpush3.bf16.msra.mxu0 %v13510_v61 }
 0xf0c   :  { %13368 = vmatprep.subr.bf16.mxu1 %v17397_v6  ;;  %13512 = vmatprep.subr.bf16.mxu0 %v17397_v6 }
 0xf0f   :  { %13370 = vmatpush3.bf16.msra.mxu1 %v13369_v56  ;;  %13514 = vmatpush3.bf16.msra.mxu0 %v13513_v25 }
 0xf10   :  { %13371 = vmatprep.subr.bf16.mxu1 %v17397_v6  ;;  %13515 = vmatprep.subr.bf16.mxu0 %v17397_v6 }
 0xf13   :  { %13373 = vmatpush3.bf16.msra.mxu1 %v13372_v44  ;;  %13517 = vmatpush3.bf16.msra.mxu0 %v13516_v4 }
 0xf14   :  { %13374 = vmatprep.subr.bf16.mxu1 %v17397_v6  ;;  %13518 = vmatprep.subr.bf16.mxu0 %v17397_v6 }
 0xf17   :  { %13376 = vmatpush3.bf16.msra.mxu1 %v13375_v23  ;;  %13520 = vmatpush3.bf16.msra.mxu0 %v13519_v22 }
 0xf18   :  { %13377 = vmatprep.subr.bf16.mxu1 %v17397_v6  ;;  %13521 = vmatprep.subr.bf16.mxu0 %v17397_v6 }
 0xf1a   :  { %11906 = vmatmul.mubr.f32.vlgmr.msra.gmra.mrb[22].mxu1 %v16171_v12  ;;  %12116 = vmatmul.mubr.f32.vlgmr.msra.gmra.mrb[20].mxu0 %v16171_v12 }
 0xf1b   :  { %13379 = vmatpush3.bf16.msra.mxu1 %v16462_v55  ;;  %13523 = vmatpush3.bf16.msra.mxu0 %v16464_v10  ;;  %v9474_v55 = vld [vmem:[%s17106_s16] ss:$0 sm:$0xff]  ;;  %v6758_v10 = vpop.xlane.xlu0 %6757 }
 0xf1c   :  { %13380 = vmatprep.subr.bf16.mxu1 %v17397_v6  ;;  %13524 = vmatprep.subr.bf16.mxu0 %v17397_v6  ;;  %v8090_v57 = vadd.f32 %v9474_v55, %v6758_v10 }
 0xf1d   :  { %11940 = vmatprep.mubr.msk.f32.mxu1 %vm13910_vm1, %v17348_v30  ;;  %12150 = vmatprep.mubr.msk.f32.mxu0 %vm13910_vm1, %v17348_v30  ;;  %v9473_v30 = vld [vmem:[%s17105_s15] ss:$0 sm:$0xff] }
 0xf1f   :  { %13382 = vmatpush3.bf16.msra.mxu1 %v17604_v13  ;;  %13526 = vmatpush3.bf16.msra.mxu0 %v17605_v31 }
 0xf20   :  { %13383 = vmatprep.subr.bf16.mxu1 %v17397_v6  ;;  %13527 = vmatprep.subr.bf16.mxu0 %v17397_v6 }
 0xf23   :  { %13385 = vmatpush3.bf16.msra.mxu1 %v17606_v37  ;;  %13529 = vmatpush3.bf16.msra.mxu0 %v17607_v60 }
 0xf24   :  { %13386 = vmatprep.subr.bf16.mxu1 %v17397_v6  ;;  %13530 = vmatprep.subr.bf16.mxu0 %v17397_v6 }
 0xf27   :  { %13388 = vmatpush3.bf16.msra.mxu1 %v17608_v9  ;;  %13532 = vmatpush3.bf16.msra.mxu0 %v17609_v0  ;;  %v9475_v9 = vld [vmem:[#allocation3] ss:$0 sm:$0xff] }
 0xf28   :  { %13389 = vmatprep.subr.bf16.mxu1 %v17397_v6  ;;  %13533 = vmatprep.subr.bf16.mxu0 %v17397_v6  ;;  %v9476_v0 = vld [vmem:[%s17110_s20] ss:$0 sm:$0xff] }
 0xf2b   :  { %13391 = vmatpush3.bf16.msra.mxu1 %v17610_v16  ;;  %13535 = vmatpush3.bf16.msra.mxu0 %v17611_v46 }
 0xf2c   :  { %13392 = vmatprep.subr.bf16.mxu1 %v17397_v6  ;;  %13536 = vmatprep.subr.bf16.mxu0 %v17397_v6 }
 0xf2f   :  { %13394 = vmatpush3.bf16.msra.mxu1 %v17612_v32  ;;  %13538 = vmatpush3.bf16.msra.mxu0 %v17613_v52 }
 0xf30   :  { %13395 = vmatprep.subr.bf16.mxu1 %v17397_v6  ;;  %13539 = vmatprep.subr.bf16.mxu0 %v17397_v6 }
 0xf33   :  { %13397 = vmatpush3.bf16.msra.mxu1 %v17614_v5  ;;  %13541 = vmatpush3.bf16.msra.mxu0 %v17615_v7 }
 0xf34   :  { %13398 = vmatprep.subr.bf16.mxu1 %v17397_v6  ;;  %13542 = vmatprep.subr.bf16.mxu0 %v17397_v6  ;;  %v8080_v6 = vadd.f32 %v9473_v30, %v6758_v10 }
 0xf37   :  { %13400 = vmatpush3.bf16.msra.mxu1 %v17616_v2  ;;  %13544 = vmatpush3.bf16.msra.mxu0 %v17617_v41 }
 0xf3a   :  { %11941 = vmatmul.mubr.f32.vlgmr.msra.gmra.mrb[22].mxu1 %v16171_v12  ;;  %12151 = vmatmul.mubr.f32.vlgmr.msra.gmra.mrb[20].mxu0 %v16171_v12 }
 0xf4d   :  { %v7412_v53 = vpop.f32.mrb[20].mxu1  ;;  %v8069_v62 = vpop.f32.mrb[18].mxu0 }
 0xf4e   :  { %v8081_v54 = vmul.f32 2.0, %v7412_v53  ;;  %v8091_v50 = vmul.f32 2.0, %v8069_v62  ;;  %v11522_v11 = vpop.f32.mrb[21].mxu1  ;;  %v11732_v14 = vpop.f32.mrb[19].mxu0 }
 0xf50   :  { %v8082_v18 = vsub.f32 %v8080_v6, %v8081_v54  ;;  %v8092_v19 = vsub.f32 %v8090_v57, %v8091_v50 }
 0xf52   :  { %v8093_v12 = vmin.f32 %v8082_v18, %v8092_v19 }
 0xf54   :  { %v8094_v58 = vsel %vm6755_vm6, %v8093_v12, inf }
 0xf55   :  { %8095 = vmin.xlane.f32.xlu1 %v8094_v58 }
 0xfe2   :  { %v8096_v20 = vpop.xlane.xlu1 %8095 }
 0xfe3   :  { %v8097_v59 = vmax.f32 %v8096_v20, 0.0 }
 0xfe5   :  { %13782 = vrsqrt.f32 %v8097_v59  ;;  %vm8100_vm7 = vcmp.eq.f32.partialorder %v8097_v59, inf  ;;  %v8103_v31 = vand.u32 2147483648, %v8097_v59  ;;  %vm8102_vm9 = vcmp.eq.f32.partialorder %v8097_v59, 0.0 }
 0xfef   :  { %v13783_v21 = vpop.eup %13782 }
 0xff0   :  { %v8099_v13 = vmul.f32 %v13783_v21, %v8097_v59 }
 0xff2   :  { %v8101_v37 = vsel %vm8100_vm7, %v8097_v59, %v8099_v13 }
 0xff3   :  { %v8104_v60 = vsel %vm8102_vm9, %v8103_v31, %v8101_v37 }
 0xff4   :  { %8106 = vst.msk [vmem:[%s17112_s22] sm:$0xf] %vm8105_vm8, %v8104_v60  ;;  %s13872_s22 = scalar_lea.vmem %s9448_s27, 64 }
 0xff5   :  { %p13873_p4 = scmp.ne.s32.totalorder %s9448_s27, %s13872_s22  ;;  %p13878_p6 = scmp.lt.s32.totalorder %s13872_s22, %s13872_s22 }
 0xff7   :  { %p13879_p7 = por %p13878_p6, %p13877_p5 }
 0xff9   :  { %p13880_p8 = pnand %p13879_p7, %p13873_p4 }
0x100d   :  { %v8767_v16 = vpop.f32.mrb[22].mxu1  ;;  %v9432_v46 = vpop.f32.mrb[20].mxu0 }
0x100e   :  { %v13568_v32 = vadd.f32 %v9475_v9, %v8767_v16  ;;  %v13569_v52 = vadd.f32 %v9476_v0, %v9432_v46  ;;  %v11942_v5 = vpop.f32.mrb[23].mxu1  ;;  %v12152_v7 = vpop.f32.mrb[21].mxu0 }
0x1010   :  { %8771 = vst.msk [vmem:[%s17111_s21] sm:$0xf] %vm8105_vm8, %v13568_v32  ;;  %9436 = vst [vmem:[#allocation12] sm:$0xf] %v13569_v52 }
0x1011   :  { %13883 = shalt.err (!%p13880_p8)
}
0x1012   :  { %s13884_s18 = scalar_lea.hbm %s17113_s23, 64 }
0x1013   :  { %p13885_p9 = scmp.ne.s32.totalorder %s17113_s23, %s13884_s18  ;;  %p13888_p10 = scmp.lt.u32.totalorder %s13884_s18, %s17113_s23 }
0x1015   :  { %p13890_p11 = pnand %p13888_p10, %p13885_p9 }
0x1017   :  { %13893 = shalt.err (!%p13890_p11)
}
0x1018   :  { %9450 = dma.vmem_to_hbm [thread:$0]  %s9448_s27, 64, %s17113_s23, [#allocation6]  }
0x1019   :  { %13900 = dma.done.wait [#allocation6], 64  }
0x101a   :  { %13901 = vsyncadd [#allocation6], 4294967232 }
0x101b   :  { %9458 = vsyncpa [#allocation5], 1 }
0x101c   :  { %9459 = vsyncpa [#allocation8], 1 }
0x101d   :  { %9460 = vsyncpa [#allocation11], 1 }
0x101e   :  { %9461 = vsyncpa [#allocation6], 1 }

</bundles_post_ra>
